<compile_context>
chip_gen: v6e
topology: v6e:2x2x1
jax: 0.10.0
libtpu: 0.0.40
codegen_flags: <defaults>
</compile_context>

<pallas_src>
import functools

import jax
import jax.numpy as jnp
from jax.experimental import pallas as pl
from jax.experimental.pallas import tpu as pltpu

HIDDEN_DIM = 768
LABEL_NUMS = 4


def _s1_head_kernel(x_ref, w_ref, o_ref, acc_ref, *, t_total, t_tile, precision):
    """Per-(core, batch-block) partial logit sums: sum_t x[b, t, :] @ w.

    x_ref:   (tB, tT, H) VMEM tile of backbone hidden states (f32 / bf16)
    w_ref:   (H, L)      resident VMEM weight, same dtype as x
    o_ref:   (1, tB, L)  this core's partial logit sum, written once
    acc_ref: (tB, L) f32 scratch, running logit sum over this core's T range
    """
    c = pl.program_id(0)                 # core-split index along T
    t = pl.program_id(2)                 # local T-block index within this core
    n_local = pl.num_programs(2)
    gt = c * n_local + t                 # global T-block index
    n_blocks = -(-t_total // t_tile)     # static total number of T blocks

    @pl.when(t == 0)
    def _():
        acc_ref[...] = jnp.zeros_like(acc_ref)

    def accumulate(x):
        tb, tt, h = x.shape
        # (tb*tt, H) @ (H, L) on the MXU with f32 accumulation; the T
        # reduction then happens on the tiny (tb, tt, L) result instead of
        # the (tb, H) activations (no upcast, no big cross-sublane sum).
        p = jax.lax.dot_general(
            x.reshape(tb * tt, h), w_ref[...],
            dimension_numbers=(((1,), (0,)), ((), ())),
            preferred_element_type=jnp.float32,
            precision=precision,
        )
        acc_ref[...] += jnp.sum(p.reshape(tb, tt, -1), axis=1)

    # Steady state: full tiles, no masking.
    @pl.when(gt < n_blocks - 1)
    def _():
        accumulate(x_ref[...])

    # Last global T tile: mask the ragged tail (gated here so the mask cost is
    # paid once per batch block, not on every grid step). Keep select-to-zero
    # semantics: Pallas pads OOB block reads with undefined data and 0*NaN=NaN.
    @pl.when(gt == n_blocks - 1)
    def _():
        x = x_ref[...]
        if t_total % t_tile != 0:
            row = gt * t_tile + jax.lax.broadcasted_iota(jnp.int32, x.shape, 1)
            x = jnp.where(row < t_total, x, jnp.zeros((), x.dtype))
        accumulate(x)

    # Clamped duplicate steps (gt >= n_blocks, odd block counts with the
    # 2-way core split) simply fall through without accumulating.

    @pl.when(t == n_local - 1)
    def _():
        o_ref[0] = acc_ref[...]


def s1_head(hidden_feature, w, b, *, t_tile=512, b_tile=8):
    """hidden_feature: (B, T, H) f32/bf16, w: (H, L) f32, b: (L,) f32 -> (B, L) f32."""
    B, T, H = hidden_feature.shape
    L = w.shape[1]
    x_dtype = hidden_feature.dtype
    itemsize = jnp.dtype(x_dtype).itemsize

    # T tile: a multiple of the dtype's sublane packing (8 f32 / 16 bf16) so
    # the in-kernel (tB, tT, H) -> (tB*tT, H) collapse is a pure relabel.
    sub = max(8, 8 * (4 // max(1, itemsize)))
    t_tile = sub * pl.cdiv(max(t_tile, sub), sub)
    tT = min(t_tile, sub * pl.cdiv(T, sub))
    n_t_blocks = pl.cdiv(T, tT)

    # Batch tile: full B if small (keeps the (tB, L) output block aligned),
    # else b_tile-sized blocks sharded across cores via "parallel".
    tB = B if B <= b_tile else b_tile
    n_b_blocks = pl.cdiv(B, tB)

    # Megacore for small batches: split the T range across a leading size-2
    # core axis when there is only one batch block but several T blocks.
    n_cores = 2 if (n_b_blocks == 1 and n_t_blocks >= 2) else 1
    t_steps = pl.cdiv(n_t_blocks, n_cores)
    last_block = n_t_blocks - 1

    # Cast weights once host-side so the MXU consumes matching dtypes
    # (bf16 x bf16 natively). f32 inputs use HIGHEST precision (multi-pass)
    # to preserve ~f32 accuracy; the extra MXU passes hide under the DMA.
    w_k = w.astype(x_dtype)
    precision = (jax.lax.Precision.HIGHEST
                 if x_dtype == jnp.float32 else jax.lax.Precision.DEFAULT)

    kernel = functools.partial(_s1_head_kernel, t_total=T, t_tile=tT,
                               precision=precision)

    def x_map(c, i, t):
        # Clamp so the (possibly) extra step of the second core re-reads the
        # last valid block (the kernel skips its accumulation).
        return (i, jnp.minimum(c * t_steps + t, last_block), 0)

    grid = (n_cores, n_b_blocks, t_steps)

    cost = pl.CostEstimate(
        flops=2 * B * T * H * L + B * T * L,
        transcendentals=0,
        bytes_accessed=B * T * H * itemsize + H * L * itemsize
                       + n_cores * B * L * 4,
    )

    partial_logits = pl.pallas_call(
        kernel,
        out_shape=jax.ShapeDtypeStruct((n_cores, B, L), jnp.float32),
        grid_spec=pltpu.PrefetchScalarGridSpec(
            num_scalar_prefetch=0,
            grid=grid,
            in_specs=[
                pl.BlockSpec((tB, tT, H), x_map),
                pl.BlockSpec((H, L), lambda c, i, t: (0, 0)),   # resident weight
            ],
            # Constant along t -> accumulator-style residency per (core, batch).
            out_specs=pl.BlockSpec((1, tB, L), lambda c, i, t: (c, i, 0)),
            scratch_shapes=[pltpu.VMEM((tB, L), jnp.float32)],
        ),
        compiler_params=pltpu.CompilerParams(
            dimension_semantics=("parallel", "parallel", "arbitrary"),
            # 2 x (tB*tT*H) input buffers (~25 MiB at f32 defaults) + resident
            # weight; fits v7x's 64 MiB physical VMEM, trivial on v5e/v6e.
            vmem_limit_bytes=40 << 20,
        ),
        cost_estimate=cost,
    )(hidden_feature, w_k)

    # Tiny (B, L) epilogue: combine cores, mean-scale, bias, sigmoid.
    logits = partial_logits.sum(axis=0) * (1.0 / T) + b
    return jax.nn.sigmoid(logits)


if __name__ == "__main__":
    # TODO(synk): Wav2Vec2Model backbone + Wav2Vec2Processor (pretrained conv
    # front-end + transformer) have no clean in-script Pallas equivalent; the
    # kernel consumes the backbone's last_hidden_state (B, T, 768) directly.
    key = jax.random.PRNGKey(0)
    k_x, k_w, k_b = jax.random.split(key, 3)

    bound = 1.0 / (HIDDEN_DIM ** 0.5)
    w = jax.random.uniform(k_w, (HIDDEN_DIM, LABEL_NUMS), jnp.float32, -bound, bound)
    b = jax.random.uniform(k_b, (LABEL_NUMS,), jnp.float32, -bound, bound)

    def ref_fn(x):
        feat = jnp.mean(x.astype(jnp.float32), axis=1)
        logits = jnp.dot(feat, w, precision=jax.lax.Precision.HIGHEST) + b
        return jax.nn.sigmoid(logits)

    B, T = 2, 20
    x = jax.random.normal(k_x, (B, T, HIDDEN_DIM), dtype=jnp.float32)

    # 1) Multi-tile streaming reduction, ragged last T tile, 2-way T core split.
    out = s1_head(x, w, b, t_tile=8)
    jax.block_until_ready(out)
    assert out.shape == (B, LABEL_NUMS)
    assert jnp.allclose(out, ref_fn(x), atol=1e-5, rtol=1e-5)

    # 2) Single full-T block (T smaller than the default tile), masked-only path.
    x2 = jax.random.normal(k_x, (B, 12, HIDDEN_DIM), dtype=jnp.float32)
    out2 = s1_head(x2, w, b)
    jax.block_until_ready(out2)
    assert jnp.allclose(out2, ref_fn(x2), atol=1e-5, rtol=1e-5)

    # 3) bf16 hidden states: bf16 x bf16 MXU contraction, f32 accumulate.
    x3 = x.astype(jnp.bfloat16)
    out3 = s1_head(x3, w, b, t_tile=16)
    jax.block_until_ready(out3)
    assert jnp.allclose(out3, ref_fn(x3), atol=2e-2, rtol=2e-2)

    # 4) T an exact multiple of the tile: unmasked steady-state + last-tile path.
    x4 = jax.random.normal(k_x, (B, 32, HIDDEN_DIM), dtype=jnp.float32)
    out4 = s1_head(x4, w, b, t_tile=16)
    jax.block_until_ready(out4)
    assert jnp.allclose(out4, ref_fn(x4), atol=1e-5, rtol=1e-5)

    print("KERNEL_OK")
</pallas_src>

<mosaic_0001>
module attributes {stable_mosaic.version = 11 : i64} {
  func.func @_s1_head_kernel(%arg0: i32, %arg1: i32, %arg2: i32, %arg3: memref<2x8x768xf32, #tpu.memory_space<vmem>>, %arg4: memref<768x4xf32, #tpu.memory_space<vmem>>, %arg5: memref<1x2x4xf32, #tpu.memory_space<vmem>>, %arg6: memref<2x4xf32, #tpu.memory_space<vmem>>) attributes {dimension_semantics = [#tpu.dimension_semantics<parallel>, #tpu.dimension_semantics<parallel>, #tpu.dimension_semantics<arbitrary>], iteration_bounds = array<i64: 2, 1, 2>, scalar_prefetch = 0 : i64, scratch_operands = 1 : i64, tpu.core_type = #tpu.core_type<tc>, window_params = [{transform_indices = @transform_0, window_bounds = array<i64: 2, 8, 768>}, {pipeline_mode = #tpu.pipeline_mode<synchronous>, transform_indices = @transform_1, window_bounds = array<i64: 768, 4>}, {transform_indices = @transform_2, window_bounds = array<i64: 1, 2, 4>}]} {
    %c2_i32 = arith.constant 2 : i32
    %0 = arith.muli %arg0, %c2_i32 : i32
    %1 = arith.addi %0, %arg2 : i32
    %c0_i32 = arith.constant 0 : i32
    %2 = arith.cmpi eq, %arg2, %c0_i32 : i32
    %3 = arith.extui %2 : i1 to i32
    %c0_i32_0 = arith.constant 0 : i32
    %4 = arith.cmpi ne, %3, %c0_i32_0 : i32
    scf.if %4 {
      %cst = arith.constant 0.000000e+00 : f32
      %14 = vector.broadcast %cst : f32 to vector<2x4xf32>
      %c0 = arith.constant 0 : index
      %c0_6 = arith.constant 0 : index
      %15 = vector.load %arg6[%c0, %c0_6] : memref<2x4xf32, #tpu.memory_space<vmem>>, vector<2x4xf32>
      tpu.vector_store %arg6[%c0, %c0_6], %14 {strides = array<i32>} : memref<2x4xf32, #tpu.memory_space<vmem>>, vector<2x4xf32>,
    } else {
    }
    %c2_i32_1 = arith.constant 2 : i32
    %5 = arith.cmpi slt, %1, %c2_i32_1 : i32
    %6 = arith.extui %5 : i1 to i32
    %c0_i32_2 = arith.constant 0 : i32
    %7 = arith.cmpi ne, %6, %c0_i32_2 : i32
    scf.if %7 {
      %c0 = arith.constant 0 : index
      %c0_6 = arith.constant 0 : index
      %c0_7 = arith.constant 0 : index
      %14 = vector.load %arg3[%c0, %c0_6, %c0_7] : memref<2x8x768xf32, #tpu.memory_space<vmem>>, vector<2x8x768xf32>
      %15 = vector.shape_cast %14 : vector<2x8x768xf32> to vector<16x768xf32>
      %c0_8 = arith.constant 0 : index
      %c0_9 = arith.constant 0 : index
      %16 = vector.load %arg4[%c0_8, %c0_9] : memref<768x4xf32, #tpu.memory_space<vmem>>, vector<768x4xf32>
      %cst = arith.constant dense<0.000000e+00> : vector<16x4xf32>
      %17 = tpu.matmul %15, %16, %cst {dimension_numbers = #tpu.dot_dimension_numbers<[1], [0], [0], [1], [0, 0, 1, 1], [], []>, precision = #tpu.contract_precision<fp32>} : vector<16x768xf32>, vector<768x4xf32>, vector<16x4xf32> -> vector<16x4xf32>
      %c0_10 = arith.constant 0 : index
      %c0_11 = arith.constant 0 : index
      %18 = vector.load %arg6[%c0_10, %c0_11] : memref<2x4xf32, #tpu.memory_space<vmem>>, vector<2x4xf32>
      %19 = vector.shape_cast %17 : vector<16x4xf32> to vector<2x8x4xf32>
      %cst_12 = arith.constant dense<0.000000e+00> : vector<2x4xf32>
      %20 = vector.multi_reduction <add>, %19, %cst_12 [1] : vector<2x8x4xf32> to vector<2x4xf32>
      %21 = arith.addf %18, %20 : vector<2x4xf32>
      %c0_13 = arith.constant 0 : index
      %c0_14 = arith.constant 0 : index
      %22 = vector.load %arg6[%c0_13, %c0_14] : memref<2x4xf32, #tpu.memory_space<vmem>>, vector<2x4xf32>
      tpu.vector_store %arg6[%c0_13, %c0_14], %21 {strides = array<i32>} : memref<2x4xf32, #tpu.memory_space<vmem>>, vector<2x4xf32>,
    } else {
    }
    %c2_i32_3 = arith.constant 2 : i32
    %8 = arith.cmpi eq, %1, %c2_i32_3 : i32
    %9 = arith.extui %8 : i1 to i32
    %c0_i32_4 = arith.constant 0 : i32
    %10 = arith.cmpi ne, %9, %c0_i32_4 : i32
    scf.if %10 {
      %c0 = arith.constant 0 : index
      %c0_6 = arith.constant 0 : index
      %c0_7 = arith.constant 0 : index
      %14 = vector.load %arg3[%c0, %c0_6, %c0_7] : memref<2x8x768xf32, #tpu.memory_space<vmem>>, vector<2x8x768xf32>
      %c8_i32 = arith.constant 8 : i32
      %15 = arith.muli %1, %c8_i32 : i32
      %16 = tpu.iota {dimensions = array<i32: 1>} : vector<2x8x768xi32>
      %17 = vector.broadcast %15 : i32 to vector<2x8x768xi32>
      %18 = arith.addi %17, %16 : vector<2x8x768xi32>
      %c20_i32 = arith.constant 20 : i32
      %19 = vector.broadcast %c20_i32 : i32 to vector<2x8x768xi32>
      %20 = arith.cmpi slt, %18, %19 : vector<2x8x768xi32>
      %cst = arith.constant 0.000000e+00 : f32
      %21 = vector.broadcast %cst : f32 to vector<2x8x768xf32>
      %22 = arith.select %20, %14, %21 : vector<2x8x768xi1>, vector<2x8x768xf32>
      %23 = vector.shape_cast %22 : vector<2x8x768xf32> to vector<16x768xf32>
      %c0_8 = arith.constant 0 : index
      %c0_9 = arith.constant 0 : index
      %24 = vector.load %arg4[%c0_8, %c0_9] : memref<768x4xf32, #tpu.memory_space<vmem>>, vector<768x4xf32>
      %cst_10 = arith.constant dense<0.000000e+00> : vector<16x4xf32>
      %25 = tpu.matmul %23, %24, %cst_10 {dimension_numbers = #tpu.dot_dimension_numbers<[1], [0], [0], [1], [0, 0, 1, 1], [], []>, precision = #tpu.contract_precision<fp32>} : vector<16x768xf32>, vector<768x4xf32>, vector<16x4xf32> -> vector<16x4xf32>
      %c0_11 = arith.constant 0 : index
      %c0_12 = arith.constant 0 : index
      %26 = vector.load %arg6[%c0_11, %c0_12] : memref<2x4xf32, #tpu.memory_space<vmem>>, vector<2x4xf32>
      %27 = vector.shape_cast %25 : vector<16x4xf32> to vector<2x8x4xf32>
      %cst_13 = arith.constant dense<0.000000e+00> : vector<2x4xf32>
      %28 = vector.multi_reduction <add>, %27, %cst_13 [1] : vector<2x8x4xf32> to vector<2x4xf32>
      %29 = arith.addf %26, %28 : vector<2x4xf32>
      %c0_14 = arith.constant 0 : index
      %c0_15 = arith.constant 0 : index
      %30 = vector.load %arg6[%c0_14, %c0_15] : memref<2x4xf32, #tpu.memory_space<vmem>>, vector<2x4xf32>
      tpu.vector_store %arg6[%c0_14, %c0_15], %29 {strides = array<i32>} : memref<2x4xf32, #tpu.memory_space<vmem>>, vector<2x4xf32>,
    } else {
    }
    %c1_i32 = arith.constant 1 : i32
    %11 = arith.cmpi eq, %arg2, %c1_i32 : i32
    %12 = arith.extui %11 : i1 to i32
    %c0_i32_5 = arith.constant 0 : i32
    %13 = arith.cmpi ne, %12, %c0_i32_5 : i32
    scf.if %13 {
      %c0 = arith.constant 0 : index
      %c0_6 = arith.constant 0 : index
      %14 = vector.load %arg6[%c0, %c0_6] : memref<2x4xf32, #tpu.memory_space<vmem>>, vector<2x4xf32>
      %c0_7 = arith.constant 0 : index
      %c0_8 = arith.constant 0 : index
      %c0_9 = arith.constant 0 : index
      %15 = vector.load %arg5[%c0_7, %c0_8, %c0_9] : memref<1x2x4xf32, #tpu.memory_space<vmem>>, vector<1x2x4xf32>
      %16 = vector.shape_cast %15 : vector<1x2x4xf32> to vector<2x4xf32>
      %17 = vector.shape_cast %14 : vector<2x4xf32> to vector<1x2x4xf32>
      tpu.vector_store %arg5[%c0_7, %c0_8, %c0_9], %17 {strides = array<i32>} : memref<1x2x4xf32, #tpu.memory_space<vmem>>, vector<1x2x4xf32>,
    } else {
    }
    return
  }
  func.func @transform_0(%arg0: i32, %arg1: i32, %arg2: i32) -> (i32, i32, i32) {
    %c2_i32 = arith.constant 2 : i32
    %0 = arith.muli %arg0, %c2_i32 : i32
    %1 = arith.addi %0, %arg2 : i32
    %c2_i32_0 = arith.constant 2 : i32
    %2 = arith.minsi %1, %c2_i32_0 : i32
    %c0_i32 = arith.constant 0 : i32
    %c0_i32_1 = arith.constant 0 : i32
    return %arg1, %2, %c0_i32 : i32, i32, i32
  }
  func.func @transform_1(%arg0: i32, %arg1: i32, %arg2: i32) -> (i32, i32) {
    %c0_i32 = arith.constant 0 : i32
    %c0_i32_0 = arith.constant 0 : i32
    %c0_i32_1 = arith.constant 0 : i32
    return %c0_i32, %c0_i32_0 : i32, i32
  }
  func.func @transform_2(%arg0: i32, %arg1: i32, %arg2: i32) -> (i32, i32, i32) {
    %c0_i32 = arith.constant 0 : i32
    %c0_i32_0 = arith.constant 0 : i32
    return %arg0, %arg1, %c0_i32 : i32, i32, i32
  }
}

</mosaic_0001>

<bundles_post_ra>
// kernel: tpu_custom_call.1
= control target key start
LH: loop header
LB: loop body
LE: loop exit
PB: predicated region body
PF: predicated region fallthrough
CT: control target
= control target key end

     0   :  { %7 = vsyncpa [#allocation5], 0  ;;  %s12359_s0 = inlined_call_operand.vmem [shape: f32[2,20,768], index: 0, kind: input, shape index: {}]   ;;  %s12360_s1 = inlined_call_operand.vmem [shape: f32[768,4], index: 1, kind: input, shape index: {}]   ;;  %s12361_s2 = inlined_call_operand.hbm [shape: f32[2,2,4], index: 2, kind: output, shape index: {}]  }
   0x1   :  { %9 = vsyncpa [#allocation5 + $0x1], 0  ;;  %s7744_s9 = smov 0   ;;  %s7746_s10 = smov 0  }
   0x2   :  { %s7748_s11 = smov 0   ;;  %s7750_s12 = smov 0  }
   0x3   :  { %s7752_s13 = smov 0   ;;  %s7754_s14 = smov 0  }
   0x4   :  { %s7756_s15 = smov 0   ;;  %s7758_s16 = smov 0  }
   0x5   :  { %s7760_s17 = smov 0   ;;  %s7762_s18 = smov 0  }
   0x6 LB: > { %s6138_s19 = sadd.s32 4294967295, %s7725_s18   ;;  %s6139_s20 = sadd.s32 4294967294, %s7725_s18   ;;  %s7725_s18 = sphi %s7762_s18, %s15_s18   ;;  %s7721_s17 = sphi %s7760_s17, %s13659_s17   ;;  %s7717_s16 = sphi %s7758_s16, %s13658_s16   ;;  %s7713_s15 = sphi %s7756_s15, %s13657_s15   ;;  %s7709_s14 = sphi %s7754_s14, %s13656_s14   ;;  %s7705_s13 = sphi %s7752_s13, %s13655_s13   ;;  %s7701_s12 = sphi %s7750_s12, %s13654_s12   ;;  %s7697_s11 = sphi %s7748_s11, %s13653_s11   ;;  %s7693_s10 = sphi %s7746_s10, %s13652_s10   ;;  %s7689_s9 = sphi %s7744_s9, %s13651_s9  }
   0x7   : > { %s27_s21 = sadd.s32 1, %s7717_s16  ;;  %s34_s22 = sadd.s32 1, %s7721_s17 }
   0x8   : > { %p28_p0 = scmp.ge.s32.totalorder %s27_s21, 2  ;;  %s6140_s23 = sshll.u32 %s7721_s17, 1 }
   0x9   : > { %s39_s24 = sadd.s32 %s7717_s16, %s6140_s23  ;;  %s51_s25 = sadd.s32 1, %s7705_s13 }
   0xa   : > { %s13661_s21 = smov (%p28_p0, %s27_s21), 0  ;;  %s13663_s22 = smov (!%p28_p0, %s34_s22), %s7721_s17 }
   0xb   : > { %p40_p1 = scmp.lt.s32.totalorder %s39_s24, 2  ;;  %p58_p2 = scmp.ne.s32.totalorder %s7705_s13, %s7701_s12 }
   0xc   : > { %p36_p3 = scmp.ge.s32.totalorder %s13663_s22, 2  ;;  %p59_p4 = scmp.eq.s32.totalorder %s7725_s18, 0 }
   0xd   : > { %s13665_s24 = smov (!%p40_p1, %s39_s24), 2  ;;  %s100_s27 = sadd.s32 1, %s7697_s11 }
   0xe   : > { %s13667_s22 = smov (%p36_p3, %s13663_s22), 0  ;;  %p7809_p5 = por %p59_p4, %p58_p2 }
   0xf   : > { %s6141_s28 = sshll.u32 %s13667_s22, 1  ;;  %s95_s29 = ssub.s32 %s7721_s17, %s13667_s22 }
  0x10   : > { %s43_s30 = sadd.s32 %s6141_s28, %s13661_s21  ;;  %p98_p6 = scmp.eq.s32.totalorder %s95_s29, 0 }
  0x11   : > { %p44_p7 = scmp.lt.s32.totalorder %s43_s30, 2  ;;  %p110_p8 = scmp.ne.s32.totalorder %s7697_s11, %s7693_s10 }
  0x12   : > { %s7821_s3 = scalar_select %p98_p6, %s7697_s11, %s100_s27  }
  0x13   : > { %s13669_s30 = smov (!%p44_p7, %s43_s30), 2  ;;  %p111_p9 = scmp.eq.s32.totalorder %s6138_s19, 3 }
  0x14   : > { %p116_p10 = scmp.ne.s32.totalorder %s7693_s10, %s7689_s9  ;;  %s47_s4 = ssub.s32 %s13665_s24, %s13669_s30 }
  0x15   : > { %p117_p11 = scmp.eq.s32.totalorder %s6139_s20, 3  ;;  %p49_p12 = scmp.eq.s32.totalorder %s47_s4, 0 }
  0x16   : > { %p7825_p13 = por %p111_p9, %p110_p8  ;;  %p6143_p1 = scmp.ge.s32.totalorder %s7725_s18, 4 }
  0x17   : > { %p7829_p0 = por %p117_p11, %p116_p10 }
  0x18   : > { %s7834_s7 = scalar_select %p49_p12, %s7705_s13, %s51_s25  }
  0x19   : > { %136 = sbr.rel (%p6143_p1) target bundleno = 41 (0x29), region = 20 }
  0x1e   : > { %139 = sbr.rel (!%p7809_p5) target bundleno = 41 (0x29), region = 24  ;;  %s141_s8 = sand.u32 (%p7809_p5), 1, %s7705_s13  }
  0x1f   : > { %s7527_s19 = smul.u32 (%p7809_p5), 48, %s13665_s24 }
  0x20   : > { %s7526_s20 = smul.u32 (%p7809_p5), 96, %s141_s8 }
  0x21   : > { %s153_s28 = scalar_lea.vmem (%p7809_p5), %s12359_s0, %s7527_s19 }
  0x22   : > { %v166_v0 = vld [vmem:[%s153_s28] sm:$0xff] (%p7809_p5)  ;;  %v168_v1 = vld [vmem:[%s153_s28 + $0x8] sm:$0xff] (%p7809_p5)  ;;  %v170_v2 = vld [vmem:[%s153_s28 + $0x10] sm:$0xff] (%p7809_p5)  ;;  %s143_s29 = scalar_lea.vmem (%p7809_p5), [#allocation3], %s7526_s20 }
  0x23   : > { %167 = vst [vmem:[%s143_s29] sm:$0xff] %v166_v0  ;;  %169 = vst [vmem:[%s143_s29 + $0x8] sm:$0xff] %v168_v1  ;;  %v172_v3 = vld [vmem:[%s153_s28 + $0x18] sm:$0xff]  ;;  %v174_v4 = vld [vmem:[%s153_s28 + $0x20] sm:$0xff] }
  0x24   : > { %171 = vst [vmem:[%s143_s29 + $0x10] sm:$0xff] %v170_v2  ;;  %v176_v5 = vld [vmem:[%s153_s28 + $0x28] sm:$0xff]  ;;  %173 = vst [vmem:[%s143_s29 + $0x18] sm:$0xff] %v172_v3  ;;  %v178_v6 = vld [vmem:[%s153_s28 + $0x90] sm:$0xff] }
  0x25   : > { %175 = vst [vmem:[%s143_s29 + $0x20] sm:$0xff] %v174_v4  ;;  %177 = vst [vmem:[%s143_s29 + $0x28] sm:$0xff] %v176_v5  ;;  %v180_v7 = vld [vmem:[%s153_s28 + $0x98] sm:$0xff]  ;;  %v182_v8 = vld [vmem:[%s153_s28 + $0xa0] sm:$0xff] }
  0x26   : > { %179 = vst [vmem:[%s143_s29 + $0x30] sm:$0xff] %v178_v6  ;;  %181 = vst [vmem:[%s143_s29 + $0x38] sm:$0xff] %v180_v7  ;;  %v184_v9 = vld [vmem:[%s153_s28 + $0xa8] sm:$0xff]  ;;  %v186_v10 = vld [vmem:[%s153_s28 + $0xb0] sm:$0xff] }
  0x27   : > { %183 = vst [vmem:[%s143_s29 + $0x40] sm:$0xff] %v182_v8  ;;  %v188_v11 = vld [vmem:[%s153_s28 + $0xb8] sm:$0xff]  ;;  %185 = vst [vmem:[%s143_s29 + $0x48] sm:$0xff] %v184_v9 }
  0x28   : > { %187 = vst [vmem:[%s143_s29 + $0x50] sm:$0xff] %v186_v10  ;;  %189 = vst [vmem:[%s143_s29 + $0x58] sm:$0xff] %v188_v11 }
  0x29 PF: > { %p6146_p2 = scmp.ge.s32.totalorder %s7725_s18, 1  ;;  %p194_p3 = scmp.lt.s32.totalorder %s7725_s18, 5 }
  0x2b   : > { %p195_p4 = pnand %p6146_p2, %p194_p3 }
  0x2c   : > { %s201_s24 = sand.u32 (!%p195_p4), 1, %s7701_s12   ;;  %s12600_s25 = sand.u32 (!%p195_p4), 1, %s7693_s10  }
  0x2d   : > { %198 = sbr.rel (%p195_p4) target bundleno = 1228 (0x4cc), region = 47  ;;  %s7849_s30 = sshll.u32 (!%p195_p4), %s12600_s25, 1 }
  0x2e   : > { %s7528_s26 = smul.u32 (!%p195_p4), 96, %s201_s24  ;;  %s6148_s4 = sshll.u32 (!%p195_p4), %s7713_s15, 1 }
  0x2f   : > { %s7853_s8 = sadd.s32 (!%p195_p4), %s7709_s14, %s6148_s4  ;;  %s221_s20 = scalar_lea.vmem (!%p195_p4), [#allocation4], %s7849_s30 }
  0x30   : > { %s7855_s19 = scalar_lea.vmem (!%p195_p4), [#allocation3], %s7528_s26  ;;  %p6149_p5 = scmp.ne.s32.totalorder (!%p195_p4), %s7709_s14, 0 }
  0x32   : > { %232 = sbr.rel (%p6149_p5) target bundleno = 57 (0x39), region = 55 }
  0x37   : > { %vm233_vm0 = vcmask 25600   ;;  %v7727_v12 = vmov 0.0  }
  0x38   : > { %234 = vst.msk [vmem:[#allocation2] sm:$0x3] %vm233_vm0, %v7727_v12 }
  0x39 PF: > { %p6150_p6 = scmp.ge.s32.totalorder %s7853_s8, 2 }
  0x3b   : > { %238 = sbr.rel (%p6150_p6) target bundleno = 624 (0x270), region = 59 }
  0x40   : > { %v282_v13 = vld [vmem:[%s12360_s1 + $0xf8] sm:$0xff]  ;;  %v281_v15 = vld [vmem:[%s12360_s1 + $0xf0] sm:$0xff]  ;;  %v280_v20 = vld [vmem:[%s12360_s1 + $0xe8] sm:$0xff]  ;;  %vm3102_vm1 = vcmask 31744   ;;  %vm3119_vm2 = vcmask 1041409   ;;  %vm3123_vm3 = vcmask 25600  }
  0x41   : > { %v266_v14 = vld [vmem:[%s12360_s1 + $0x78] sm:$0xff]  ;;  %v7869_v16 = vand.u32 4294901760, %v282_v13  ;;  %v7873_v18 = vand.u32 4294901760, %v281_v15  ;;  %v265_v19 = vld [vmem:[%s12360_s1 + $0x70] sm:$0xff]  ;;  %v264_v21 = vld [vmem:[%s12360_s1 + $0x68] sm:$0xff]  ;;  %v7886_v23 = vand.u32 4294901760, %v280_v20 }
  0x42   : > { %v7871_v17 = vand.u32 4294901760, %v266_v14  ;;  %v7884_v22 = vand.u32 4294901760, %v265_v19  ;;  %v7888_v24 = vand.u32 4294901760, %v264_v21  ;;  %v279_v25 = vld [vmem:[%s12360_s1 + $0xe0] sm:$0xff]  ;;  %v278_v27 = vld [vmem:[%s12360_s1 + $0xd8] sm:$0xff]  ;;  %v7917_v33 = vld [vmem:[%s12360_s1 + $0xd0] sm:$0xff] }
  0x43   : > { %v263_v26 = vld [vmem:[%s12360_s1 + $0x60] sm:$0xff]  ;;  %6158 = vmatprep.subr.mxu0 %v7869_v16  ;;  %v7900_v28 = vand.u32 4294901760, %v279_v25  ;;  %v7904_v30 = vand.u32 4294901760, %v278_v27  ;;  %v7907_v31 = vsub.f32 %v282_v13, %v7869_v16  ;;  %v7912_v32 = vld [vmem:[%s12360_s1 + $0x58] sm:$0xff]  ;;  %v7922_v34 = vld [vmem:[%s12360_s1 + $0x50] sm:$0xff]  ;;  %v7932_v37 = vand.u32 4294901760, %v7917_v33 }
  0x44   : > { %v7902_v29 = vand.u32 4294901760, %v263_v26  ;;  %6159 = vmatpush3.msra.mxu0 %v7871_v17  ;;  %v7926_v35 = vand.u32 4294901760, %v7912_v32  ;;  %v7929_v36 = vsub.f32 %v266_v14, %v7871_v17  ;;  %v7935_v38 = vsub.f32 %v281_v15, %v7873_v18  ;;  %v7940_v39 = vld [vmem:[%s12360_s1 + $0xc8] sm:$0xff]  ;;  %v7950_v41 = vld [vmem:[%s12360_s1 + $0xc0] sm:$0xff]  ;;  %v8002_v59 = vld [vmem:[%s12360_s1 + $0xb8] sm:$0xff] }
  0x45   : > { %12846 = vst [vmem:[#allocation7_spill] sm:$0xff] %v7932_v37  ;;  %v7945_v40 = vld [vmem:[%s12360_s1 + $0x48] sm:$0xff]  ;;  %6160 = vmatprep.subr.mxu0 %v7873_v18  ;;  %v12375_v42 = vand.u32 4294901760, %v7907_v31  ;;  %v7955_v43 = vand.u32 4294901760, %v7922_v34  ;;  %v7958_v44 = vsub.f32 %v265_v19, %v7884_v22  ;;  %v7961_v45 = vand.u32 4294901760, %v7940_v39  ;;  %v7975_v50 = vld [vmem:[%s12360_s1 + $0x40] sm:$0xff] }
  0x46   : > { %6161 = vmatpush3.msra.mxu0 %v7884_v22  ;;  %v12374_v46 = vand.u32 4294901760, %v7929_v36  ;;  %v12372_v47 = vand.u32 4294901760, %v7935_v38  ;;  %v7967_v48 = vsub.f32 %v280_v20, %v7886_v23  ;;  %v7970_v49 = vand.u32 4294901760, %v7945_v40  ;;  %v8015_v0 = vld [vmem:[%s12360_s1 + $0x38] sm:$0xff]  ;;  %v8025_v5 = vld [vmem:[%s12360_s1 + $0xb0] sm:$0xff]  ;;  %v8055_v15 = vld [vmem:[%s12360_s1 + $0xa8] sm:$0xff] }
  0x47   : > { %12847 = vst [vmem:[#allocation8_spill] sm:$0xff] %v7955_v43  ;;  %12848 = vst [vmem:[#allocation9_spill] sm:$0xff] %v7961_v45  ;;  %6162 = vmatprep.subr.mxu0 %v7886_v23  ;;  %v590_v51 = vsub.f32 %v7907_v31, %v12375_v42  ;;  %v12371_v52 = vand.u32 4294901760, %v7958_v44  ;;  %v7983_v53 = vsub.f32 %v264_v21, %v7888_v24  ;;  %v7986_v54 = vand.u32 4294901760, %v7950_v41  ;;  %v8040_v10 = vld [vmem:[%s12360_s1 + $0x30] sm:$0xff] }
  0x48   : > { %12849 = vst [vmem:[#allocation10_spill] sm:$0xff] %v7970_v49  ;;  %6163 = vmatpush3.msra.mxu0 %v7888_v24  ;;  %v478_v55 = vsub.f32 %v7929_v36, %v12374_v46  ;;  %v597_v56 = vsub.f32 %v7935_v38, %v12372_v47  ;;  %v12369_v57 = vand.u32 4294901760, %v7967_v48  ;;  %v7997_v58 = vsub.f32 %v279_v25, %v7900_v28  ;;  %v8191_v46 = vld [vmem:[%s12360_s1 + $0x88] sm:$0xff] }
  0x49   : > { %12850 = vst [vmem:[#allocation11_spill] sm:$0xff] %v7986_v54  ;;  %6164 = vmatprep.subr.mxu0 %v7900_v28  ;;  %v591_v60 = vand.u32 4294901760, %v590_v51  ;;  %v485_v61 = vsub.f32 %v7958_v44, %v12371_v52  ;;  %v12367_v62 = vand.u32 4294901760, %v7983_v53  ;;  %v8010_v63 = vand.u32 4294901760, %v7975_v50 }
  0x4a   : > { %6165 = vmatpush3.msra.mxu0 %v7902_v29  ;;  %v479_v1 = vand.u32 4294901760, %v478_v55  ;;  %v598_v2 = vand.u32 4294901760, %v597_v56  ;;  %v604_v3 = vsub.f32 %v7967_v48, %v12369_v57  ;;  %v12366_v4 = vand.u32 4294901760, %v7997_v58  ;;  %v8164_v57 = vld [vmem:[%s12360_s1 + $0x90] sm:$0xff] }
  0x4b   : > { %12851 = vst [vmem:[#allocation12_spill] sm:$0xff] %v8010_v63  ;;  %6166 = vmatprep.subr.mxu0 %v7904_v30  ;;  %6196 = vmatprep.subr.mxu1 %v591_v60  ;;  %v486_v6 = vand.u32 4294901760, %v485_v61  ;;  %v492_v7 = vsub.f32 %v7983_v53, %v12367_v62  ;;  %v8032_v8 = vsub.f32 %v263_v26, %v7902_v29  ;;  %v8035_v9 = vand.u32 4294901760, %v8002_v59  ;;  %v8069_v26 = vld [vmem:[%s12360_s1 + $0x28] sm:$0xff]  ;;  %v8148_v62 = vld [vmem:[%s12360_s1 + $0x18] sm:$0xff] }
  0x4c   : > { %6167 = vmatpush3.msra.mxu0 %v7926_v35  ;;  %6197 = vmatpush3.msra.mxu1 %v479_v1  ;;  %v605_v11 = vand.u32 4294901760, %v604_v3  ;;  %v611_v12 = vsub.f32 %v7997_v58, %v12366_v4  ;;  %v8047_v13 = vsub.f32 %v278_v27, %v7904_v30  ;;  %v8050_v14 = vand.u32 4294901760, %v8015_v0 }
  0x4d   : > { %12852 = vst [vmem:[#allocation13_spill] sm:$0xff] %v8035_v9  ;;  %6168 = vmatprep.subr.mxu0 %v7932_v37  ;;  %6198 = vmatprep.subr.mxu1 %v598_v2  ;;  %v493_v19 = vand.u32 4294901760, %v492_v7  ;;  %v12364_v20 = vand.u32 4294901760, %v8032_v8  ;;  %v8061_v21 = vsub.f32 %v7912_v32, %v7926_v35  ;;  %v8064_v25 = vand.u32 4294901760, %v8025_v5 }
  0x4e   : > { %12853 = vst [vmem:[#allocation14_spill] sm:$0xff] %v8050_v14  ;;  %6169 = vmatpush3.msra.mxu0 %v7955_v43  ;;  %6199 = vmatpush3.msra.mxu1 %v486_v6  ;;  %v612_v27 = vand.u32 4294901760, %v611_v12  ;;  %v12362_v51 = vand.u32 4294901760, %v8047_v13  ;;  %v8075_v55 = vsub.f32 %v7917_v33, %v7932_v37  ;;  %v8078_v32 = vand.u32 4294901760, %v8040_v10  ;;  %v8095_v33 = vld [vmem:[%s12360_s1 + $0xa0] sm:$0xff] }
  0x4f   : > { %12854 = vst [vmem:[#allocation15_spill] sm:$0xff] %v8064_v25  ;;  %6170 = vmatprep.subr.mxu0 %v7961_v45  ;;  %6200 = vmatprep.subr.mxu1 %v605_v11  ;;  %v499_v56 = vsub.f32 %v8032_v8, %v12364_v20  ;;  %v12363_v60 = vand.u32 4294901760, %v8061_v21  ;;  %v8087_v61 = vsub.f32 %v7922_v34, %v7955_v43  ;;  %v8090_v1 = vand.u32 4294901760, %v8055_v15 }
  0x50   : > { %12855 = vst [vmem:[#allocation16_spill] sm:$0xff] %v8078_v32  ;;  %6171 = vmatpush3.msra.mxu0 %v7970_v49  ;;  %6201 = vmatpush3.msra.mxu1 %v493_v19  ;;  %v618_v2 = vsub.f32 %v8047_v13, %v12362_v51  ;;  %v12365_v3 = vand.u32 4294901760, %v8075_v55  ;;  %v8104_v34 = vsub.f32 %v7940_v39, %v7961_v45  ;;  %v8107_v6 = vand.u32 4294901760, %v8069_v26  ;;  %v8121_v39 = vld [vmem:[%s12360_s1 + $0x20] sm:$0xff] }
  0x51   : > { %12856 = vst [vmem:[#allocation17_spill] sm:$0xff] %v8090_v1  ;;  %6172 = vmatprep.subr.mxu0 %v7986_v54  ;;  %6202 = vmatprep.subr.mxu1 %v612_v27  ;;  %v500_v7 = vand.u32 4294901760, %v499_v56  ;;  %v506_v11 = vsub.f32 %v8061_v21, %v12363_v60  ;;  %v12368_v12 = vand.u32 4294901760, %v8087_v61  ;;  %v8116_v19 = vsub.f32 %v7945_v40, %v7970_v49  ;;  %v8134_v40 = vld [vmem:[%s12360_s1 + $0x98] sm:$0xff] }
  0x52   : > { %12857 = vst [vmem:[#allocation18_spill] sm:$0xff] %v8107_v6  ;;  %6173 = vmatpush3.msra.mxu0 %v8010_v63  ;;  %v619_v51 = vand.u32 4294901760, %v618_v2  ;;  %v625_v27 = vsub.f32 %v8075_v55, %v12365_v3  ;;  %v12370_v56 = vand.u32 4294901760, %v8104_v34  ;;  %v8129_v60 = vand.u32 4294901760, %v8095_v33 }
  0x53   : > { %6203 = vmatpush3.msra.mxu1 %v500_v7  ;;  %6174 = vmatprep.subr.mxu0 %v8035_v9  ;;  %v507_v20 = vand.u32 4294901760, %v506_v11  ;;  %v513_v2 = vsub.f32 %v8087_v61, %v12368_v12  ;;  %v12373_v3 = vand.u32 4294901760, %v8116_v19  ;;  %v8143_v4 = vsub.f32 %v7950_v41, %v7986_v54 }
  0x54   : > { %12858 = vst [vmem:[#allocation19_spill] sm:$0xff] %v8129_v60  ;;  %6204 = vmatprep.subr.mxu1 %v619_v51  ;;  %6175 = vmatpush3.msra.mxu0 %v8050_v14  ;;  %v626_v7 = vand.u32 4294901760, %v625_v27  ;;  %v632_v11 = vsub.f32 %v8104_v34, %v12370_v56  ;;  %v8155_v12 = vand.u32 4294901760, %v8121_v39  ;;  %v8159_v41 = vsub.f32 %v7975_v50, %v8010_v63  ;;  %v8177_v50 = vld [vmem:[%s12360_s1 + $0x10] sm:$0xff] }
  0x55   : > { %6205 = vmatpush3.msra.mxu1 %v507_v20  ;;  %6176 = vmatprep.subr.mxu0 %v8064_v25  ;;  %v514_v51 = vand.u32 4294901760, %v513_v2  ;;  %v520_v27 = vsub.f32 %v8116_v19, %v12373_v3  ;;  %v12378_v56 = vand.u32 4294901760, %v8143_v4  ;;  %v8172_v52 = vand.u32 4294901760, %v8134_v40 }
  0x56   : > { %12859 = vst [vmem:[#allocation20_spill] sm:$0xff] %v8155_v12  ;;  %6206 = vmatprep.subr.mxu1 %v626_v7  ;;  %6177 = vmatpush3.msra.mxu0 %v8078_v32  ;;  %v633_v20 = vand.u32 4294901760, %v632_v11  ;;  %v12379_v2 = vand.u32 4294901760, %v8159_v41  ;;  %v8183_v47 = vsub.f32 %v8002_v59, %v8035_v9  ;;  %v8186_v3 = vand.u32 4294901760, %v8148_v62 }
  0x57   : > { %12860 = vst [vmem:[#allocation21_spill] sm:$0xff] %v8172_v52  ;;  %6207 = vmatpush3.msra.mxu1 %v514_v51  ;;  %6178 = vmatprep.subr.mxu0 %v8090_v1  ;;  %v521_v7 = vand.u32 4294901760, %v520_v27  ;;  %v639_v11 = vsub.f32 %v8143_v4, %v12378_v56  ;;  %v8199_v59 = vsub.f32 %v8015_v0, %v8050_v14  ;;  %v8202_v42 = vand.u32 4294901760, %v8164_v57  ;;  %v8219_v0 = vld [vmem:[%s12360_s1 + $0x8] sm:$0xff] }
  0x58   : > { %12861 = vst [vmem:[#allocation22_spill] sm:$0xff] %v8186_v3  ;;  %6208 = vmatprep.subr.mxu1 %v633_v20  ;;  %6179 = vmatpush3.msra.mxu0 %v8107_v6  ;;  %v527_v51 = vsub.f32 %v8159_v41, %v12379_v2  ;;  %v8211_v9 = vsub.f32 %v8025_v5, %v8064_v25  ;;  %v8214_v56 = vand.u32 4294901760, %v8177_v50  ;;  %v8228_v5 = vand.u32 4294901760, %v8191_v46  ;;  %v8233_v25 = vld [vmem:[%s12360_s1 + $0x80] sm:$0xff] }
  0x59   : > { %12862 = vst [vmem:[#allocation23_spill] sm:$0xff] %v8202_v42  ;;  %6209 = vmatpush3.msra.mxu1 %v521_v7  ;;  %6180 = vmatprep.subr.mxu0 %v8129_v60  ;;  %v640_v20 = vand.u32 4294901760, %v639_v11  ;;  %v8225_v27 = vsub.f32 %v8040_v10, %v8078_v32  ;;  %v12865_v14 = vand.u32 4294901760, %v8183_v47  ;;  %v8242_v10 = vsub.f32 %v8055_v15, %v8090_v1  ;;  %v8259_v15 = vld [vmem:[%s12360_s1] sm:$0xff] }
  0x5a   : > { %12863 = vst [vmem:[#allocation24_spill] sm:$0xff] %v8214_v56  ;;  %12864 = vst [vmem:[#allocation25_spill] sm:$0xff] %v8228_v5  ;;  %6181 = vmatpush3.msra.mxu0 %v8155_v12  ;;  %v528_v7 = vand.u32 4294901760, %v527_v51  ;;  %v12398_v2 = vand.u32 4294901760, %v8211_v9  ;;  %v12867_v32 = vand.u32 4294901760, %v8199_v59  ;;  %v8250_v54 = vand.u32 4294901760, %v8219_v0 }
  0x5b   : > { %v646_v11 = vsub.f32 %v8183_v47, %v12865_v14  ;;  %12866 = vst [vmem:[#allocation26_spill] sm:$0xff] %v8242_v10  ;;  %6210 = vmatprep.subr.mxu1 %v640_v20  ;;  %6182 = vmatprep.subr.mxu0 %v8172_v52  ;;  %v8254_v14 = vsub.f32 %v8069_v26, %v8107_v6  ;;  %v8267_v1 = vand.u32 4294901760, %v8233_v25  ;;  %v240_v26 = vld [vmem:[%s7855_s19 + $0x8] sm:$0xff]  ;;  %v12869_v49 = vand.u32 4294901760, %v8225_v27 }
  0x5c   : > { %v534_v63 = vsub.f32 %v8199_v59, %v12867_v32  ;;  %6211 = vmatpush3.msra.mxu1 %v528_v7  ;;  %6183 = vmatpush3.msra.mxu0 %v8186_v3  ;;  %v653_v32 = vsub.f32 %v8211_v9, %v12398_v2  ;;  %v8277_v45 = vsub.f32 %v8095_v33, %v8129_v60  ;;  %v239_v2 = vld [vmem:[%s7855_s19] sm:$0xff]  ;;  %v12870_v43 = vand.u32 4294901760, %v8242_v10 }
  0x5d   : > { %12868 = vst [vmem:[#allocation27_spill] sm:$0xff] %v8254_v14  ;;  %v647_v20 = vand.u32 4294901760, %v646_v11  ;;  %6184 = vmatprep.subr.mxu0 %v8202_v42  ;;  %v541_v7 = vsub.f32 %v8225_v27, %v12869_v49  ;;  %v8285_v37 = vand.u32 4294901760, %v8259_v15  ;;  %v8289_v49 = vsub.f32 %v8121_v39, %v8155_v12 }
  0x5e   : > { %v535_v6 = vand.u32 4294901760, %v534_v63  ;;  %v654_v51 = vand.u32 4294901760, %v653_v32  ;;  %6185 = vmatpush3.msra.mxu0 %v8214_v56  ;;  %v660_v63 = vsub.f32 %v8242_v10, %v12870_v43  ;;  %v12872_v33 = vand.u32 4294901760, %v8254_v14 }
  0x5f   : > { %6212 = vmatprep.subr.mxu1 %v647_v20  ;;  %12871 = vst [vmem:[#allocation28_spill] sm:$0xff] %v8289_v49  ;;  %v542_v11 = vand.u32 4294901760, %v541_v7  ;;  %6186 = vmatprep.subr.mxu0 %v8228_v5  ;;  %v12407_v32 = vand.u32 4294901760, %v8277_v45  ;;  %v8296_v60 = vand.u32 4294901760, %v240_v26  ;;  %v12408_v10 = vand.u32 4294901760, %v8289_v49 }
  0x60   : > { %6213 = vmatpush3.msra.mxu1 %v535_v6  ;;  %v548_v20 = vsub.f32 %v8254_v14, %v12872_v33  ;;  %v661_v43 = vand.u32 4294901760, %v660_v63  ;;  %6187 = vmatpush3.msra.mxu0 %v8250_v54  ;;  %v8302_v6 = vsub.f32 %v8134_v40, %v8172_v52  ;;  %v8304_v39 = vand.u32 4294901760, %v239_v2 }
  0x61   : > { %12873 = vst [vmem:[#allocation29_spill] sm:$0xff] %v8296_v60  ;;  %6214 = vmatprep.subr.mxu1 %v654_v51  ;;  %6188 = vmatprep.subr.mxu0 %v8267_v1  ;;  %v667_v33 = vsub.f32 %v8277_v45, %v12407_v32  ;;  %v8311_v51 = vsub.f32 %v240_v26, %v8296_v60 }
  0x62   : > { %12874 = vst [vmem:[#allocation30_spill] sm:$0xff] %v8304_v39  ;;  %6215 = vmatpush3.msra.mxu1 %v542_v11  ;;  %v549_v7 = vand.u32 4294901760, %v548_v20  ;;  %v8315_v63 = vsub.f32 %v8148_v62, %v8186_v3  ;;  %6189 = vmatpush3.msra.mxu0 %v8285_v37  ;;  %v555_v40 = vsub.f32 %v8289_v49, %v12408_v10 }
  0x63   : > { %6216 = vmatprep.subr.mxu1 %v661_v43  ;;  %v8323_v20 = vsub.f32 %v239_v2, %v8304_v39  ;;  %v8327_v26 = vsub.f32 %v8164_v57, %v8202_v42  ;;  %v668_v32 = vand.u32 4294901760, %v667_v33  ;;  %v12413_v62 = vand.u32 4294901760, %v8311_v51  ;;  %6234 = vmatprep.subr.mxu0 %v7907_v31 }
  0x64   : > { %12875 = vst [vmem:[#allocation31_spill] sm:$0xff] %v8315_v63  ;;  %6217 = vmatpush3.msra.mxu1 %v549_v7  ;;  %v12416_v43 = vand.u32 4294901760, %v8315_v63  ;;  %v8334_v10 = vsub.f32 %v8177_v50, %v8214_v56  ;;  %v556_v11 = vand.u32 4294901760, %v555_v40  ;;  %v12876_v2 = vand.u32 4294901760, %v8302_v6  ;;  %699 = vmatprep.mubr.f32.mxu1 %v8296_v60 }
  0x65   : > { %6218 = vmatprep.subr.mxu1 %v668_v32  ;;  %v446_v33 = vsub.f32 %v8311_v51, %v12413_v62  ;;  %v12877_v7 = vand.u32 4294901760, %v8323_v20  ;;  %v12878_v60 = vand.u32 4294901760, %v8327_v26  ;;  %v8361_v56 = vsub.f32 %v8219_v0, %v8250_v54 }
  0x66   : > { %v674_v3 = vsub.f32 %v8302_v6, %v12876_v2  ;;  %v562_v50 = vsub.f32 %v8315_v63, %v12416_v43  ;;  %v8351_v2 = vsub.f32 %v8191_v46, %v8228_v5  ;;  %6219 = vmatpush3.msra.mxu1 %v556_v11  ;;  %v12879_v42 = vand.u32 4294901760, %v8334_v10 }
  0x67   : > { %v452_v32 = vsub.f32 %v8323_v20, %v12877_v7  ;;  %v681_v62 = vsub.f32 %v8327_v26, %v12878_v60  ;;  %v447_v43 = vand.u32 4294901760, %v446_v33  ;;  %v12423_v7 = vand.u32 4294901760, %v8361_v56 }
  0x68   : > { %v675_v57 = vand.u32 4294901760, %v674_v3  ;;  %v563_v40 = vand.u32 4294901760, %v562_v50  ;;  %v569_v46 = vsub.f32 %v8334_v10, %v12879_v42  ;;  %v12424_v3 = vand.u32 4294901760, %v8351_v2 }
  0x69   : > { %v453_v11 = vand.u32 4294901760, %v452_v32  ;;  %v682_v5 = vand.u32 4294901760, %v681_v62  ;;  %v8370_v60 = vsub.f32 %v8233_v25, %v8267_v1  ;;  %448 = vmatprep.mubr.f32.mxu0 %v447_v43  ;;  %v8377_v42 = vsub.f32 %v8259_v15, %v8285_v37  ;;  %v246_v32 = vld [vmem:[%s7855_s19 + $0x38] sm:$0xff] }
  0x6a   : > { %6220 = vmatprep.subr.mxu1 %v675_v57  ;;  %v570_v0 = vand.u32 4294901760, %v569_v46  ;;  %v688_v33 = vsub.f32 %v8351_v2, %v12424_v3  ;;  %v576_v62 = vsub.f32 %v8361_v56, %v12423_v7  ;;  %v12887_v7 = vld [vmem:[#allocation11_spill] sm:$0xff] }
  0x6b   : > { %6221 = vmatpush3.msra.mxu1 %v563_v40  ;;  %12880 = vst [vmem:[#allocation32_spill] sm:$0xff] %v8377_v42  ;;  %454 = vmatmul.mubr.f32.vlgmr.msra.gmra.mxu0 %v453_v11  ;;  %v12422_v25 = vand.u32 4294901760, %v8370_v60  ;;  %v12421_v57 = vand.u32 4294901760, %v8377_v42  ;;  %v245_v11 = vld [vmem:[%s7855_s19 + $0x30] sm:$0xff] }
  0x6c   : > { %6222 = vmatprep.subr.mxu1 %v682_v5  ;;  %6235 = vmatpush3.msra.mxu0 %v7929_v36  ;;  %v689_v43 = vand.u32 4294901760, %v688_v33  ;;  %v577_v15 = vand.u32 4294901760, %v576_v62  ;;  %v8405_v33 = vand.u32 4294901760, %v245_v11 }
  0x6d   : > { %6223 = vmatpush3.msra.mxu1 %v570_v0  ;;  %6236 = vmatprep.subr.mxu0 %v7935_v38  ;;  %v695_v5 = vsub.f32 %v8370_v60, %v12422_v25  ;;  %v583_v50 = vsub.f32 %v8377_v42, %v12421_v57  ;;  %v8399_v0 = vand.u32 4294901760, %v246_v32  ;;  %v12886_v25 = vld [vmem:[#allocation10_spill] sm:$0xff] }
  0x6e   : > { %6237 = vmatpush3.msra.mxu0 %v7958_v44  ;;  %6224 = vmatprep.subr.mxu1 %v689_v43  ;;  %v8419_v43 = vsub.f32 %v245_v11, %v8405_v33  ;;  %v12885_v11 = vld [vmem:[#allocation9_spill] sm:$0xff] }
  0x6f   : > { %6238 = vmatprep.subr.mxu0 %v7967_v48  ;;  %6225 = vmatpush3.msra.mxu1 %v577_v15  ;;  %v696_v40 = vand.u32 4294901760, %v695_v5  ;;  %v584_v46 = vand.u32 4294901760, %v583_v50  ;;  %12881 = vst [vmem:[#allocation33_spill] sm:$0xff] %v8399_v0  ;;  %v8412_v62 = vsub.f32 %v246_v32, %v8399_v0  ;;  %v12882_v50 = vld [vmem:[#allocation7_spill] sm:$0xff]  ;;  %v12883_v32 = vld [vmem:[#allocation8_spill] sm:$0xff] }
  0x70   : > { %6239 = vmatpush3.msra.mxu0 %v7983_v53  ;;  %v12429_v5 = vand.u32 4294901760, %v8419_v43 }
  0x71   : > { %6226 = vmatprep.subr.mxu1 %v696_v40  ;;  %6240 = vmatprep.subr.mxu0 %v7997_v58  ;;  %v12425_v15 = vand.u32 4294901760, %v8412_v62 }
  0x72   : > { %6227 = vmatpush3.msra.mxu1 %v584_v46  ;;  %6241 = vmatpush3.msra.mxu0 %v8032_v8  ;;  %v12884_v46 = vld [vmem:[#allocation26_spill] sm:$0xff]  ;;  %v467_v57 = vsub.f32 %v8419_v43, %v12429_v5  ;;  %v12891_v5 = vld [vmem:[#allocation15_spill] sm:$0xff] }
  0x73   : > { %701 = vmatmul.mubr.f32.vlgmr.msra.gmra.mxu1 %v8304_v39  ;;  %6242 = vmatprep.subr.mxu0 %v8047_v13  ;;  %v461_v40 = vsub.f32 %v8412_v62, %v12425_v15  ;;  %v12888_v15 = vld [vmem:[#allocation12_spill] sm:$0xff]  ;;  %v12889_v39 = vld [vmem:[#allocation13_spill] sm:$0xff] }
  0x74   : > { %6272 = vmatprep.subr.mxu1 %v7869_v16  ;;  %6243 = vmatpush3.msra.mxu0 %v8061_v21 }
  0x75   : > { %6273 = vmatpush3.msra.mxu1 %v7871_v17  ;;  %6244 = vmatprep.subr.mxu0 %v8075_v55  ;;  %v462_v3 = vand.u32 4294901760, %v461_v40  ;;  %v12893_v40 = vld [vmem:[#allocation17_spill] sm:$0xff] }
  0x76   : > { %6274 = vmatprep.subr.mxu1 %v7873_v18  ;;  %6245 = vmatpush3.msra.mxu0 %v8087_v61 }
  0x77   : > { %6275 = vmatpush3.msra.mxu1 %v7884_v22  ;;  %6246 = vmatprep.subr.mxu0 %v8104_v34 }
  0x78   : > { %6276 = vmatprep.subr.mxu1 %v7886_v23  ;;  %6247 = vmatpush3.msra.mxu0 %v8116_v19 }
  0x79   : > { %6277 = vmatpush3.msra.mxu1 %v7888_v24  ;;  %6248 = vmatprep.subr.mxu0 %v8143_v4 }
  0x7a   : > { %6278 = vmatprep.subr.mxu1 %v7900_v28  ;;  %6249 = vmatpush3.msra.mxu0 %v8159_v41 }
  0x7b   : > { %6279 = vmatpush3.msra.mxu1 %v7902_v29  ;;  %6250 = vmatprep.subr.mxu0 %v8183_v47 }
  0x7c   : > { %6280 = vmatprep.subr.mxu1 %v7904_v30  ;;  %6251 = vmatpush3.msra.mxu0 %v8199_v59 }
  0x7d   : > { %6281 = vmatpush3.msra.mxu1 %v7926_v35  ;;  %6252 = vmatprep.subr.mxu0 %v8211_v9 }
  0x7e   : > { %6282 = vmatprep.subr.mxu1 %v12882_v50  ;;  %6253 = vmatpush3.msra.mxu0 %v8225_v27 }
  0x7f   : > { %6283 = vmatpush3.msra.mxu1 %v12883_v32  ;;  %6254 = vmatprep.subr.mxu0 %v12884_v46 }
  0x80   : > { %6284 = vmatprep.subr.mxu1 %v12885_v11  ;;  %6255 = vmatpush3.msra.mxu0 %v8254_v14  ;;  %v468_v14 = vand.u32 4294901760, %v467_v57  ;;  %v12890_v11 = vld [vmem:[#allocation14_spill] sm:$0xff]  ;;  %v12895_v57 = vld [vmem:[#allocation19_spill] sm:$0xff] }
  0x81   : > { %6285 = vmatpush3.msra.mxu1 %v12886_v25  ;;  %6256 = vmatprep.subr.mxu0 %v8277_v45 }
  0x82   : > { %6286 = vmatprep.subr.mxu1 %v12887_v7  ;;  %6257 = vmatpush3.msra.mxu0 %v8289_v49  ;;  %v12892_v49 = vld [vmem:[#allocation16_spill] sm:$0xff] }
  0x83   : > { %6287 = vmatpush3.msra.mxu1 %v12888_v15  ;;  %6258 = vmatprep.subr.mxu0 %v8302_v6 }
  0x84   : > { %6288 = vmatprep.subr.mxu1 %v12889_v39  ;;  %6259 = vmatpush3.msra.mxu0 %v8315_v63  ;;  %v12894_v63 = vld [vmem:[#allocation18_spill] sm:$0xff] }
  0x85   : > { %6289 = vmatpush3.msra.mxu1 %v12890_v11  ;;  %6260 = vmatprep.subr.mxu0 %v8327_v26 }
  0x86   : > { %6290 = vmatprep.subr.mxu1 %v12891_v5  ;;  %463 = vmatprep.mubr.f32.mxu0 %v462_v3  ;;  %v12897_v3 = vand.u32 4294901760, %v7929_v36  ;;  %v12904_v36 = vand.u32 4294901760, %v7967_v48  ;;  %v12909_v48 = vand.u32 4294901760, %v8323_v20 }
  0x87   : > { %6261 = vmatpush3.msra.mxu0 %v8334_v10  ;;  %6291 = vmatpush3.msra.mxu1 %v12892_v49 }
  0x88   : > { %469 = vmatmul.mubr.f32.gmra.mxu0 %v468_v14  ;;  %6262 = vmatprep.subr.mxu0 %v8351_v2  ;;  %v12896_v14 = vand.u32 4294901760, %v7907_v31  ;;  %v12903_v31 = vld [vmem:[#allocation25_spill] sm:$0xff] }
  0x89   : > { %6292 = vmatprep.subr.mxu1 %v12893_v40  ;;  %6263 = vmatpush3.msra.mxu0 %v8361_v56 }
  0x8a   : > { %6293 = vmatpush3.msra.mxu1 %v12894_v63  ;;  %6264 = vmatprep.subr.mxu0 %v8370_v60 }
  0x8b   : > { %6294 = vmatprep.subr.mxu1 %v12895_v57  ;;  %6265 = vmatpush3.msra.mxu0 %v8377_v42  ;;  %v12898_v57 = vld [vmem:[#allocation22_spill] sm:$0xff]  ;;  %v12899_v42 = vand.u32 4294901760, %v7935_v38  ;;  %v12905_v38 = vand.u32 4294901760, %v7983_v53  ;;  %v12911_v53 = vand.u32 4294901760, %v8061_v21  ;;  %v12918_v21 = vand.u32 4294901760, %v8143_v4  ;;  %v297_v4 = vld [vmem:[%s12360_s1 + $0x170] sm:$0xff] }
  0x8c   : > { %843 = vmatprep.mubr.f32.mxu0 %v8311_v51  ;;  %6295 = vmatpush3.msra.mxu1 %v8155_v12  ;;  %v12900_v12 = vld [vmem:[#allocation23_spill] sm:$0xff] }
  0x8d   : > { %706 = vmatprep.mubr.f32.mxu1 %v8399_v0  ;;  %846 = vmatmul.mubr.f32.vlgmr.msra.gmra.mxu0 %v8323_v20  ;;  %v12901_v0 = vld [vmem:[#allocation24_spill] sm:$0xff]  ;;  %v12926_v20 = vld [vmem:[#allocation9_spill] sm:$0xff] }
  0x8e   : > { %6296 = vmatprep.subr.mxu1 %v8172_v52  ;;  %6310 = vmatprep.subr.mxu0 %v12896_v14  ;;  %v12902_v52 = vand.u32 4294901760, %v7958_v44  ;;  %v12907_v44 = vand.u32 4294901760, %v8311_v51  ;;  %v12910_v14 = vand.u32 4294901760, %v8047_v13  ;;  %v12914_v51 = vand.u32 4294901760, %v8087_v61 }
  0x8f   : > { %708 = vmatmul.mubr.f32.gmra.mxu1 %v8405_v33  ;;  %6311 = vmatpush3.msra.mxu0 %v12897_v3  ;;  %v12916_v13 = vand.u32 4294901760, %v8104_v34  ;;  %v12923_v34 = vand.u32 4294901760, %v8225_v27  ;;  %v12927_v27 = vld [vmem:[#allocation27_spill] sm:$0xff] }
  0x90   : > { %6297 = vmatpush3.msra.mxu1 %v12898_v57  ;;  %6312 = vmatprep.subr.mxu0 %v12899_v42  ;;  %v12906_v42 = vand.u32 4294901760, %v7997_v58  ;;  %v12912_v58 = vand.u32 4294901760, %v8075_v55  ;;  %v12920_v55 = vand.u32 4294901760, %v8183_v47  ;;  %v295_v3 = vld [vmem:[%s12360_s1 + $0x160] sm:$0xff] }
  0x91   : > { %6298 = vmatprep.subr.mxu1 %v12900_v12  ;;  %852 = vmatprep.mubr.f32.mxu0 %v8412_v62 }
  0x92   : > { %6299 = vmatpush3.msra.mxu1 %v12901_v0  ;;  %6313 = vmatpush3.msra.mxu0 %v12902_v52  ;;  %v12908_v52 = vand.u32 4294901760, %v8032_v8  ;;  %v12913_v8 = vand.u32 4294901760, %v8412_v62  ;;  %v12928_v62 = vand.u32 4294901760, %v12927_v27  ;;  %v12953_v27 = vld [vmem:[#allocation29_spill] sm:$0xff] }
  0x93   : > { %855 = vmatmul.mubr.f32.gmra.mxu0 %v8419_v43  ;;  %6300 = vmatprep.subr.mxu1 %v12903_v31 }
  0x94   : > { %6314 = vmatprep.subr.mxu0 %v12904_v36  ;;  %6301 = vmatpush3.msra.mxu1 %v8250_v54 }
  0x95   : > { %6315 = vmatpush3.msra.mxu0 %v12905_v38  ;;  %6302 = vmatprep.subr.mxu1 %v8267_v1  ;;  %v12932_v38 = vld [vmem:[#allocation28_spill] sm:$0xff] }
  0x96   : > { %6316 = vmatprep.subr.mxu0 %v12906_v42  ;;  %6303 = vmatpush3.msra.mxu1 %v8285_v37 }
  0x97   : > { %959 = vmatprep.mubr.f32.mxu1 %v12907_v44  ;;  %6317 = vmatpush3.msra.mxu0 %v12908_v52  ;;  %v294_v44 = vld [vmem:[%s12360_s1 + $0x158] sm:$0xff] }
  0x98   : > { %963 = vmatmul.mubr.f32.vlgmr.msra.gmra.mxu1 %v12909_v48  ;;  %6318 = vmatprep.subr.mxu0 %v12910_v14 }
  0x99   : > { %6348 = vmatprep.subr.mxu1 %v7869_v16  ;;  %6319 = vmatpush3.msra.mxu0 %v12911_v53  ;;  %v12915_v16 = vand.u32 4294901760, %v8419_v43  ;;  %v310_v53 = vld [vmem:[%s12360_s1 + $0x1d8] sm:$0xff] }
  0x9a   : > { %6349 = vmatpush3.msra.mxu1 %v7871_v17  ;;  %6320 = vmatprep.subr.mxu0 %v12912_v58  ;;  %v12917_v17 = vand.u32 4294901760, %v8116_v19  ;;  %v296_v19 = vld [vmem:[%s12360_s1 + $0x168] sm:$0xff] }
  0x9b   : > { %6350 = vmatprep.subr.mxu1 %v7873_v18  ;;  %970 = vmatprep.mubr.f32.mxu1 %v12913_v8  ;;  %v298_v18 = vld [vmem:[%s12360_s1 + $0x178] sm:$0xff]  ;;  %v12939_v8 = vand.u32 4294901760, %v8327_v26  ;;  %v309_v26 = vld [vmem:[%s12360_s1 + $0x1d0] sm:$0xff] }
  0x9c   : > { %6321 = vmatpush3.msra.mxu0 %v12914_v51  ;;  %6351 = vmatpush3.msra.mxu1 %v7884_v22  ;;  %v12919_v22 = vand.u32 4294901760, %v8159_v41  ;;  %v8536_v61 = vand.u32 4294901760, %v298_v18 }
  0x9d   : > { %974 = vmatmul.mubr.f32.gmra.mxu1 %v12915_v16  ;;  %6322 = vmatprep.subr.mxu0 %v12916_v13  ;;  %v293_v16 = vld [vmem:[%s12360_s1 + $0x150] sm:$0xff]  ;;  %v12940_v13 = vand.u32 4294901760, %v8334_v10 }
  0x9e   : > { %6352 = vmatprep.subr.mxu1 %v7886_v23  ;;  %6323 = vmatpush3.msra.mxu0 %v12917_v17  ;;  %v314_v23 = vld [vmem:[%s12360_s1 + $0x1f8] sm:$0xff]  ;;  %v8632_v17 = vand.u32 4294901760, %v294_v44 }
  0x9f   : > { %6353 = vmatpush3.msra.mxu1 %v7888_v24  ;;  %6324 = vmatprep.subr.mxu0 %v12918_v21  ;;  %v12921_v24 = vand.u32 4294901760, %v8199_v59  ;;  %v8550_v47 = vand.u32 4294901760, %v314_v23  ;;  %v8569_v59 = vand.u32 4294901760, %v297_v4 }
  0xa0   : > { %6354 = vmatprep.subr.mxu1 %v7900_v28  ;;  %6325 = vmatpush3.msra.mxu0 %v12919_v22  ;;  %v313_v28 = vld [vmem:[%s12360_s1 + $0x1f0] sm:$0xff]  ;;  %12941 = vst [vmem:[#allocation12_spill] sm:$0xff] %v8632_v17  ;;  %v308_v22 = vld [vmem:[%s12360_s1 + $0x1c8] sm:$0xff] }
  0xa1   : > { %6355 = vmatpush3.msra.mxu1 %v7902_v29  ;;  %6326 = vmatprep.subr.mxu0 %v12920_v55  ;;  %v12922_v29 = vand.u32 4294901760, %v8211_v9  ;;  %v8565_v9 = vsub.f32 %v298_v18, %v8536_v61  ;;  %v8567_v41 = vand.u32 4294901760, %v313_v28  ;;  %12925 = vst [vmem:[#allocation7_spill] sm:$0xff] %v8569_v59  ;;  %v8588_v36 = vsub.f32 %v314_v23, %v8550_v47 }
  0xa2   : > { %6356 = vmatprep.subr.mxu1 %v7904_v30  ;;  %6327 = vmatpush3.msra.mxu0 %v12921_v24  ;;  %v312_v30 = vld [vmem:[%s12360_s1 + $0x1e8] sm:$0xff]  ;;  %v8597_v42 = vsub.f32 %v297_v4, %v8569_v59  ;;  %v8640_v18 = vand.u32 4294901760, %v310_v53  ;;  %v8661_v55 = vand.u32 4294901760, %v293_v16  ;;  %v12946_v4 = vand.u32 4294901760, %v8370_v60 }
  0xa3   : > { %6357 = vmatpush3.msra.mxu1 %v7926_v35  ;;  %6328 = vmatprep.subr.mxu0 %v12922_v29  ;;  %v12924_v35 = vand.u32 4294901760, %v12884_v46  ;;  %v8574_v43 = vand.u32 4294901760, %v312_v30  ;;  %v311_v46 = vld [vmem:[%s12360_s1 + $0x1e0] sm:$0xff]  ;;  %v12441_v52 = vand.u32 4294901760, %v8565_v9  ;;  %v8604_v48 = vsub.f32 %v313_v28, %v8567_v41 }
  0xa4   : > { %6358 = vmatprep.subr.mxu1 %v12882_v50  ;;  %6329 = vmatpush3.msra.mxu0 %v12923_v34  ;;  %v12930_v50 = vand.u32 4294901760, %v8277_v45  ;;  %v12934_v45 = vand.u32 4294901760, %v8302_v6  ;;  %v8611_v6 = vand.u32 4294901760, %v295_v3  ;;  %v12443_v51 = vand.u32 4294901760, %v8588_v36  ;;  %12943 = vst [vmem:[#allocation13_spill] sm:$0xff] %v8640_v18  ;;  %12945 = vst [vmem:[#allocation14_spill] sm:$0xff] %v8661_v55 }
  0xa5   : > { %6359 = vmatpush3.msra.mxu1 %v12883_v32  ;;  %6330 = vmatprep.subr.mxu0 %v12924_v35  ;;  %12929 = vst [vmem:[#allocation8_spill] sm:$0xff] %v8574_v43  ;;  %v8579_v32 = vand.u32 4294901760, %v296_v19  ;;  %v8617_v58 = vsub.f32 %v312_v30, %v8574_v43  ;;  %v12440_v10 = vand.u32 4294901760, %v8604_v48  ;;  %v12439_v21 = vand.u32 4294901760, %v8597_v42  ;;  %v12948_v30 = vld [vmem:[#allocation19_spill] sm:$0xff]  ;;  %v12949_v34 = vld [vmem:[#allocation32_spill] sm:$0xff] }
  0xa6   : > { %6360 = vmatprep.subr.mxu1 %v12926_v20  ;;  %6331 = vmatpush3.msra.mxu0 %v12928_v62  ;;  %12938 = vst [vmem:[#allocation11_spill] sm:$0xff] %v8611_v6  ;;  %v8659_v23 = vsub.f32 %v295_v3, %v8611_v6  ;;  %v8682_v35 = vsub.f32 %v294_v44, %v8632_v17  ;;  %v307_v20 = vld [vmem:[%s12360_s1 + $0x1c0] sm:$0xff]  ;;  %v12954_v62 = vld [vmem:[#allocation20_spill] sm:$0xff] }
  0xa7   : > { %6361 = vmatpush3.msra.mxu1 %v12886_v25  ;;  %6332 = vmatprep.subr.mxu0 %v12930_v50  ;;  %12931 = vst [vmem:[#allocation26_spill] sm:$0xff] %v8579_v32  ;;  %v12933_v25 = vand.u32 4294901760, %v12932_v38  ;;  %v12438_v24 = vand.u32 4294901760, %v8617_v58  ;;  %v8702_v3 = vsub.f32 %v8597_v42, %v12439_v21  ;;  %v291_v38 = vld [vmem:[%s12360_s1 + $0x140] sm:$0xff] }
  0xa8   : > { %6362 = vmatprep.subr.mxu1 %v12887_v7  ;;  %v12935_v7 = vld [vmem:[#allocation31_spill] sm:$0xff]  ;;  %1140 = vmatprep.mubr.f32.mxu0 %v12953_v27  ;;  %v12955_v44 = vld [vmem:[#allocation30_spill] sm:$0xff] }
  0xa9   : > { %6333 = vmatpush3.msra.mxu0 %v12933_v25  ;;  %6363 = vmatpush3.msra.mxu1 %v12888_v15  ;;  %v12936_v14 = vand.u32 4294901760, %v12935_v7  ;;  %v8609_v15 = vand.u32 4294901760, %v311_v46  ;;  %v8708_v25 = vsub.f32 %v310_v53, %v8640_v18  ;;  %v12956_v7 = vld [vmem:[#allocation21_spill] sm:$0xff]  ;;  %v12444_v53 = vand.u32 4294901760, %v8659_v23 }
  0xaa   : > { %6334 = vmatprep.subr.mxu0 %v12934_v45  ;;  %6364 = vmatprep.subr.mxu1 %v12889_v39  ;;  %v8623_v39 = vsub.f32 %v296_v19, %v8579_v32  ;;  %v12950_v19 = vand.u32 4294901760, %v12949_v34  ;;  %v290_v45 = vld [vmem:[%s12360_s1 + $0x138] sm:$0xff]  ;;  %v8746_v34 = vand.u32 4294901760, %v291_v38 }
  0xab   : > { %6335 = vmatpush3.msra.mxu0 %v12936_v14  ;;  %12937 = vst [vmem:[#allocation10_spill] sm:$0xff] %v8609_v15  ;;  %6365 = vmatpush3.msra.mxu1 %v12890_v11  ;;  %v12942_v11 = vand.u32 4294901760, %v8351_v2  ;;  %v12944_v2 = vand.u32 4294901760, %v8361_v56  ;;  %v8665_v28 = vsub.f32 %v311_v46, %v8609_v15  ;;  %v8673_v56 = vsub.f32 %v8588_v36, %v12443_v51 }
  0xac   : > { %6336 = vmatprep.subr.mxu0 %v12939_v8  ;;  %6366 = vmatprep.subr.mxu1 %v12891_v5  ;;  %v8645_v5 = vsub.f32 %v8565_v9, %v12441_v52  ;;  %v12437_v29 = vand.u32 4294901760, %v8623_v39  ;;  %v8697_v46 = vsub.f32 %v8604_v48, %v12440_v10  ;;  %v8716_v14 = vsub.f32 %v293_v16, %v8661_v55 }
  0xad   : > { %6337 = vmatpush3.msra.mxu0 %v12940_v13  ;;  %6367 = vmatpush3.msra.mxu1 %v12892_v49  ;;  %v292_v49 = vld [vmem:[%s12360_s1 + $0x148] sm:$0xff]  ;;  %v8721_v8 = vsub.f32 %v8617_v58, %v12438_v24  ;;  %v12442_v13 = vand.u32 4294901760, %v8665_v28  ;;  %12960 = vst [vmem:[#allocation24_spill] sm:$0xff] %v8746_v34  ;;  %v12446_v24 = vand.u32 4294901760, %v8708_v25  ;;  %v8770_v10 = vsub.f32 %v8659_v23, %v12444_v53 }
  0xae   : > { %6338 = vmatprep.subr.mxu0 %v12942_v11  ;;  %6368 = vmatprep.subr.mxu1 %v12893_v40  ;;  %v8675_v40 = vand.u32 4294901760, %v309_v26  ;;  %v8686_v60 = vand.u32 4294901760, %v292_v49  ;;  %12957 = vst [vmem:[#allocation18_spill] sm:$0xff] %v8716_v14  ;;  %v8731_v16 = vsub.f32 %v8623_v39, %v12437_v29  ;;  %v288_v29 = vld [vmem:[%s12360_s1 + $0x128] sm:$0xff]  ;;  %v8849_v11 = vld [vmem:[%s12360_s1 + $0x1a0] sm:$0xff] }
  0xaf   : > { %6339 = vmatpush3.msra.mxu0 %v12944_v2  ;;  %6369 = vmatpush3.msra.mxu1 %v12894_v63  ;;  %v8684_v63 = vand.u32 4294901760, %v308_v22  ;;  %v8733_v2 = vand.u32 4294901760, %v307_v20  ;;  %v8765_v21 = vsub.f32 %v8665_v28, %v12442_v13  ;;  %v8832_v53 = vand.u32 4294901760, %v288_v29 }
  0xb0   : > { %6340 = vmatprep.subr.mxu0 %v12946_v4  ;;  %12947 = vst [vmem:[#allocation15_spill] sm:$0xff] %v8675_v40  ;;  %6370 = vmatprep.subr.mxu1 %v12948_v30  ;;  %12952 = vst [vmem:[#allocation17_spill] sm:$0xff] %v8686_v60  ;;  %v306_v4 = vld [vmem:[%s12360_s1 + $0x1b8] sm:$0xff]  ;;  %v8739_v30 = vsub.f32 %v309_v26, %v8675_v40 }
  0xb1   : > { %6341 = vmatpush3.msra.mxu0 %v12950_v19  ;;  %12951 = vst [vmem:[#allocation16_spill] sm:$0xff] %v8684_v63  ;;  %6371 = vmatpush3.msra.mxu1 %v12954_v62  ;;  %12958 = vst [vmem:[#allocation22_spill] sm:$0xff] %v8733_v2  ;;  %v8748_v19 = vand.u32 4294901760, %v290_v45  ;;  %v12445_v62 = vand.u32 4294901760, %v8682_v35  ;;  %v8772_v52 = vand.u32 4294901760, %v306_v4  ;;  %v8794_v26 = vsub.f32 %v307_v20, %v8733_v2 }
  0xb2   : > { %1142 = vmatmul.mubr.f32.vlgmr.msra.gmra.mxu0 %v12955_v44  ;;  %6372 = vmatprep.subr.mxu1 %v12956_v7  ;;  %v12962_v7 = vld [vmem:[#allocation33_spill] sm:$0xff]  ;;  %v12449_v51 = vand.u32 4294901760, %v8739_v30  ;;  %12970 = vst [vmem:[#allocation20_spill] sm:$0xff] %v8832_v53 }
  0xb3   : > { %6386 = vmatprep.subr.mxu0 %v8550_v47  ;;  %6373 = vmatpush3.msra.mxu1 %v12898_v57  ;;  %v8744_v57 = vsub.f32 %v292_v49, %v8686_v60  ;;  %12961 = vst [vmem:[#allocation25_spill] sm:$0xff] %v8748_v19  ;;  %12964 = vst [vmem:[#allocation27_spill] sm:$0xff] %v8772_v52  ;;  %v8788_v49 = vld [vmem:[%s12360_s1 + $0x1a8] sm:$0xff]  ;;  %v8802_v13 = vsub.f32 %v290_v45, %v8748_v19 }
  0xb4   : > { %6387 = vmatpush3.msra.mxu0 %v8536_v61  ;;  %6374 = vmatprep.subr.mxu1 %v12900_v12  ;;  %v8757_v12 = vsub.f32 %v308_v22, %v8684_v63  ;;  %v289_v22 = vld [vmem:[%s12360_s1 + $0x130] sm:$0xff]  ;;  %12965 = vst [vmem:[#allocation28_spill] sm:$0xff] %v8794_v26  ;;  %v8807_v50 = vsub.f32 %v8682_v35, %v12445_v62  ;;  %v287_v62 = vld [vmem:[%s12360_s1 + $0x120] sm:$0xff] }
  0xb5   : > { %12959 = vst [vmem:[#allocation23_spill] sm:$0xff] %v8744_v57  ;;  %6388 = vmatprep.subr.mxu0 %v8567_v41  ;;  %1147 = vmatprep.mubr.f32.mxu0 %v12962_v7  ;;  %12967 = vst [vmem:[#allocation19_spill] sm:$0xff] %v8802_v13  ;;  %v8839_v45 = vsub.f32 %v8739_v30, %v12449_v51  ;;  %v286_v51 = vld [vmem:[%s12360_s1 + $0x118] sm:$0xff] }
  0xb6   : > { %12963 = vst [vmem:[#allocation9_spill] sm:$0xff] %v8757_v12  ;;  %6375 = vmatpush3.msra.mxu1 %v12901_v0  ;;  %6389 = vmatpush3.msra.mxu0 %v8569_v59  ;;  %v305_v0 = vld [vmem:[%s12360_s1 + $0x1b0] sm:$0xff] }
  0xb7   : > { %1149 = vmatmul.mubr.f32.gmra.mxu0 %v8405_v33  ;;  %6376 = vmatprep.subr.mxu1 %v12903_v31  ;;  %v8799_v31 = vsub.f32 %v291_v38, %v8746_v34  ;;  %v8817_v20 = vand.u32 4294901760, %v305_v0  ;;  %v8819_v38 = vand.u32 4294901760, %v289_v22  ;;  %v241_v59 = vld [vmem:[%s7855_s19 + $0x10] sm:$0xff] }
  0xb8   : > { %6390 = vmatprep.subr.mxu0 %v8574_v43  ;;  %6377 = vmatpush3.msra.mxu1 %v8250_v54  ;;  %v8815_v54 = vsub.f32 %v8708_v25, %v12446_v24  ;;  %v8830_v24 = vand.u32 4294901760, %v8788_v49  ;;  %v8866_v43 = vand.u32 4294901760, %v287_v62 }
  0xb9   : > { %12966 = vst [vmem:[#allocation31_spill] sm:$0xff] %v8799_v31  ;;  %6391 = vmatpush3.msra.mxu0 %v8579_v32  ;;  %6378 = vmatprep.subr.mxu1 %v8267_v1  ;;  %12968 = vst [vmem:[#allocation32_spill] sm:$0xff] %v8819_v38 }
  0xba   : > { %6392 = vmatprep.subr.mxu0 %v8609_v15  ;;  %6379 = vmatpush3.msra.mxu1 %v8285_v37  ;;  %12969 = vst [vmem:[#allocation29_spill] sm:$0xff] %v8830_v24  ;;  %v12971_v37 = vand.u32 4294901760, %v8716_v14  ;;  %12974 = vst [vmem:[#allocation21_spill] sm:$0xff] %v8866_v43  ;;  %v12975_v15 = vand.u32 4294901760, %v8673_v56  ;;  %v12977_v56 = vand.u32 4294901760, %v8645_v5  ;;  %v12979_v5 = vand.u32 4294901760, %v8697_v46 }
  0xbb   : > { %1251 = vmatprep.mubr.f32.mxu1 %v12953_v27  ;;  %6393 = vmatpush3.msra.mxu0 %v8611_v6  ;;  %v8853_v27 = vsub.f32 %v306_v4, %v8772_v52  ;;  %v12973_v6 = vand.u32 4294901760, %v8744_v57  ;;  %v8899_v4 = vsub.f32 %v305_v0, %v8817_v20  ;;  %v8948_v46 = vld [vmem:[%s12360_s1 + $0x188] sm:$0xff] }
  0xbc   : > { %v8844_v1 = vsub.f32 %v8716_v14, %v12971_v37  ;;  %1253 = vmatmul.mubr.f32.vlgmr.msra.gmra.mxu1 %v12955_v44  ;;  %6394 = vmatprep.subr.mxu0 %v8640_v18  ;;  %v1537_v44 = vand.u32 4294901760, %v8815_v54  ;;  %v8874_v18 = vsub.f32 %v289_v22, %v8819_v38  ;;  %v12976_v37 = vand.u32 4294901760, %v8757_v12 }
  0xbd   : > { %12972 = vst [vmem:[#allocation30_spill] sm:$0xff] %v8853_v27  ;;  %v8864_v32 = vsub.f32 %v8744_v57, %v12973_v6  ;;  %6424 = vmatprep.subr.mxu1 %v12975_v15  ;;  %6395 = vmatpush3.msra.mxu0 %v8632_v17  ;;  %v8884_v57 = vld [vmem:[%s12360_s1 + $0x198] sm:$0xff]  ;;  %v8891_v22 = vsub.f32 %v288_v29, %v8832_v53  ;;  %v8894_v54 = vand.u32 4294901760, %v8849_v11  ;;  %12978 = vst [vmem:[#allocation33_spill] sm:$0xff] %v8899_v4  ;;  %v285_v15 = vld [vmem:[%s12360_s1 + $0x110] sm:$0xff] }
  0xbe   : > { %v8879_v6 = vsub.f32 %v8757_v12, %v12976_v37  ;;  %6425 = vmatpush3.msra.mxu1 %v12977_v56  ;;  %6396 = vmatprep.subr.mxu0 %v8675_v40  ;;  %v8896_v37 = vand.u32 4294901760, %v286_v51  ;;  %v242_v17 = vld [vmem:[%s7855_s19 + $0x18] sm:$0xff]  ;;  %v1544_v29 = vand.u32 4294901760, %v8839_v45  ;;  %v12980_v40 = vand.u32 4294901760, %v8794_v26  ;;  %v301_v56 = vld [vmem:[%s12360_s1 + $0x190] sm:$0xff] }
  0xbf   : > { %6426 = vmatprep.subr.mxu1 %v12979_v5  ;;  %1258 = vmatprep.mubr.f32.mxu1 %v12962_v7  ;;  %v12981_v14 = vand.u32 4294901760, %v8702_v3  ;;  %v8922_v7 = vsub.f32 %v287_v62, %v8866_v43  ;;  %v12983_v45 = vand.u32 4294901760, %v8799_v31  ;;  %v8953_v0 = vand.u32 4294901760, %v242_v17 }
  0xc0   : > { %v8913_v12 = vsub.f32 %v8794_v26, %v12980_v40  ;;  %6397 = vmatpush3.msra.mxu0 %v8661_v55  ;;  %v8930_v40 = vand.u32 4294901760, %v8884_v57  ;;  %1260 = vmatmul.mubr.f32.gmra.mxu1 %v8405_v33  ;;  %v1551_v3 = vand.u32 4294901760, %v8879_v6  ;;  %v284_v33 = vld [vmem:[%s12360_s1 + $0x108] sm:$0xff]  ;;  %v12987_v6 = vand.u32 4294901760, %v8721_v8 }
  0xc1   : > { %6427 = vmatpush3.msra.mxu1 %v12981_v14  ;;  %12982 = vst [vmem:[#allocation34_spill] sm:$0xff] %v8922_v7  ;;  %v8927_v5 = vsub.f32 %v8799_v31, %v12983_v45  ;;  %6398 = vmatprep.subr.mxu0 %v8684_v63  ;;  %v12985_v14 = vand.u32 4294901760, %v8802_v13  ;;  %v8943_v45 = vand.u32 4294901760, %v285_v15  ;;  %12986 = vst [vmem:[#allocation36_spill] sm:$0xff] %v8953_v0  ;;  %v248_v31 = vld [vmem:[%s7855_s19 + $0x48] sm:$0xff]  ;;  %v12989_v26 = vand.u32 4294901760, %v8731_v16 }
  0xc2   : > { %12984 = vst [vmem:[#allocation35_spill] sm:$0xff] %v8930_v40  ;;  %6428 = vmatprep.subr.mxu1 %v12987_v6  ;;  %6399 = vmatpush3.msra.mxu0 %v8686_v60  ;;  %v8964_v55 = vsub.f32 %v8788_v49, %v8830_v24  ;;  %v1558_v8 = vand.u32 4294901760, %v8913_v12  ;;  %v8978_v63 = vand.u32 4294901760, %v301_v56  ;;  %v12992_v60 = vand.u32 4294901760, %v8765_v21 }
  0xc3   : > { %v8941_v62 = vsub.f32 %v8802_v13, %v12985_v14  ;;  %v8959_v14 = vsub.f32 %v286_v51, %v8896_v37  ;;  %v8966_v13 = vand.u32 4294901760, %v241_v59  ;;  %6429 = vmatpush3.msra.mxu1 %v12989_v26  ;;  %6400 = vmatprep.subr.mxu0 %v8733_v2  ;;  %v12990_v51 = vand.u32 4294901760, %v8853_v27  ;;  %v247_v2 = vld [vmem:[%s7855_s19 + $0x40] sm:$0xff] }
  0xc4   : > { %12991 = vst [vmem:[#allocation38_spill] sm:$0xff] %v8978_v63  ;;  %6430 = vmatprep.subr.mxu1 %v12992_v60  ;;  %6401 = vmatpush3.msra.mxu0 %v8746_v34  ;;  %v1446_v16 = vand.u32 4294901760, %v8927_v5  ;;  %v8986_v26 = vand.u32 4294901760, %v8948_v46  ;;  %v8988_v12 = vand.u32 4294901760, %v284_v33  ;;  %v9000_v60 = vsub.f32 %v285_v15, %v8943_v45  ;;  %v283_v5 = vld [vmem:[%s12360_s1 + $0x100] sm:$0xff] }
  0xc5   : > { %12988 = vst [vmem:[#allocation37_spill] sm:$0xff] %v8966_v13  ;;  %v8976_v6 = vsub.f32 %v8853_v27, %v12990_v51  ;;  %v8992_v51 = vsub.f32 %v8849_v11, %v8894_v54  ;;  %v12993_v27 = vand.u32 4294901760, %v8770_v10  ;;  %6402 = vmatprep.subr.mxu0 %v8772_v52  ;;  %v1453_v21 = vand.u32 4294901760, %v8941_v62  ;;  %v299_v15 = vld [vmem:[%s12360_s1 + $0x180] sm:$0xff]  ;;  %1617 = vmatprep.mubr.f32.mxu1 %v8953_v0 }
  0xc6   : > { %v9006_v49 = vsub.f32 %v242_v17, %v8953_v0  ;;  %v9008_v11 = vand.u32 4294901760, %v248_v31  ;;  %6403 = vmatpush3.msra.mxu0 %v8748_v19  ;;  %v12995_v10 = vand.u32 4294901760, %v8899_v4  ;;  %v9019_v52 = vsub.f32 %v241_v59, %v8966_v13  ;;  %v13042_v0 = vld [vmem:[#allocation32_spill] sm:$0xff] }
  0xc7   : > { %6431 = vmatpush3.msra.mxu1 %v12993_v27  ;;  %v9023_v17 = vsub.f32 %v8884_v57, %v8930_v40  ;;  %6404 = vmatprep.subr.mxu0 %v8817_v20  ;;  %v12997_v62 = vand.u32 4294901760, %v8874_v18  ;;  %v9037_v59 = vsub.f32 %v284_v33, %v8988_v12  ;;  %v9040_v57 = vand.u32 4294901760, %v283_v5 }
  0xc8   : > { %12994 = vst [vmem:[#allocation39_spill] sm:$0xff] %v9008_v11  ;;  %6432 = vmatprep.subr.mxu1 %v1537_v44  ;;  %v1571_v27 = vsub.f32 %v8899_v4, %v12995_v10  ;;  %v12996_v44 = vand.u32 4294901760, %v8807_v50  ;;  %v1565_v10 = vand.u32 4294901760, %v8976_v6  ;;  %v9033_v4 = vand.u32 4294901760, %v247_v2  ;;  %6405 = vmatpush3.msra.mxu0 %v8819_v38 }
  0xc9   : > { %v1459_v19 = vsub.f32 %v8874_v18, %v12997_v62  ;;  %12999 = vst [vmem:[#allocation41_spill] sm:$0xff] %v9040_v57  ;;  %v9043_v6 = vsub.f32 %v301_v56, %v8978_v63  ;;  %6406 = vmatprep.subr.mxu0 %v8830_v24  ;;  %v9048_v62 = vand.u32 4294901760, %v299_v15  ;;  %v9053_v33 = vsub.f32 %v248_v31, %v9008_v11 }
  0xca   : > { %6433 = vmatpush3.msra.mxu1 %v12996_v44  ;;  %12998 = vst [vmem:[#allocation40_spill] sm:$0xff] %v9033_v4  ;;  %v13000_v44 = vand.u32 4294901760, %v8844_v1  ;;  %6407 = vmatpush3.msra.mxu0 %v8832_v53  ;;  %v1572_v50 = vand.u32 4294901760, %v1571_v27  ;;  %v13001_v56 = vand.u32 4294901760, %v8964_v55  ;;  %v13002_v38 = vand.u32 4294901760, %v8864_v32 }
  0xcb   : > { %6434 = vmatprep.subr.mxu1 %v1544_v29  ;;  %v12498_v29 = vand.u32 4294901760, %v9006_v49  ;;  %6408 = vmatprep.subr.mxu0 %v8894_v54  ;;  %v13003_v31 = vand.u32 4294901760, %v8891_v22  ;;  %v9069_v27 = vsub.f32 %v247_v2, %v9033_v4  ;;  %v1460_v32 = vand.u32 4294901760, %v1459_v19 }
  0xcc   : > { %6435 = vmatpush3.msra.mxu1 %v13000_v44  ;;  %v1578_v1 = vsub.f32 %v8964_v55, %v13001_v56  ;;  %v9073_v56 = vsub.f32 %v8948_v46, %v8986_v26  ;;  %6409 = vmatpush3.msra.mxu0 %v8866_v43  ;;  %v9080_v44 = vsub.f32 %v283_v5, %v9040_v57  ;;  %v13006_v46 = vand.u32 4294901760, %v8922_v7 }
  0xcd   : > { %6436 = vmatprep.subr.mxu1 %v1551_v3  ;;  %v1466_v3 = vsub.f32 %v8891_v22, %v13003_v31  ;;  %6410 = vmatprep.subr.mxu0 %v8930_v40  ;;  %v1364_v2 = vsub.f32 %v9006_v49, %v12498_v29  ;;  %v13009_v34 = vand.u32 4294901760, %v9023_v17 }
  0xce   : > { %6437 = vmatpush3.msra.mxu1 %v13002_v38  ;;  %v13004_v38 = vand.u32 4294901760, %v8992_v51  ;;  %13005 = vst [vmem:[#allocation42_spill] sm:$0xff] %v9080_v44  ;;  %v1473_v19 = vsub.f32 %v8922_v7, %v13006_v46  ;;  %6411 = vmatpush3.msra.mxu0 %v8896_v37  ;;  %v1579_v5 = vand.u32 4294901760, %v1578_v1 }
  0xcf   : > { %6438 = vmatprep.subr.mxu1 %v1558_v8  ;;  %v1592_v29 = vsub.f32 %v9023_v17, %v13009_v34  ;;  %6412 = vmatprep.subr.mxu0 %v8978_v63  ;;  %v1467_v46 = vand.u32 4294901760, %v1466_v3  ;;  %v13011_v34 = vand.u32 4294901760, %v9043_v6  ;;  %v1365_v3 = vand.u32 4294901760, %v1364_v2 }
  0xd0   : > { %v1585_v24 = vsub.f32 %v8992_v51, %v13004_v38  ;;  %6439 = vmatpush3.msra.mxu1 %v1446_v16  ;;  %v9092_v38 = vsub.f32 %v299_v15, %v9048_v62  ;;  %v13008_v16 = vand.u32 4294901760, %v9019_v52  ;;  %v13010_v15 = vand.u32 4294901760, %v8959_v14  ;;  %6413 = vmatpush3.msra.mxu0 %v8943_v45 }
  0xd1   : > { %6440 = vmatprep.subr.mxu1 %v1565_v10  ;;  %v1599_v40 = vsub.f32 %v9043_v6, %v13011_v34  ;;  %6414 = vmatprep.subr.mxu0 %v8986_v26  ;;  %v1474_v63 = vand.u32 4294901760, %v1473_v19  ;;  %v1593_v8 = vand.u32 4294901760, %v1592_v29  ;;  %v13013_v34 = vand.u32 4294901760, %v9000_v60 }
  0xd2   : > { %13007 = vst [vmem:[#allocation43_spill] sm:$0xff] %v9092_v38  ;;  %v1370_v31 = vsub.f32 %v9019_v52, %v13008_v16  ;;  %6441 = vmatpush3.msra.mxu1 %v1453_v21  ;;  %v1480_v10 = vsub.f32 %v8959_v14, %v13010_v15  ;;  %v1586_v16 = vand.u32 4294901760, %v1585_v24  ;;  %v13012_v15 = vand.u32 4294901760, %v9053_v33  ;;  %6415 = vmatpush3.msra.mxu0 %v8988_v12 }
  0xd3   : > { %6442 = vmatprep.subr.mxu1 %v1572_v50  ;;  %v1487_v21 = vsub.f32 %v9000_v60, %v13013_v34  ;;  %6416 = vmatprep.subr.mxu0 %v9048_v62  ;;  %v13014_v19 = vand.u32 4294901760, %v9069_v27  ;;  %v1600_v29 = vand.u32 4294901760, %v1599_v40 }
  0xd4   : > { %6443 = vmatpush3.msra.mxu1 %v1460_v32  ;;  %v1379_v1 = vsub.f32 %v9053_v33, %v13012_v15  ;;  %v1371_v24 = vand.u32 4294901760, %v1370_v31  ;;  %v1481_v2 = vand.u32 4294901760, %v1480_v10  ;;  %6417 = vmatpush3.msra.mxu0 %v9040_v57  ;;  %v13016_v31 = vand.u32 4294901760, %v9037_v59 }
  0xd5   : > { %6444 = vmatprep.subr.mxu1 %v1579_v5  ;;  %v1385_v15 = vsub.f32 %v9069_v27, %v13014_v19  ;;  %v13015_v5 = vand.u32 4294901760, %v9073_v56  ;;  %1366 = vmatprep.mubr.f32.mxu0 %v1365_v3  ;;  %v13017_v10 = vand.u32 4294901760, %v9092_v38  ;;  %v1488_v19 = vand.u32 4294901760, %v1487_v21  ;;  %v13020_v21 = vld [vmem:[#allocation7_spill] sm:$0xff]  ;;  %v13021_v3 = vld [vmem:[#allocation9_spill] sm:$0xff] }
  0xd6   : > { %6445 = vmatpush3.msra.mxu1 %v1467_v46  ;;  %v1494_v34 = vsub.f32 %v9037_v59, %v13016_v31  ;;  %v1380_v46 = vand.u32 4294901760, %v1379_v1  ;;  %1372 = vmatmul.mubr.f32.vlgmr.msra.gmra.mxu0 %v1371_v24  ;;  %v13023_v24 = vld [vmem:[#allocation23_spill] sm:$0xff] }
  0xd7   : > { %v1606_v50 = vsub.f32 %v9073_v56, %v13015_v5  ;;  %6446 = vmatprep.subr.mxu1 %v1586_v16  ;;  %v1613_v32 = vsub.f32 %v9092_v38, %v13017_v10  ;;  %v13018_v5 = vand.u32 4294901760, %v9080_v44  ;;  %6462 = vmatprep.subr.mxu0 %v8588_v36  ;;  %v1386_v40 = vand.u32 4294901760, %v1385_v15  ;;  %v13026_v15 = vld [vmem:[#allocation10_spill] sm:$0xff]  ;;  %v13028_v31 = vld [vmem:[#allocation11_spill] sm:$0xff] }
  0xd8   : > { %6447 = vmatpush3.msra.mxu1 %v1474_v63  ;;  %6463 = vmatpush3.msra.mxu0 %v8565_v9  ;;  %v1495_v63 = vand.u32 4294901760, %v1494_v34  ;;  %v13029_v34 = vld [vmem:[#allocation30_spill] sm:$0xff]  ;;  %v13031_v10 = vld [vmem:[#allocation19_spill] sm:$0xff] }
  0xd9   : > { %6448 = vmatprep.subr.mxu1 %v1593_v8  ;;  %v1501_v16 = vsub.f32 %v9080_v44, %v13018_v5  ;;  %v1607_v57 = vand.u32 4294901760, %v1606_v50  ;;  %6464 = vmatprep.subr.mxu0 %v8604_v48  ;;  %v1614_v1 = vand.u32 4294901760, %v1613_v32  ;;  %v13022_v50 = vld [vmem:[#allocation8_spill] sm:$0xff]  ;;  %v13024_v32 = vld [vmem:[#allocation26_spill] sm:$0xff]  ;;  %v13033_v5 = vld [vmem:[#allocation33_spill] sm:$0xff] }
  0xda   : > { %6449 = vmatpush3.msra.mxu1 %v1481_v2  ;;  %1381 = vmatprep.mubr.f32.mxu0 %v1380_v46  ;;  %v13025_v2 = vld [vmem:[#allocation28_spill] sm:$0xff]  ;;  %v13030_v46 = vld [vmem:[#allocation13_spill] sm:$0xff] }
  0xdb   : > { %6450 = vmatprep.subr.mxu1 %v1600_v29  ;;  %6465 = vmatpush3.msra.mxu0 %v8597_v42  ;;  %v1502_v8 = vand.u32 4294901760, %v1501_v16  ;;  %v13027_v29 = vld [vmem:[#allocation31_spill] sm:$0xff] }
  0xdc   : > { %6451 = vmatpush3.msra.mxu1 %v1488_v19  ;;  %1387 = vmatmul.mubr.f32.gmra.mxu0 %v1386_v40  ;;  %v13032_v19 = vld [vmem:[#allocation12_spill] sm:$0xff]  ;;  %v13034_v16 = vld [vmem:[#allocation15_spill] sm:$0xff]  ;;  %v13035_v40 = vld [vmem:[#allocation14_spill] sm:$0xff] }
  0xdd   : > { %6452 = vmatprep.subr.mxu1 %v1607_v57  ;;  %6466 = vmatprep.subr.mxu0 %v8617_v58  ;;  %v13019_v57 = vld [vmem:[#allocation18_spill] sm:$0xff] }
  0xde   : > { %6453 = vmatpush3.msra.mxu1 %v1495_v63  ;;  %6467 = vmatpush3.msra.mxu0 %v8623_v39  ;;  %v13036_v63 = vld [vmem:[#allocation16_spill] sm:$0xff] }
  0xdf   : > { %6454 = vmatprep.subr.mxu1 %v1614_v1  ;;  %6468 = vmatprep.subr.mxu0 %v8665_v28  ;;  %v13037_v1 = vld [vmem:[#allocation17_spill] sm:$0xff] }
  0xe0   : > { %6455 = vmatpush3.msra.mxu1 %v1502_v8  ;;  %6469 = vmatpush3.msra.mxu0 %v8659_v23  ;;  %v13038_v8 = vld [vmem:[#allocation22_spill] sm:$0xff] }
  0xe1   : > { %1619 = vmatmul.mubr.f32.vlgmr.msra.gmra.mxu1 %v8966_v13  ;;  %6470 = vmatprep.subr.mxu0 %v8708_v25  ;;  %v13041_v13 = vld [vmem:[#allocation25_spill] sm:$0xff] }
  0xe2   : > { %6500 = vmatprep.subr.mxu1 %v8550_v47  ;;  %6471 = vmatpush3.msra.mxu0 %v8682_v35 }
  0xe3   : > { %6501 = vmatpush3.msra.mxu1 %v8536_v61  ;;  %6472 = vmatprep.subr.mxu0 %v8739_v30 }
  0xe4   : > { %6502 = vmatprep.subr.mxu1 %v8567_v41  ;;  %1624 = vmatprep.mubr.f32.mxu1 %v9008_v11  ;;  %v13040_v11 = vld [vmem:[#allocation27_spill] sm:$0xff] }
  0xe5   : > { %6473 = vmatpush3.msra.mxu0 %v13019_v57  ;;  %6503 = vmatpush3.msra.mxu1 %v13020_v21 }
  0xe6   : > { %1626 = vmatmul.mubr.f32.gmra.mxu1 %v9033_v4  ;;  %6474 = vmatprep.subr.mxu0 %v13021_v3  ;;  %v13039_v4 = vld [vmem:[#allocation24_spill] sm:$0xff] }
  0xe7   : > { %6504 = vmatprep.subr.mxu1 %v13022_v50  ;;  %6475 = vmatpush3.msra.mxu0 %v13023_v24 }
  0xe8   : > { %6505 = vmatpush3.msra.mxu1 %v13024_v32  ;;  %6476 = vmatprep.subr.mxu0 %v13025_v2 }
  0xe9   : > { %6506 = vmatprep.subr.mxu1 %v13026_v15  ;;  %6477 = vmatpush3.msra.mxu0 %v13027_v29 }
  0xea   : > { %6507 = vmatpush3.msra.mxu1 %v13028_v31  ;;  %6478 = vmatprep.subr.mxu0 %v13029_v34 }
  0xeb   : > { %6508 = vmatprep.subr.mxu1 %v13030_v46  ;;  %6479 = vmatpush3.msra.mxu0 %v13031_v10 }
  0xec   : > { %6509 = vmatpush3.msra.mxu1 %v13032_v19  ;;  %6480 = vmatprep.subr.mxu0 %v13033_v5 }
  0xed   : > { %6510 = vmatprep.subr.mxu1 %v13034_v16  ;;  %6481 = vmatpush3.msra.mxu0 %v8874_v18 }
  0xee   : > { %6511 = vmatpush3.msra.mxu1 %v13035_v40  ;;  %6482 = vmatprep.subr.mxu0 %v8964_v55 }
  0xef   : > { %6512 = vmatprep.subr.mxu1 %v13036_v63  ;;  %6483 = vmatpush3.msra.mxu0 %v8891_v22 }
  0xf0   : > { %6513 = vmatpush3.msra.mxu1 %v13037_v1  ;;  %6484 = vmatprep.subr.mxu0 %v8992_v51 }
  0xf1   : > { %6514 = vmatprep.subr.mxu1 %v13038_v8  ;;  %6485 = vmatpush3.msra.mxu0 %v8922_v7  ;;  %v13043_v7 = vld [vmem:[#allocation29_spill] sm:$0xff] }
  0xf2   : > { %6515 = vmatpush3.msra.mxu1 %v13039_v4  ;;  %6486 = vmatprep.subr.mxu0 %v9023_v17 }
  0xf3   : > { %6516 = vmatprep.subr.mxu1 %v13040_v11  ;;  %6487 = vmatpush3.msra.mxu0 %v8959_v14 }
  0xf4   : > { %6517 = vmatpush3.msra.mxu1 %v13041_v13  ;;  %6488 = vmatprep.subr.mxu0 %v9043_v6 }
  0xf5   : > { %6518 = vmatprep.subr.mxu1 %v8817_v20  ;;  %6489 = vmatpush3.msra.mxu0 %v9000_v60 }
  0xf6   : > { %6519 = vmatpush3.msra.mxu1 %v13042_v0  ;;  %6490 = vmatprep.subr.mxu0 %v9073_v56  ;;  %v13044_v0 = vld [vmem:[#allocation35_spill] sm:$0xff] }
  0xf7   : > { %6520 = vmatprep.subr.mxu1 %v13043_v7  ;;  %6491 = vmatpush3.msra.mxu0 %v9037_v59  ;;  %v13045_v7 = vand.u32 4294901760, %v8588_v36  ;;  %v13050_v36 = vand.u32 4294901760, %v8617_v58  ;;  %v13056_v58 = vand.u32 4294901760, %v9019_v52 }
  0xf8   : > { %6521 = vmatpush3.msra.mxu1 %v8832_v53  ;;  %6492 = vmatprep.subr.mxu0 %v9092_v38  ;;  %v13046_v53 = vand.u32 4294901760, %v8565_v9  ;;  %v13047_v38 = vld [vmem:[#allocation38_spill] sm:$0xff]  ;;  %v13051_v9 = vand.u32 4294901760, %v8623_v39  ;;  %v13058_v39 = vand.u32 4294901760, %v8682_v35  ;;  %v13063_v35 = vand.u32 4294901760, %v13021_v3 }
  0xf9   : > { %6522 = vmatprep.subr.mxu1 %v8894_v54  ;;  %6493 = vmatpush3.msra.mxu0 %v9080_v44  ;;  %v13048_v44 = vand.u32 4294901760, %v8604_v48  ;;  %v13052_v48 = vand.u32 4294901760, %v8665_v28  ;;  %v13059_v28 = vand.u32 4294901760, %v8739_v30  ;;  %v13065_v30 = vand.u32 4294901760, %v13025_v2 }
  0xfa   : > { %1761 = vmatprep.mubr.f32.mxu0 %v9006_v49  ;;  %6523 = vmatpush3.msra.mxu1 %v8866_v43  ;;  %v13049_v43 = vand.u32 4294901760, %v8597_v42  ;;  %v13055_v42 = vand.u32 4294901760, %v8659_v23  ;;  %v13060_v23 = vand.u32 4294901760, %v9053_v33  ;;  %v13069_v3 = vand.u32 4294901760, %v13033_v5 }
  0xfb   : > { %1764 = vmatmul.mubr.f32.vlgmr.msra.gmra.mxu0 %v9019_v52  ;;  %6524 = vmatprep.subr.mxu1 %v13044_v0  ;;  %v13061_v52 = vand.u32 4294901760, %v13019_v57  ;;  %v13068_v57 = vand.u32 4294901760, %v13031_v10  ;;  %v13071_v2 = vand.u32 4294901760, %v8964_v55  ;;  %v343_v10 = vld [vmem:[%s12360_s1 + $0x2e0] sm:$0xff] }
  0xfc   : > { %6538 = vmatprep.subr.mxu0 %v13045_v7  ;;  %6525 = vmatpush3.msra.mxu1 %v8896_v37  ;;  %v13057_v7 = vand.u32 4294901760, %v8708_v25  ;;  %v330_v25 = vld [vmem:[%s12360_s1 + $0x278] sm:$0xff] }
  0xfd   : > { %6539 = vmatpush3.msra.mxu0 %v13046_v53  ;;  %6526 = vmatprep.subr.mxu1 %v13047_v38  ;;  %v13053_v53 = vld [vmem:[#allocation41_spill] sm:$0xff] }
  0xfe   : > { %6540 = vmatprep.subr.mxu0 %v13048_v44  ;;  %1770 = vmatprep.mubr.f32.mxu0 %v9053_v33  ;;  %v13067_v44 = vand.u32 4294901760, %v13029_v34  ;;  %v13073_v34 = vand.u32 4294901760, %v8992_v51  ;;  %v327_v51 = vld [vmem:[%s12360_s1 + $0x260] sm:$0xff] }
  0xff   : > { %6527 = vmatpush3.msra.mxu1 %v8943_v45  ;;  %6541 = vmatpush3.msra.mxu0 %v13049_v43  ;;  %v13054_v43 = vand.u32 4294901760, %v9006_v49  ;;  %v13066_v49 = vand.u32 4294901760, %v13027_v29 }
 0x100   : > { %1773 = vmatmul.mubr.f32.gmra.mxu0 %v9069_v27  ;;  %6528 = vmatprep.subr.mxu1 %v8986_v26 }
 0x101   : > { %6542 = vmatprep.subr.mxu0 %v13050_v36  ;;  %6529 = vmatpush3.msra.mxu1 %v8988_v12  ;;  %v13079_v36 = vand.u32 4294901760, %v8959_v14 }
 0x102   : > { %6543 = vmatpush3.msra.mxu0 %v13051_v9  ;;  %6530 = vmatprep.subr.mxu1 %v9048_v62 }
 0x103   : > { %6544 = vmatprep.subr.mxu0 %v13052_v48  ;;  %6531 = vmatpush3.msra.mxu1 %v13053_v53  ;;  %v341_v48 = vld [vmem:[%s12360_s1 + $0x2d0] sm:$0xff] }
 0x104   : > { %1877 = vmatprep.mubr.f32.mxu1 %v13054_v43  ;;  %6545 = vmatpush3.msra.mxu0 %v13055_v42  ;;  %v13082_v43 = vand.u32 4294901760, %v9043_v6  ;;  %v325_v42 = vld [vmem:[%s12360_s1 + $0x250] sm:$0xff] }
 0x105   : > { %1881 = vmatmul.mubr.f32.vlgmr.msra.gmra.mxu1 %v13056_v58  ;;  %6546 = vmatprep.subr.mxu0 %v13057_v7  ;;  %v13084_v58 = vand.u32 4294901760, %v9000_v60  ;;  %v340_v7 = vld [vmem:[%s12360_s1 + $0x2c8] sm:$0xff] }
 0x106   : > { %6576 = vmatprep.subr.mxu1 %v8550_v47  ;;  %6547 = vmatpush3.msra.mxu0 %v13058_v39  ;;  %v13062_v47 = vand.u32 4294901760, %v9069_v27  ;;  %v9270_v27 = vand.u32 4294901760, %v330_v25 }
 0x107   : > { %6577 = vmatpush3.msra.mxu1 %v8536_v61  ;;  %6548 = vmatprep.subr.mxu0 %v13059_v28  ;;  %v346_v61 = vld [vmem:[%s12360_s1 + $0x2f8] sm:$0xff]  ;;  %v13086_v28 = vld [vmem:[#allocation32_spill] sm:$0xff] }
 0x108   : > { %6578 = vmatprep.subr.mxu1 %v8567_v41  ;;  %1888 = vmatprep.mubr.f32.mxu1 %v13060_v23  ;;  %v13064_v41 = vand.u32 4294901760, %v13023_v24  ;;  %v9265_v33 = vand.u32 4294901760, %v346_v61  ;;  %v329_v24 = vld [vmem:[%s12360_s1 + $0x270] sm:$0xff] }
 0x109   : > { %6549 = vmatpush3.msra.mxu0 %v13061_v52  ;;  %6579 = vmatpush3.msra.mxu1 %v13020_v21  ;;  %v345_v21 = vld [vmem:[%s12360_s1 + $0x2f0] sm:$0xff]  ;;  %v9307_v55 = vand.u32 4294901760, %v329_v24  ;;  %v9384_v52 = vand.u32 4294901760, %v341_v48 }
 0x10a   : > { %1892 = vmatmul.mubr.f32.gmra.mxu1 %v13062_v47  ;;  %6550 = vmatprep.subr.mxu0 %v13063_v35  ;;  %v9296_v29 = vand.u32 4294901760, %v345_v21  ;;  %v324_v35 = vld [vmem:[%s12360_s1 + $0x248] sm:$0xff] }
 0x10b   : > { %6580 = vmatprep.subr.mxu1 %v13022_v50  ;;  %6551 = vmatpush3.msra.mxu0 %v13064_v41  ;;  %v13070_v50 = vand.u32 4294901760, %v8874_v18  ;;  %v344_v18 = vld [vmem:[%s12360_s1 + $0x2e8] sm:$0xff]  ;;  %13074 = vst [vmem:[#allocation18_spill] sm:$0xff] %v9307_v55  ;;  %v9351_v14 = vsub.f32 %v329_v24, %v9307_v55  ;;  %13089 = vst [vmem:[#allocation10_spill] sm:$0xff] %v9384_v52  ;;  %v13097_v24 = vld [vmem:[#allocation42_spill] sm:$0xff] }
 0x10c   : > { %6581 = vmatpush3.msra.mxu1 %v13024_v32  ;;  %6552 = vmatprep.subr.mxu0 %v13065_v30  ;;  %v9288_v32 = vsub.f32 %v346_v61, %v9265_v33  ;;  %v9318_v5 = vand.u32 4294901760, %v344_v18  ;;  %v13090_v61 = vld [vmem:[#allocation29_spill] sm:$0xff] }
 0x10d   : > { %6582 = vmatprep.subr.mxu1 %v13026_v15  ;;  %6553 = vmatpush3.msra.mxu0 %v13066_v49  ;;  %v9294_v15 = vsub.f32 %v330_v25, %v9270_v27  ;;  %v9396_v25 = vand.u32 4294901760, %v325_v42  ;;  %v13093_v49 = vld [vmem:[#allocation20_spill] sm:$0xff] }
 0x10e   : > { %6583 = vmatpush3.msra.mxu1 %v13028_v31  ;;  %6554 = vmatprep.subr.mxu0 %v13067_v44  ;;  %v13072_v31 = vand.u32 4294901760, %v8891_v22  ;;  %13077 = vst [vmem:[#allocation7_spill] sm:$0xff] %v9318_v5  ;;  %v9372_v39 = vsub.f32 %v344_v18, %v9318_v5  ;;  %v13094_v44 = vld [vmem:[#allocation43_spill] sm:$0xff] }
 0x10f   : > { %6584 = vmatprep.subr.mxu1 %v13030_v46  ;;  %6555 = vmatpush3.msra.mxu0 %v13068_v57  ;;  %v328_v46 = vld [vmem:[%s12360_s1 + $0x268] sm:$0xff]  ;;  %13092 = vst [vmem:[#allocation31_spill] sm:$0xff] %v9396_v25  ;;  %v13095_v57 = vand.u32 4294901760, %v13094_v44 }
 0x110   : > { %6585 = vmatpush3.msra.mxu1 %v13032_v19  ;;  %6556 = vmatprep.subr.mxu0 %v13069_v3  ;;  %v13075_v19 = vld [vmem:[#allocation34_spill] sm:$0xff]  ;;  %v9337_v9 = vand.u32 4294901760, %v328_v46  ;;  %v12519_v3 = vand.u32 4294901760, %v9351_v14 }
 0x111   : > { %6586 = vmatprep.subr.mxu1 %v13034_v16  ;;  %6557 = vmatpush3.msra.mxu0 %v13070_v50  ;;  %v13076_v22 = vand.u32 4294901760, %v13075_v19  ;;  %v12523_v16 = vand.u32 4294901760, %v9288_v32  ;;  %v339_v50 = vld [vmem:[%s12360_s1 + $0x2c0] sm:$0xff]  ;;  %v13100_v19 = vld [vmem:[#allocation36_spill] sm:$0xff] }
 0x112   : > { %6587 = vmatpush3.msra.mxu1 %v13035_v40  ;;  %6558 = vmatprep.subr.mxu0 %v13071_v2  ;;  %v13078_v40 = vand.u32 4294901760, %v9023_v17  ;;  %13080 = vst [vmem:[#allocation9_spill] sm:$0xff] %v9337_v9  ;;  %v342_v17 = vld [vmem:[%s12360_s1 + $0x2d8] sm:$0xff]  ;;  %v9394_v41 = vsub.f32 %v328_v46, %v9337_v9  ;;  %v13098_v2 = vand.u32 4294901760, %v13097_v24  ;;  %v9421_v46 = vand.u32 4294901760, %v324_v35 }
 0x113   : > { %6588 = vmatprep.subr.mxu1 %v13036_v63  ;;  %6559 = vmatpush3.msra.mxu0 %v13072_v31  ;;  %v326_v63 = vld [vmem:[%s12360_s1 + $0x258] sm:$0xff]  ;;  %v9377_v60 = vand.u32 4294901760, %v342_v17 }
 0x114   : > { %6589 = vmatpush3.msra.mxu1 %v13037_v1  ;;  %6560 = vmatprep.subr.mxu0 %v13073_v34  ;;  %v12521_v1 = vand.u32 4294901760, %v9294_v15  ;;  %v9366_v6 = vand.u32 4294901760, %v326_v63  ;;  %v12518_v34 = vand.u32 4294901760, %v9372_v39  ;;  %13099 = vst [vmem:[#allocation30_spill] sm:$0xff] %v9421_v46 }
 0x115   : > { %6590 = vmatprep.subr.mxu1 %v13038_v8  ;;  %6561 = vmatpush3.msra.mxu0 %v13076_v22  ;;  %v9332_v8 = vsub.f32 %v345_v21, %v9296_v29  ;;  %13088 = vst [vmem:[#allocation28_spill] sm:$0xff] %v9377_v60  ;;  %v13101_v22 = vld [vmem:[#allocation21_spill] sm:$0xff] }
 0x116   : > { %6591 = vmatpush3.msra.mxu1 %v13039_v4  ;;  %6562 = vmatprep.subr.mxu0 %v13078_v40  ;;  %v9339_v4 = vand.u32 4294901760, %v343_v10  ;;  %13085 = vst [vmem:[#allocation26_spill] sm:$0xff] %v9366_v6  ;;  %v9382_v23 = vsub.f32 %v9294_v15, %v12521_v1  ;;  %v9418_v31 = vsub.f32 %v326_v63, %v9366_v6  ;;  %v338_v40 = vld [vmem:[%s12360_s1 + $0x2b8] sm:$0xff]  ;;  %v13112_v1 = vld [vmem:[#allocation40_spill] sm:$0xff] }
 0x117   : > { %6592 = vmatprep.subr.mxu1 %v13040_v11  ;;  %6563 = vmatpush3.msra.mxu0 %v13079_v36  ;;  %v9353_v11 = vand.u32 4294901760, %v327_v51  ;;  %v12520_v47 = vand.u32 4294901760, %v9332_v8  ;;  %v9438_v63 = vsub.f32 %v342_v17, %v9377_v60  ;;  %v9441_v36 = vsub.f32 %v341_v48, %v9384_v52  ;;  %v322_v17 = vld [vmem:[%s12360_s1 + $0x238] sm:$0xff] }
 0x118   : > { %13081 = vst [vmem:[#allocation8_spill] sm:$0xff] %v9339_v4  ;;  %6593 = vmatpush3.msra.mxu1 %v13041_v13  ;;  %6564 = vmatprep.subr.mxu0 %v13082_v43  ;;  %v9364_v13 = vsub.f32 %v9288_v32, %v12523_v16  ;;  %v9399_v30 = vsub.f32 %v343_v10, %v9339_v4  ;;  %v323_v10 = vld [vmem:[%s12360_s1 + $0x240] sm:$0xff]  ;;  %v13102_v43 = vld [vmem:[#allocation37_spill] sm:$0xff]  ;;  %v9478_v44 = vand.u32 4294901760, %v338_v40 }
 0x119   : > { %13083 = vst [vmem:[#allocation23_spill] sm:$0xff] %v9353_v11  ;;  %6594 = vmatprep.subr.mxu1 %v8817_v20  ;;  %6565 = vmatpush3.msra.mxu0 %v13084_v58  ;;  %v13087_v20 = vand.u32 4294901760, %v9073_v56  ;;  %v13091_v56 = vand.u32 4294901760, %v9037_v59  ;;  %v9405_v21 = vsub.f32 %v327_v51, %v9353_v11  ;;  %v9408_v59 = vand.u32 4294901760, %v340_v7 }
 0x11a   : > { %6595 = vmatpush3.msra.mxu1 %v13086_v28  ;;  %2058 = vmatprep.mubr.f32.mxu0 %v13100_v19  ;;  %v9432_v51 = vsub.f32 %v9332_v8, %v12520_v47  ;;  %v9446_v58 = vsub.f32 %v325_v42, %v9396_v25  ;;  %v12522_v28 = vand.u32 4294901760, %v9394_v41  ;;  %v9462_v48 = vand.u32 4294901760, %v323_v10  ;;  %13108 = vst [vmem:[#allocation14_spill] sm:$0xff] %v9478_v44 }
 0x11b   : > { %6566 = vmatprep.subr.mxu0 %v13087_v20  ;;  %6596 = vmatprep.subr.mxu1 %v13090_v61  ;;  %13096 = vst [vmem:[#allocation11_spill] sm:$0xff] %v9408_v59  ;;  %v9449_v20 = vand.u32 4294901760, %v339_v50  ;;  %v12524_v61 = vand.u32 4294901760, %v9399_v30  ;;  %v12525_v42 = vand.u32 4294901760, %v9405_v21 }
 0x11c   : > { %6567 = vmatpush3.msra.mxu0 %v13091_v56  ;;  %6597 = vmatpush3.msra.mxu1 %v13093_v49  ;;  %13103 = vst [vmem:[#allocation13_spill] sm:$0xff] %v9446_v58  ;;  %13105 = vst [vmem:[#allocation12_spill] sm:$0xff] %v9462_v48  ;;  %v9466_v56 = vsub.f32 %v340_v7, %v9408_v59  ;;  %v9476_v49 = vsub.f32 %v324_v35, %v9421_v46  ;;  %v13109_v7 = vld [vmem:[#allocation39_spill] sm:$0xff]  ;;  %v12529_v47 = vand.u32 4294901760, %v9446_v58 }
 0x11d   : > { %6568 = vmatprep.subr.mxu0 %v13095_v57  ;;  %6598 = vmatprep.subr.mxu1 %v8894_v54  ;;  %13104 = vst [vmem:[#allocation19_spill] sm:$0xff] %v9449_v20  ;;  %v12526_v57 = vand.u32 4294901760, %v9418_v31  ;;  %v9493_v35 = vsub.f32 %v9394_v41, %v12522_v28  ;;  %v9511_v16 = vsub.f32 %v323_v10, %v9462_v48  ;;  %v321_v10 = vld [vmem:[%s12360_s1 + $0x230] sm:$0xff] }
 0x11e   : > { %6569 = vmatpush3.msra.mxu0 %v13098_v2  ;;  %6599 = vmatpush3.msra.mxu1 %v13101_v22  ;;  %13106 = vst [vmem:[#allocation33_spill] sm:$0xff] %v9466_v56  ;;  %13107 = vst [vmem:[#allocation15_spill] sm:$0xff] %v9476_v49  ;;  %v9485_v2 = vand.u32 4294901760, %v322_v17  ;;  %v12528_v22 = vand.u32 4294901760, %v9441_v36  ;;  %v12532_v24 = vand.u32 4294901760, %v9466_v56 }
 0x11f   : > { %2060 = vmatmul.mubr.f32.vlgmr.msra.gmra.mxu0 %v13102_v43  ;;  %6600 = vmatprep.subr.mxu1 %v13044_v0  ;;  %v9460_v0 = vsub.f32 %v9351_v14, %v12519_v3  ;;  %v337_v3 = vld [vmem:[%s12360_s1 + $0x2b0] sm:$0xff]  ;;  %13113 = vst [vmem:[#allocation22_spill] sm:$0xff] %v9511_v16 }
 0x120   : > { %6614 = vmatprep.subr.mxu0 %v9265_v33  ;;  %6601 = vmatpush3.msra.mxu1 %v8896_v37  ;;  %v9473_v37 = vsub.f32 %v9372_v39, %v12518_v34  ;;  %13110 = vst [vmem:[#allocation16_spill] sm:$0xff] %v9485_v2  ;;  %v9498_v34 = vsub.f32 %v9399_v30, %v12524_v61 }
 0x121   : > { %6615 = vmatpush3.msra.mxu0 %v9270_v27  ;;  %6602 = vmatprep.subr.mxu1 %v13047_v38  ;;  %v12527_v38 = vand.u32 4294901760, %v9438_v63  ;;  %v2322_v28 = vand.u32 4294901760, %v9460_v0  ;;  %v9516_v61 = vsub.f32 %v9405_v21, %v12525_v42  ;;  %v9532_v42 = vsub.f32 %v338_v40, %v9478_v44  ;;  %v320_v40 = vld [vmem:[%s12360_s1 + $0x228] sm:$0xff] }
 0x122   : > { %6616 = vmatprep.subr.mxu0 %v9296_v29  ;;  %2065 = vmatprep.mubr.f32.mxu0 %v13109_v7  ;;  %v9549_v54 = vsub.f32 %v9441_v36, %v12528_v22  ;;  %v9567_v0 = vand.u32 4294901760, %v321_v10  ;;  %v13119_v22 = vand.u32 4294901760, %v9476_v49 }
 0x123   : > { %6603 = vmatpush3.msra.mxu1 %v8943_v45  ;;  %6617 = vmatpush3.msra.mxu0 %v9307_v55  ;;  %v9505_v45 = vsub.f32 %v339_v50, %v9449_v20  ;;  %13114 = vst [vmem:[#allocation24_spill] sm:$0xff] %v9532_v42  ;;  %v9544_v50 = vand.u32 4294901760, %v337_v3  ;;  %v13136_v55 = vand.u32 4294901760, %v9516_v61 }
 0x124   : > { %2067 = vmatmul.mubr.f32.gmra.mxu0 %v13112_v1  ;;  %6604 = vmatprep.subr.mxu1 %v8986_v26  ;;  %v9525_v26 = vsub.f32 %v9418_v31, %v12526_v57  ;;  %v9542_v57 = vsub.f32 %v322_v17, %v9485_v2  ;;  %13117 = vst [vmem:[#allocation35_spill] sm:$0xff] %v9567_v0  ;;  %v9584_v17 = vand.u32 4294901760, %v320_v40 }
 0x125   : > { %13111 = vst [vmem:[#allocation17_spill] sm:$0xff] %v9505_v45  ;;  %6618 = vmatprep.subr.mxu0 %v9318_v5  ;;  %6605 = vmatpush3.msra.mxu1 %v8988_v12  ;;  %v9539_v12 = vsub.f32 %v9438_v63, %v12527_v38  ;;  %13116 = vst [vmem:[#allocation25_spill] sm:$0xff] %v9544_v50  ;;  %v9561_v38 = vsub.f32 %v9446_v58, %v12529_v47  ;;  %v319_v47 = vld [vmem:[%s12360_s1 + $0x220] sm:$0xff] }
 0x126   : > { %6619 = vmatpush3.msra.mxu0 %v9337_v9  ;;  %6606 = vmatprep.subr.mxu1 %v9048_v62  ;;  %13115 = vst [vmem:[#allocation27_spill] sm:$0xff] %v9542_v57  ;;  %v2329_v62 = vand.u32 4294901760, %v9493_v35  ;;  %v9575_v35 = vsub.f32 %v9466_v56, %v12532_v24  ;;  %13118 = vst [vmem:[#allocation38_spill] sm:$0xff] %v9584_v17  ;;  %v335_v24 = vld [vmem:[%s12360_s1 + $0x2a0] sm:$0xff]  ;;  %v9605_v9 = vsub.f32 %v337_v3, %v9544_v50  ;;  %v334_v3 = vld [vmem:[%s12360_s1 + $0x298] sm:$0xff] }
 0x127   : > { %6620 = vmatprep.subr.mxu0 %v9339_v4  ;;  %6607 = vmatpush3.msra.mxu1 %v13053_v53  ;;  %v336_v53 = vld [vmem:[%s12360_s1 + $0x2a8] sm:$0xff] }
 0x128   : > { %2169 = vmatprep.mubr.f32.mxu1 %v13100_v19  ;;  %6621 = vmatpush3.msra.mxu0 %v9353_v11  ;;  %v9589_v11 = vsub.f32 %v9476_v49, %v13119_v22  ;;  %v318_v22 = vld [vmem:[%s12360_s1 + $0x218] sm:$0xff]  ;;  %13121 = vst [vmem:[#allocation41_spill] sm:$0xff] %v9605_v9  ;;  %v13122_v19 = vand.u32 4294901760, %v9382_v23  ;;  %v244_v4 = vld [vmem:[%s7855_s19 + $0x28] sm:$0xff]  ;;  %v13126_v23 = vand.u32 4294901760, %v9432_v51  ;;  %v243_v49 = vld [vmem:[%s7855_s19 + $0x20] sm:$0xff]  ;;  %v9641_v51 = vsub.f32 %v320_v40, %v9584_v17 }
 0x129   : > { %2171 = vmatmul.mubr.f32.vlgmr.msra.gmra.mxu1 %v13102_v43  ;;  %6622 = vmatprep.subr.mxu0 %v9377_v60  ;;  %v13120_v43 = vand.u32 4294901760, %v9364_v13  ;;  %v13124_v60 = vand.u32 4294901760, %v9505_v45  ;;  %v9649_v13 = vand.u32 4294901760, %v318_v22  ;;  %v9659_v40 = vand.u32 4294901760, %v334_v3 }
 0x12a   : > { %6623 = vmatpush3.msra.mxu0 %v9366_v6  ;;  %v9618_v6 = vand.u32 4294901760, %v319_v47  ;;  %2176 = vmatprep.mubr.f32.mxu1 %v13109_v7 }
 0x12b   : > { %6652 = vmatprep.subr.mxu1 %v13120_v43  ;;  %6624 = vmatprep.subr.mxu0 %v9384_v52  ;;  %v9611_v43 = vand.u32 4294901760, %v336_v53  ;;  %v9616_v18 = vsub.f32 %v9505_v45, %v13124_v60  ;;  %v9631_v52 = vand.u32 4294901760, %v335_v24  ;;  %v13127_v60 = vand.u32 4294901760, %v9511_v16  ;;  %13129 = vst [vmem:[#allocation29_spill] sm:$0xff] %v9659_v40 }
 0x12c   : > { %6653 = vmatpush3.msra.mxu1 %v13122_v19  ;;  %13125 = vst [vmem:[#allocation32_spill] sm:$0xff] %v9618_v6  ;;  %v9628_v19 = vsub.f32 %v321_v10, %v9567_v0  ;;  %6625 = vmatpush3.msra.mxu0 %v9396_v25  ;;  %v13128_v10 = vand.u32 4294901760, %v9532_v42  ;;  %v9679_v5 = vsub.f32 %v319_v47, %v9618_v6  ;;  %v9684_v25 = vand.u32 4294901760, %v243_v49  ;;  %v316_v47 = vld [vmem:[%s12360_s1 + $0x208] sm:$0xff] }
 0x12d   : > { %13123 = vst [vmem:[#allocation34_spill] sm:$0xff] %v9611_v43  ;;  %6654 = vmatprep.subr.mxu1 %v13126_v23  ;;  %v9636_v45 = vsub.f32 %v9511_v16, %v13127_v60  ;;  %v333_v60 = vld [vmem:[%s12360_s1 + $0x290] sm:$0xff]  ;;  %2178 = vmatmul.mubr.f32.gmra.mxu1 %v13112_v1  ;;  %v9672_v16 = vand.u32 4294901760, %v244_v4  ;;  %v13132_v1 = vand.u32 4294901760, %v9473_v37  ;;  %v9708_v56 = vsub.f32 %v335_v24, %v9631_v52  ;;  %v315_v24 = vld [vmem:[%s12360_s1 + $0x200] sm:$0xff] }
 0x12e   : > { %6655 = vmatpush3.msra.mxu1 %v2322_v28  ;;  %v9647_v23 = vsub.f32 %v9532_v42, %v13128_v10  ;;  %v317_v28 = vld [vmem:[%s12360_s1 + $0x210] sm:$0xff]  ;;  %6626 = vmatprep.subr.mxu0 %v9408_v59  ;;  %v13130_v10 = vand.u32 4294901760, %v9542_v57  ;;  %v9670_v42 = vld [vmem:[%s12360_s1 + $0x288] sm:$0xff]  ;;  %13133 = vst [vmem:[#allocation43_spill] sm:$0xff] %v9684_v25 }
 0x12f   : > { %13131 = vst [vmem:[#allocation20_spill] sm:$0xff] %v9672_v16  ;;  %6656 = vmatprep.subr.mxu1 %v13132_v1  ;;  %6627 = vmatpush3.msra.mxu0 %v9421_v46  ;;  %v2364_v37 = vand.u32 4294901760, %v9636_v45  ;;  %v9689_v1 = vand.u32 4294901760, %v333_v60  ;;  %v9691_v46 = vand.u32 4294901760, %v317_v28  ;;  %v9705_v45 = vand.u32 4294901760, %v9670_v42  ;;  %v249_v59 = vld [vmem:[%s7855_s19 + $0x50] sm:$0xff] }
 0x130   : > { %v9664_v7 = vsub.f32 %v9542_v57, %v13130_v10  ;;  %v9682_v10 = vsub.f32 %v336_v53, %v9611_v43  ;;  %v250_v57 = vld [vmem:[%s7855_s19 + $0x58] sm:$0xff]  ;;  %6657 = vmatpush3.msra.mxu1 %v2329_v62  ;;  %6628 = vmatprep.subr.mxu0 %v9449_v20  ;;  %v13135_v53 = vand.u32 4294901760, %v9498_v34  ;;  %v2483_v62 = vand.u32 4294901760, %v9647_v23 }
 0x131   : > { %13134 = vst [vmem:[#allocation42_spill] sm:$0xff] %v9689_v1  ;;  %6629 = vmatpush3.msra.mxu0 %v9462_v48  ;;  %v9702_v20 = vsub.f32 %v318_v22, %v9649_v13  ;;  %v331_v22 = vld [vmem:[%s12360_s1 + $0x280] sm:$0xff]  ;;  %v9727_v61 = vsub.f32 %v244_v4, %v9672_v16  ;;  %v9738_v48 = vsub.f32 %v243_v49, %v9684_v25  ;;  %v13140_v4 = vand.u32 4294901760, %v9525_v26 }
 0x132   : > { %6658 = vmatprep.subr.mxu1 %v13135_v53  ;;  %6630 = vmatprep.subr.mxu0 %v9478_v44  ;;  %v2371_v34 = vand.u32 4294901760, %v9664_v7  ;;  %v13137_v53 = vand.u32 4294901760, %v9605_v9  ;;  %v13139_v7 = vand.u32 4294901760, %v9539_v12  ;;  %v9735_v44 = vand.u32 4294901760, %v316_v47 }
 0x133   : > { %6659 = vmatpush3.msra.mxu1 %v13136_v55  ;;  %v9729_v55 = vand.u32 4294901760, %v250_v57  ;;  %6631 = vmatpush3.msra.mxu0 %v9485_v2  ;;  %v9747_v12 = vsub.f32 %v317_v28, %v9691_v46  ;;  %v9753_v58 = vand.u32 4294901760, %v249_v59  ;;  %v13143_v49 = vand.u32 4294901760, %v9549_v54 }
 0x134   : > { %v9718_v23 = vsub.f32 %v9605_v9, %v13137_v53  ;;  %6660 = vmatprep.subr.mxu1 %v13139_v7  ;;  %v9741_v9 = vsub.f32 %v334_v3, %v9659_v40  ;;  %6632 = vmatprep.subr.mxu0 %v9544_v50  ;;  %v13141_v7 = vand.u32 4294901760, %v9628_v19  ;;  %v9758_v26 = vand.u32 4294901760, %v331_v22 }
 0x135   : > { %13138 = vst [vmem:[#allocation36_spill] sm:$0xff] %v9729_v55  ;;  %6661 = vmatpush3.msra.mxu1 %v13140_v4  ;;  %13142 = vst [vmem:[#allocation21_spill] sm:$0xff] %v9753_v58  ;;  %6633 = vmatpush3.msra.mxu0 %v9567_v0  ;;  %v9761_v4 = vand.u32 4294901760, %v315_v24  ;;  %v9764_v28 = vsub.f32 %v333_v60, %v9689_v1  ;;  %v9773_v0 = vsub.f32 %v250_v57, %v9729_v55 }
 0x136   : > { %v2377_v53 = vsub.f32 %v9628_v19, %v13141_v7  ;;  %6662 = vmatprep.subr.mxu1 %v13143_v49  ;;  %v13145_v7 = vand.u32 4294901760, %v9561_v38  ;;  %6634 = vmatprep.subr.mxu0 %v9611_v43  ;;  %v2490_v2 = vand.u32 4294901760, %v9718_v23  ;;  %v13146_v3 = vand.u32 4294901760, %v9575_v35 }
 0x137   : > { %13144 = vst [vmem:[#allocation37_spill] sm:$0xff] %v9761_v4  ;;  %6635 = vmatpush3.msra.mxu0 %v9584_v17  ;;  %v13147_v60 = vand.u32 4294901760, %v9682_v10  ;;  %v13148_v49 = vand.u32 4294901760, %v9589_v11  ;;  %v13149_v57 = vand.u32 4294901760, %v9641_v51  ;;  %v13150_v54 = vand.u32 4294901760, %v9616_v18  ;;  %2535 = vmatprep.mubr.f32.mxu1 %v9672_v16  ;;  %v13190_v16 = vld [vmem:[#allocation35_spill] sm:$0xff] }
 0x138   : > { %6663 = vmatpush3.msra.mxu1 %v13145_v7  ;;  %v9782_v7 = vsub.f32 %v316_v47, %v9735_v44  ;;  %6636 = vmatprep.subr.mxu0 %v9631_v52  ;;  %v9798_v47 = vsub.f32 %v9670_v42, %v9705_v45  ;;  %v2378_v11 = vand.u32 4294901760, %v2377_v53  ;;  %v13153_v42 = vand.u32 4294901760, %v9727_v61 }
 0x139   : > { %6664 = vmatprep.subr.mxu1 %v13146_v3  ;;  %v2496_v38 = vsub.f32 %v9682_v10, %v13147_v60  ;;  %v2384_v35 = vsub.f32 %v9641_v51, %v13149_v57  ;;  %v9794_v60 = vsub.f32 %v249_v59, %v9753_v58  ;;  %6637 = vmatpush3.msra.mxu0 %v9618_v6 }
 0x13a   : > { %6665 = vmatpush3.msra.mxu1 %v13148_v49  ;;  %v13151_v49 = vand.u32 4294901760, %v9708_v56  ;;  %v9807_v57 = vsub.f32 %v315_v24, %v9761_v4  ;;  %6638 = vmatprep.subr.mxu0 %v9659_v40  ;;  %v2282_v18 = vsub.f32 %v9727_v61, %v13153_v42  ;;  %v13157_v40 = vand.u32 4294901760, %v9741_v9 }
 0x13b   : > { %6666 = vmatprep.subr.mxu1 %v13150_v54  ;;  %v13154_v54 = vand.u32 4294901760, %v9679_v5  ;;  %6639 = vmatpush3.msra.mxu0 %v9649_v13  ;;  %v2497_v24 = vand.u32 4294901760, %v2496_v38 }
 0x13c   : > { %v2503_v23 = vsub.f32 %v9708_v56, %v13151_v49  ;;  %13152 = vst [vmem:[#allocation39_spill] sm:$0xff] %v9807_v57  ;;  %6667 = vmatpush3.msra.mxu1 %v2364_v37  ;;  %v9819_v49 = vsub.f32 %v331_v22, %v9758_v26  ;;  %v13156_v37 = vand.u32 4294901760, %v9738_v48  ;;  %v2510_v42 = vsub.f32 %v9741_v9, %v13157_v40 }
 0x13d   : > { %v2391_v53 = vsub.f32 %v9679_v5, %v13154_v54  ;;  %6668 = vmatprep.subr.mxu1 %v2483_v62  ;;  %6640 = vmatprep.subr.mxu0 %v9689_v1  ;;  %v2385_v54 = vand.u32 4294901760, %v2384_v35  ;;  %v13158_v22 = vand.u32 4294901760, %v9702_v20  ;;  %v13159_v40 = vand.u32 4294901760, %v9764_v28 }
 0x13e   : > { %13155 = vst [vmem:[#allocation40_spill] sm:$0xff] %v9819_v49  ;;  %v2288_v59 = vsub.f32 %v9738_v48, %v13156_v37  ;;  %6669 = vmatpush3.msra.mxu1 %v2371_v34  ;;  %6641 = vmatpush3.msra.mxu0 %v9691_v46  ;;  %v2504_v37 = vand.u32 4294901760, %v2503_v23  ;;  %v2283_v35 = vand.u32 4294901760, %v2282_v18  ;;  %v2511_v3 = vand.u32 4294901760, %v2510_v42 }
 0x13f   : > { %v2398_v62 = vsub.f32 %v9702_v20, %v13158_v22  ;;  %6670 = vmatprep.subr.mxu1 %v2490_v2  ;;  %v2517_v6 = vsub.f32 %v9764_v28, %v13159_v40  ;;  %6642 = vmatprep.subr.mxu0 %v9705_v45  ;;  %v2392_v1 = vand.u32 4294901760, %v2391_v53  ;;  %v13160_v22 = vand.u32 4294901760, %v9773_v0 }
 0x140   : > { %6671 = vmatpush3.msra.mxu1 %v2378_v11  ;;  %6643 = vmatpush3.msra.mxu0 %v9735_v44  ;;  %v2289_v23 = vand.u32 4294901760, %v2288_v59  ;;  %v13161_v40 = vand.u32 4294901760, %v9747_v12  ;;  %v13162_v53 = vand.u32 4294901760, %v9794_v60  ;;  %v13164_v42 = vand.u32 4294901760, %v9782_v7 }
 0x141   : > { %v2297_v38 = vsub.f32 %v9773_v0, %v13160_v22  ;;  %6672 = vmatprep.subr.mxu1 %v2497_v24  ;;  %6644 = vmatprep.subr.mxu0 %v9758_v26  ;;  %v2399_v18 = vand.u32 4294901760, %v2398_v62  ;;  %v13163_v24 = vand.u32 4294901760, %v9798_v47  ;;  %v2518_v59 = vand.u32 4294901760, %v2517_v6 }
 0x142   : > { %v2405_v34 = vsub.f32 %v9747_v12, %v13161_v40  ;;  %6673 = vmatpush3.msra.mxu1 %v2385_v54  ;;  %v2303_v22 = vsub.f32 %v9794_v60, %v13162_v53  ;;  %6645 = vmatpush3.msra.mxu0 %v9761_v4  ;;  %v2412_v40 = vsub.f32 %v9782_v7, %v13164_v42  ;;  %v13165_v62 = vand.u32 4294901760, %v9819_v49  ;;  %v13176_v42 = vld [vmem:[#allocation23_spill] sm:$0xff] }
 0x143   : > { %v2524_v2 = vsub.f32 %v9798_v47, %v13163_v24  ;;  %6674 = vmatprep.subr.mxu1 %v2504_v37  ;;  %2284 = vmatprep.mubr.f32.mxu0 %v2283_v35  ;;  %v2298_v54 = vand.u32 4294901760, %v2297_v38  ;;  %v13166_v24 = vand.u32 4294901760, %v9807_v57  ;;  %v13169_v35 = vld [vmem:[#allocation33_spill] sm:$0xff] }
 0x144   : > { %6675 = vmatpush3.msra.mxu1 %v2392_v1  ;;  %v2531_v11 = vsub.f32 %v9819_v49, %v13165_v62  ;;  %2290 = vmatmul.mubr.f32.vlgmr.msra.gmra.mxu0 %v2289_v23  ;;  %v2406_v53 = vand.u32 4294901760, %v2405_v34  ;;  %v2304_v6 = vand.u32 4294901760, %v2303_v22  ;;  %v2413_v1 = vand.u32 4294901760, %v2412_v40  ;;  %v13168_v34 = vld [vmem:[#allocation18_spill] sm:$0xff]  ;;  %v13171_v23 = vld [vmem:[#allocation15_spill] sm:$0xff]  ;;  %v13174_v22 = vld [vmem:[#allocation8_spill] sm:$0xff] }
 0x145   : > { %6676 = vmatprep.subr.mxu1 %v2511_v3  ;;  %v2419_v37 = vsub.f32 %v9807_v57, %v13166_v24  ;;  %6690 = vmatprep.subr.mxu0 %v9288_v32  ;;  %v2525_v4 = vand.u32 4294901760, %v2524_v2  ;;  %v13170_v2 = vld [vmem:[#allocation7_spill] sm:$0xff]  ;;  %v13177_v40 = vld [vmem:[#allocation24_spill] sm:$0xff]  ;;  %v13181_v24 = vld [vmem:[#allocation41_spill] sm:$0xff] }
 0x146   : > { %6677 = vmatpush3.msra.mxu1 %v2399_v18  ;;  %6691 = vmatpush3.msra.mxu0 %v9294_v15  ;;  %v2532_v38 = vand.u32 4294901760, %v2531_v11  ;;  %v13172_v11 = vld [vmem:[#allocation9_spill] sm:$0xff]  ;;  %v13179_v62 = vld [vmem:[#allocation27_spill] sm:$0xff] }
 0x147   : > { %6678 = vmatprep.subr.mxu1 %v2518_v59  ;;  %6692 = vmatprep.subr.mxu0 %v9332_v8  ;;  %v2420_v3 = vand.u32 4294901760, %v2419_v37  ;;  %v13173_v18 = vld [vmem:[#allocation17_spill] sm:$0xff]  ;;  %v13175_v59 = vld [vmem:[#allocation22_spill] sm:$0xff] }
 0x148   : > { %2299 = vmatprep.mubr.f32.mxu0 %v2298_v54  ;;  %6679 = vmatpush3.msra.mxu1 %v2406_v53  ;;  %v13178_v54 = vld [vmem:[#allocation28_spill] sm:$0xff]  ;;  %v13180_v53 = vld [vmem:[#allocation26_spill] sm:$0xff] }
 0x149   : > { %6693 = vmatpush3.msra.mxu0 %v9351_v14  ;;  %6680 = vmatprep.subr.mxu1 %v2525_v4  ;;  %v13167_v4 = vld [vmem:[#allocation13_spill] sm:$0xff]  ;;  %v13182_v37 = vld [vmem:[#allocation10_spill] sm:$0xff] }
 0x14a   : > { %2305 = vmatmul.mubr.f32.gmra.mxu0 %v2304_v6  ;;  %6694 = vmatprep.subr.mxu0 %v9372_v39  ;;  %v13183_v6 = vld [vmem:[#allocation31_spill] sm:$0xff] }
 0x14b   : > { %6681 = vmatpush3.msra.mxu1 %v2413_v1  ;;  %6695 = vmatpush3.msra.mxu0 %v9394_v41  ;;  %v13184_v1 = vld [vmem:[#allocation11_spill] sm:$0xff] }
 0x14c   : > { %6682 = vmatprep.subr.mxu1 %v2532_v38  ;;  %6696 = vmatprep.subr.mxu0 %v9399_v30  ;;  %v13185_v38 = vld [vmem:[#allocation30_spill] sm:$0xff] }
 0x14d   : > { %6683 = vmatpush3.msra.mxu1 %v2420_v3  ;;  %6697 = vmatpush3.msra.mxu0 %v9405_v21  ;;  %v13186_v3 = vld [vmem:[#allocation19_spill] sm:$0xff] }
 0x14e   : > { %2537 = vmatmul.mubr.f32.vlgmr.msra.gmra.mxu1 %v9684_v25  ;;  %6698 = vmatprep.subr.mxu0 %v9438_v63  ;;  %v13189_v25 = vld [vmem:[#allocation16_spill] sm:$0xff] }
 0x14f   : > { %6728 = vmatprep.subr.mxu1 %v9265_v33  ;;  %6699 = vmatpush3.msra.mxu0 %v9418_v31 }
 0x150   : > { %6729 = vmatpush3.msra.mxu1 %v9270_v27  ;;  %6700 = vmatprep.subr.mxu0 %v9441_v36 }
 0x151   : > { %6730 = vmatprep.subr.mxu1 %v9296_v29  ;;  %2542 = vmatprep.mubr.f32.mxu1 %v9729_v55  ;;  %v13188_v55 = vld [vmem:[#allocation14_spill] sm:$0xff] }
 0x152   : > { %6701 = vmatpush3.msra.mxu0 %v13167_v4  ;;  %6731 = vmatpush3.msra.mxu1 %v13168_v34 }
 0x153   : > { %2544 = vmatmul.mubr.f32.gmra.mxu1 %v9753_v58  ;;  %6702 = vmatprep.subr.mxu0 %v13169_v35  ;;  %v13187_v58 = vld [vmem:[#allocation12_spill] sm:$0xff] }
 0x154   : > { %6732 = vmatprep.subr.mxu1 %v13170_v2  ;;  %6703 = vmatpush3.msra.mxu0 %v13171_v23 }
 0x155   : > { %6733 = vmatpush3.msra.mxu1 %v13172_v11  ;;  %6704 = vmatprep.subr.mxu0 %v13173_v18 }
 0x156   : > { %6734 = vmatprep.subr.mxu1 %v13174_v22  ;;  %6705 = vmatpush3.msra.mxu0 %v13175_v59 }
 0x157   : > { %6735 = vmatpush3.msra.mxu1 %v13176_v42  ;;  %6706 = vmatprep.subr.mxu0 %v13177_v40 }
 0x158   : > { %6736 = vmatprep.subr.mxu1 %v13178_v54  ;;  %6707 = vmatpush3.msra.mxu0 %v13179_v62 }
 0x159   : > { %6737 = vmatpush3.msra.mxu1 %v13180_v53  ;;  %6708 = vmatprep.subr.mxu0 %v13181_v24 }
 0x15a   : > { %6738 = vmatprep.subr.mxu1 %v13182_v37  ;;  %6709 = vmatpush3.msra.mxu0 %v9628_v19 }
 0x15b   : > { %6739 = vmatpush3.msra.mxu1 %v13183_v6  ;;  %6710 = vmatprep.subr.mxu0 %v9682_v10 }
 0x15c   : > { %6740 = vmatprep.subr.mxu1 %v13184_v1  ;;  %6711 = vmatpush3.msra.mxu0 %v9641_v51 }
 0x15d   : > { %6741 = vmatpush3.msra.mxu1 %v13185_v38  ;;  %6712 = vmatprep.subr.mxu0 %v9708_v56 }
 0x15e   : > { %6742 = vmatprep.subr.mxu1 %v13186_v3  ;;  %6713 = vmatpush3.msra.mxu0 %v9679_v5 }
 0x15f   : > { %6743 = vmatpush3.msra.mxu1 %v13187_v58  ;;  %6714 = vmatprep.subr.mxu0 %v9741_v9 }
 0x160   : > { %6744 = vmatprep.subr.mxu1 %v13188_v55  ;;  %6715 = vmatpush3.msra.mxu0 %v9702_v20 }
 0x161   : > { %6745 = vmatpush3.msra.mxu1 %v13189_v25  ;;  %6716 = vmatprep.subr.mxu0 %v9764_v28 }
 0x162   : > { %6746 = vmatprep.subr.mxu1 %v9544_v50  ;;  %6717 = vmatpush3.msra.mxu0 %v9747_v12  ;;  %v13191_v50 = vld [vmem:[#allocation32_spill] sm:$0xff] }
 0x163   : > { %6747 = vmatpush3.msra.mxu1 %v13190_v16  ;;  %6718 = vmatprep.subr.mxu0 %v9798_v47  ;;  %v13192_v16 = vld [vmem:[#allocation29_spill] sm:$0xff] }
 0x164   : > { %6748 = vmatprep.subr.mxu1 %v9611_v43  ;;  %6719 = vmatpush3.msra.mxu0 %v9782_v7  ;;  %v13193_v43 = vand.u32 4294901760, %v9288_v32  ;;  %v13198_v32 = vand.u32 4294901760, %v9372_v39  ;;  %v13204_v39 = vand.u32 4294901760, %v9738_v48 }
 0x165   : > { %6749 = vmatpush3.msra.mxu1 %v9584_v17  ;;  %6720 = vmatprep.subr.mxu0 %v9819_v49  ;;  %v13194_v17 = vand.u32 4294901760, %v9294_v15  ;;  %v13195_v49 = vld [vmem:[#allocation42_spill] sm:$0xff]  ;;  %v13199_v15 = vand.u32 4294901760, %v9394_v41  ;;  %v13206_v41 = vand.u32 4294901760, %v9418_v31  ;;  %v13211_v31 = vand.u32 4294901760, %v13169_v35  ;;  %v13226_v35 = vld [vmem:[#allocation25_spill] sm:$0xff] }
 0x166   : > { %6750 = vmatprep.subr.mxu1 %v9631_v52  ;;  %6721 = vmatpush3.msra.mxu0 %v9807_v57  ;;  %v13196_v57 = vand.u32 4294901760, %v9332_v8  ;;  %v13200_v8 = vand.u32 4294901760, %v9399_v30  ;;  %v13207_v30 = vand.u32 4294901760, %v9441_v36  ;;  %v13215_v36 = vand.u32 4294901760, %v13177_v40 }
 0x167   : > { %2679 = vmatprep.mubr.f32.mxu0 %v9727_v61  ;;  %6751 = vmatpush3.msra.mxu1 %v13191_v50  ;;  %v13197_v50 = vand.u32 4294901760, %v9351_v14  ;;  %v13202_v14 = vand.u32 4294901760, %v9727_v61  ;;  %v13217_v61 = vand.u32 4294901760, %v13181_v24 }
 0x168   : > { %2682 = vmatmul.mubr.f32.vlgmr.msra.gmra.mxu0 %v9738_v48  ;;  %6752 = vmatprep.subr.mxu1 %v13192_v16  ;;  %v13209_v48 = vand.u32 4294901760, %v13167_v4  ;;  %v13220_v4 = vand.u32 4294901760, %v9641_v51  ;;  %v13224_v51 = vand.u32 4294901760, %v9702_v20  ;;  %v13231_v20 = vand.u32 4294901760, %v9782_v7  ;;  %v13240_v7 = vld [vmem:[#allocation36_spill] sm:$0xff] }
 0x169   : > { %6766 = vmatprep.subr.mxu0 %v13193_v43  ;;  %6753 = vmatpush3.msra.mxu1 %v9649_v13  ;;  %v13205_v43 = vand.u32 4294901760, %v9438_v63  ;;  %v13214_v63 = vand.u32 4294901760, %v13175_v59 }
 0x16a   : > { %6767 = vmatpush3.msra.mxu0 %v13194_v17  ;;  %6754 = vmatprep.subr.mxu1 %v13195_v49  ;;  %v13201_v17 = vld [vmem:[#allocation37_spill] sm:$0xff] }
 0x16b   : > { %6768 = vmatprep.subr.mxu0 %v13196_v57  ;;  %2688 = vmatprep.mubr.f32.mxu0 %v9773_v0  ;;  %v13219_v57 = vand.u32 4294901760, %v9682_v10  ;;  %v13223_v10 = vand.u32 4294901760, %v9741_v9  ;;  %v13229_v9 = vand.u32 4294901760, %v9798_v47  ;;  %v13239_v47 = vld [vmem:[#allocation43_spill] sm:$0xff] }
 0x16c   : > { %6755 = vmatpush3.msra.mxu1 %v9691_v46  ;;  %6769 = vmatpush3.msra.mxu0 %v13197_v50  ;;  %v13203_v50 = vand.u32 4294901760, %v9405_v21  ;;  %v13208_v21 = vand.u32 4294901760, %v9773_v0  ;;  %v13216_v0 = vand.u32 4294901760, %v13179_v62 }
 0x16d   : > { %2691 = vmatmul.mubr.f32.gmra.mxu0 %v9794_v60  ;;  %6756 = vmatprep.subr.mxu1 %v9705_v45 }
 0x16e   : > { %6770 = vmatprep.subr.mxu0 %v13198_v32  ;;  %6757 = vmatpush3.msra.mxu1 %v9735_v44 }
 0x16f   : > { %6771 = vmatpush3.msra.mxu0 %v13199_v15  ;;  %6758 = vmatprep.subr.mxu1 %v9758_v26 }
 0x170   : > { %6772 = vmatprep.subr.mxu0 %v13200_v8  ;;  %6759 = vmatpush3.msra.mxu1 %v13201_v17 }
 0x171   : > { %2795 = vmatprep.mubr.f32.mxu1 %v13202_v14  ;;  %6773 = vmatpush3.msra.mxu0 %v13203_v50 }
 0x172   : > { %2799 = vmatmul.mubr.f32.vlgmr.msra.gmra.mxu1 %v13204_v39  ;;  %6774 = vmatprep.subr.mxu0 %v13205_v43 }
 0x173   : > { %6804 = vmatprep.subr.mxu1 %v9265_v33  ;;  %6775 = vmatpush3.msra.mxu0 %v13206_v41  ;;  %v13210_v33 = vand.u32 4294901760, %v9794_v60  ;;  %v13218_v60 = vand.u32 4294901760, %v9628_v19  ;;  %v13222_v19 = vand.u32 4294901760, %v9679_v5  ;;  %v13227_v5 = vand.u32 4294901760, %v9747_v12 }
 0x174   : > { %6805 = vmatpush3.msra.mxu1 %v9270_v27  ;;  %6776 = vmatprep.subr.mxu0 %v13207_v30  ;;  %v13212_v27 = vand.u32 4294901760, %v13171_v23  ;;  %v13235_v23 = vld [vmem:[#allocation39_spill] sm:$0xff] }
 0x175   : > { %6806 = vmatprep.subr.mxu1 %v9296_v29  ;;  %2806 = vmatprep.mubr.f32.mxu1 %v13208_v21  ;;  %v13213_v29 = vand.u32 4294901760, %v13173_v18  ;;  %v13236_v12 = vand.u32 4294901760, %v13235_v23  ;;  %v13238_v18 = vld [vmem:[#allocation32_spill] sm:$0xff] }
 0x176   : > { %6777 = vmatpush3.msra.mxu0 %v13209_v48  ;;  %6807 = vmatpush3.msra.mxu1 %v13168_v34  ;;  %v13221_v34 = vand.u32 4294901760, %v9708_v56  ;;  %v13225_v56 = vand.u32 4294901760, %v9764_v28 }
 0x177   : > { %2810 = vmatmul.mubr.f32.gmra.mxu1 %v13210_v33  ;;  %6778 = vmatprep.subr.mxu0 %v13211_v31 }
 0x178   : > { %6808 = vmatprep.subr.mxu1 %v13170_v2  ;;  %6779 = vmatpush3.msra.mxu0 %v13212_v27  ;;  %v13228_v2 = vld [vmem:[#allocation35_spill] sm:$0xff] }
 0x179   : > { %6809 = vmatpush3.msra.mxu1 %v13172_v11  ;;  %6780 = vmatprep.subr.mxu0 %v13213_v29  ;;  %v13237_v11 = vld [vmem:[#allocation20_spill] sm:$0xff] }
 0x17a   : > { %6810 = vmatprep.subr.mxu1 %v13174_v22  ;;  %6781 = vmatpush3.msra.mxu0 %v13214_v63 }
 0x17b   : > { %6811 = vmatpush3.msra.mxu1 %v13176_v42  ;;  %6782 = vmatprep.subr.mxu0 %v13215_v36 }
 0x17c   : > { %6812 = vmatprep.subr.mxu1 %v13178_v54  ;;  %6783 = vmatpush3.msra.mxu0 %v13216_v0 }
 0x17d   : > { %6813 = vmatpush3.msra.mxu1 %v13180_v53  ;;  %6784 = vmatprep.subr.mxu0 %v13217_v61 }
 0x17e   : > { %6814 = vmatprep.subr.mxu1 %v13182_v37  ;;  %6785 = vmatpush3.msra.mxu0 %v13218_v60 }
 0x17f   : > { %6815 = vmatpush3.msra.mxu1 %v13183_v6  ;;  %6786 = vmatprep.subr.mxu0 %v13219_v57 }
 0x180   : > { %6816 = vmatprep.subr.mxu1 %v13184_v1  ;;  %6787 = vmatpush3.msra.mxu0 %v13220_v4 }
 0x181   : > { %6817 = vmatpush3.msra.mxu1 %v13185_v38  ;;  %6788 = vmatprep.subr.mxu0 %v13221_v34 }
 0x182   : > { %6818 = vmatprep.subr.mxu1 %v13186_v3  ;;  %6789 = vmatpush3.msra.mxu0 %v13222_v19 }
 0x183   : > { %6819 = vmatpush3.msra.mxu1 %v13187_v58  ;;  %6790 = vmatprep.subr.mxu0 %v13223_v10  ;;  %v13230_v58 = vld [vmem:[#allocation34_spill] sm:$0xff] }
 0x184   : > { %6820 = vmatprep.subr.mxu1 %v13188_v55  ;;  %6791 = vmatpush3.msra.mxu0 %v13224_v51  ;;  %v13232_v55 = vld [vmem:[#allocation38_spill] sm:$0xff] }
 0x185   : > { %6821 = vmatpush3.msra.mxu1 %v13189_v25  ;;  %6792 = vmatprep.subr.mxu0 %v13225_v56  ;;  %v13233_v25 = vld [vmem:[#allocation40_spill] sm:$0xff] }
 0x186   : > { %6822 = vmatprep.subr.mxu1 %v13226_v35  ;;  %6793 = vmatpush3.msra.mxu0 %v13227_v5  ;;  %v13234_v28 = vand.u32 4294901760, %v13233_v25 }
 0x187   : > { %6823 = vmatpush3.msra.mxu1 %v13228_v2  ;;  %6794 = vmatprep.subr.mxu0 %v13229_v9 }
 0x188   : > { %6824 = vmatprep.subr.mxu1 %v13230_v58  ;;  %6795 = vmatpush3.msra.mxu0 %v13231_v20 }
 0x189   : > { %6825 = vmatpush3.msra.mxu1 %v13232_v55  ;;  %6796 = vmatprep.subr.mxu0 %v13234_v28 }
 0x18a   : > { %6826 = vmatprep.subr.mxu1 %v9631_v52  ;;  %6797 = vmatpush3.msra.mxu0 %v13236_v12  ;;  %v13241_v52 = vld [vmem:[#allocation21_spill] sm:$0xff] }
 0x18b   : > { %2976 = vmatprep.mubr.f32.mxu0 %v13237_v11  ;;  %6827 = vmatpush3.msra.mxu1 %v13238_v18 }
 0x18c   : > { %2978 = vmatmul.mubr.f32.vlgmr.msra.gmra.mxu0 %v13239_v47  ;;  %6828 = vmatprep.subr.mxu1 %v13192_v16  ;;  %v6190_v16 = vpop.f32.mrf.mxu0 }
 0x18d   : > { %6829 = vmatpush3.msra.mxu1 %v9649_v13  ;;  %2983 = vmatprep.mubr.f32.mxu0 %v13240_v7 }
 0x18e   : > { %6830 = vmatprep.subr.mxu1 %v13195_v49  ;;  %3087 = vmatprep.mubr.f32.mxu1 %v13237_v11  ;;  %v6191_v13 = vpop.f32.mrf.mxu0 }
 0x18f   : > { %6831 = vmatpush3.msra.mxu1 %v9691_v46  ;;  %v6228_v46 = vpop.f32.mrf.mxu1  ;;  %v6192_v9 = vadd.f32 %v6191_v13, %v6190_v16 }
 0x190   : > { %2985 = vmatmul.mubr.f32.gmra.mxu0 %v13241_v52  ;;  %6832 = vmatprep.subr.mxu1 %v9705_v45  ;;  %v6193_v49 = vpop.f32.mrf.mxu0 }
 0x191   : > { %6833 = vmatpush3.msra.mxu1 %v9735_v44  ;;  %v6229_v59 = vpop.f32.mrf.mxu1 }
 0x192   : > { %6834 = vmatprep.subr.mxu1 %v9758_v26  ;;  %v6194_v22 = vpop.f32.mrf.mxu0  ;;  %v6230_v5 = vadd.f32 %v6229_v59, %v6228_v46 }
 0x193   : > { %6835 = vmatpush3.msra.mxu1 %v13201_v17  ;;  %v6231_v45 = vpop.f32.mrf.mxu1  ;;  %v6195_v58 = vadd.f32 %v6194_v22, %v6193_v49 }
 0x194   : > { %3089 = vmatmul.mubr.f32.vlgmr.msra.gmra.mxu1 %v13239_v47  ;;  %v6266_v42 = vpop.f32.mrf.mxu0  ;;  %v703_v23 = vadd.f32 %v6230_v5, %v6192_v9 }
 0x195   : > { %3094 = vmatprep.mubr.f32.mxu1 %v13240_v7  ;;  %v6232_v44 = vpop.f32.mrf.mxu1 }
 0x196   : > { %v6267_v40 = vpop.f32.mrf.mxu0  ;;  %v6233_v55 = vadd.f32 %v6232_v44, %v6231_v45 }
 0x197   : > { %v6304_v26 = vpop.f32.mrf.mxu1  ;;  %v6268_v20 = vadd.f32 %v6267_v40, %v6266_v42 }
 0x198   : > { %3096 = vmatmul.mubr.f32.gmra.mxu1 %v13241_v52  ;;  %v6269_v54 = vpop.f32.mrf.mxu0  ;;  %v710_v18 = vadd.f32 %v6233_v55, %v6195_v58 }
 0x199   : > { %v6305_v53 = vpop.f32.mrf.mxu1  ;;  %v848_v11 = vadd.f32 %v6268_v20, %v703_v23 }
 0x19a   : > { %v6270_v62 = vpop.f32.mrf.mxu0  ;;  %v6306_v12 = vadd.f32 %v6305_v53, %v6304_v26 }
 0x19b   : > { %v6307_v37 = vpop.f32.mrf.mxu1  ;;  %v6271_v47 = vadd.f32 %v6270_v62, %v6269_v54 }
 0x19c   : > { %v6342_v24 = vpop.f32.mrf.mxu0  ;;  %v965_v59 = vadd.f32 %v6306_v12, %v848_v11 }
 0x19d   : > { %v6308_v1 = vpop.f32.mrf.mxu1  ;;  %v857_v49 = vadd.f32 %v6271_v47, %v710_v18 }
 0x19e   : > { %v6343_v6 = vpop.f32.mrf.mxu0  ;;  %v6309_v13 = vadd.f32 %v6308_v1, %v6307_v37 }
 0x19f   : > { %v6380_v3 = vpop.f32.mrf.mxu1  ;;  %v6344_v7 = vadd.f32 %v6343_v6, %v6342_v24 }
 0x1a0   : > { %v6345_v38 = vpop.f32.mrf.mxu0  ;;  %v976_v5 = vadd.f32 %v6309_v13, %v857_v49 }
 0x1a1   : > { %v6381_v15 = vpop.f32.mrf.mxu1  ;;  %v1144_v40 = vadd.f32 %v6344_v7, %v965_v59 }
 0x1a2   : > { %v6346_v32 = vpop.f32.mrf.mxu0  ;;  %v6382_v16 = vadd.f32 %v6381_v15, %v6380_v3 }
 0x1a3   : > { %v6383_v17 = vpop.f32.mrf.mxu1  ;;  %v6347_v42 = vadd.f32 %v6346_v32, %v6345_v38 }
 0x1a4   : > { %v6418_v8 = vpop.f32.mrf.mxu0  ;;  %v1255_v9 = vadd.f32 %v6382_v16, %v1144_v40 }
 0x1a5   : > { %v6384_v50 = vpop.f32.mrf.mxu1  ;;  %v1151_v23 = vadd.f32 %v6347_v42, %v976_v5 }
 0x1a6   : > { %v6419_v14 = vpop.f32.mrf.mxu0  ;;  %v6385_v26 = vadd.f32 %v6384_v50, %v6383_v17 }
 0x1a7   : > { %v6456_v43 = vpop.f32.mrf.mxu1  ;;  %v6420_v44 = vadd.f32 %v6419_v14, %v6418_v8 }
 0x1a8   : > { %v6421_v39 = vpop.f32.mrf.mxu0  ;;  %v1262_v6 = vadd.f32 %v6385_v26, %v1151_v23 }
 0x1a9   : > { %v6457_v30 = vpop.f32.mrf.mxu1  ;;  %v1374_v58 = vadd.f32 %v6420_v44, %v1255_v9 }
 0x1aa   : > { %v6422_v41 = vpop.f32.mrf.mxu0  ;;  %v6458_v53 = vadd.f32 %v6457_v30, %v6456_v43 }
 0x1ab   : > { %v6459_v48 = vpop.f32.mrf.mxu1  ;;  %v6423_v54 = vadd.f32 %v6422_v41, %v6421_v39 }
 0x1ac   : > { %v1621_v55 = vadd.f32 %v6458_v53, %v1374_v58 }
 0x1ad   : > { %v6460_v31 = vpop.f32.mrf.mxu1  ;;  %v1389_v12 = vadd.f32 %v6423_v54, %v1262_v6 }
 0x1ae   : > { %v6461_v37 = vadd.f32 %v6460_v31, %v6459_v48 }
 0x1b0   : > { %v1628_v14 = vadd.f32 %v6461_v37, %v1389_v12 }
 0x1bb   : > { %v6494_v21 = vpop.f32.mrf.mxu0 }
 0x1bd   : > { %v6495_v33 = vpop.f32.mrf.mxu0 }
 0x1be   : > { %v6496_v62 = vadd.f32 %v6495_v33, %v6494_v21 }
 0x1c0   : > { %v6497_v27 = vpop.f32.mrf.mxu0  ;;  %v1766_v38 = vadd.f32 %v6496_v62, %v1621_v55 }
 0x1c2   : > { %v6498_v63 = vpop.f32.mrf.mxu0 }
 0x1c3   : > { %v6499_v32 = vadd.f32 %v6498_v63, %v6497_v27 }
 0x1c5   : > { %v6532_v29 = vpop.f32.mrf.mxu1  ;;  %v1775_v18 = vadd.f32 %v6499_v32, %v1628_v14 }
 0x1c7   : > { %v6533_v36 = vpop.f32.mrf.mxu1 }
 0x1c8   : > { %v6534_v1 = vadd.f32 %v6533_v36, %v6532_v29 }
 0x1ca   : > { %v6535_v61 = vpop.f32.mrf.mxu1  ;;  %v1883_v11 = vadd.f32 %v6534_v1, %v1766_v38  ;;  %v3101_v38 = vld [vmem:[#allocation2] sm:$0x3] }
 0x1cc   : > { %v6536_v57 = vpop.f32.mrf.mxu1 }
 0x1cd   : > { %v6537_v17 = vadd.f32 %v6536_v57, %v6535_v61 }
 0x1cf   : > { %v1894_v47 = vadd.f32 %v6537_v17, %v1775_v18 }
 0x1df   : > { %v6570_v0 = vpop.f32.mrf.mxu0 }
 0x1e1   : > { %v6571_v60 = vpop.f32.mrf.mxu0 }
 0x1e2   : > { %v6572_v8 = vadd.f32 %v6571_v60, %v6570_v0 }
 0x1e4   : > { %v6573_v4 = vpop.f32.mrf.mxu0  ;;  %v2062_v39 = vadd.f32 %v6572_v8, %v1883_v11 }
 0x1e6   : > { %v6574_v19 = vpop.f32.mrf.mxu0 }
 0x1e7   : > { %v6575_v41 = vadd.f32 %v6574_v19, %v6573_v4 }
 0x1e9   : > { %v6608_v34 = vpop.f32.mrf.mxu1  ;;  %v2069_v59 = vadd.f32 %v6575_v41, %v1894_v47 }
 0x1eb   : > { %v6609_v10 = vpop.f32.mrf.mxu1 }
 0x1ec   : > { %v6610_v50 = vadd.f32 %v6609_v10, %v6608_v34 }
 0x1ed   : > { %v6611_v56 = vpop.f32.mrf.mxu1 }
 0x1ee   : > { %v2173_v48 = vadd.f32 %v6610_v50, %v2062_v39 }
 0x1ef   : > { %v6612_v2 = vpop.f32.mrf.mxu1 }
 0x1f0   : > { %v6613_v31 = vadd.f32 %v6612_v2, %v6611_v56 }
 0x1f2   : > { %v2180_v61 = vadd.f32 %v6613_v31, %v2069_v59 }
 0x204   : > { %v6646_v51 = vpop.f32.mrf.mxu0 }
 0x206   : > { %v6647_v35 = vpop.f32.mrf.mxu0 }
 0x207   : > { %v6648_v21 = vadd.f32 %v6647_v35, %v6646_v51 }
 0x209   : > { %v2292_v27 = vadd.f32 %v6648_v21, %v2173_v48 }
 0x20a   : > { %v6649_v25 = vpop.f32.mrf.mxu0 }
 0x20c   : > { %v6650_v52 = vpop.f32.mrf.mxu0 }
 0x20d   : > { %v6651_v63 = vadd.f32 %v6650_v52, %v6649_v25 }
 0x20e   : > { %v6684_v28 = vpop.f32.mrf.mxu1 }
 0x20f   : > { %v2307_v16 = vadd.f32 %v6651_v63, %v2180_v61 }
 0x210   : > { %v6685_v46 = vpop.f32.mrf.mxu1 }
 0x211   : > { %v6686_v29 = vadd.f32 %v6685_v46, %v6684_v28 }
 0x213   : > { %v6687_v45 = vpop.f32.mrf.mxu1  ;;  %v2539_v57 = vadd.f32 %v6686_v29, %v2292_v27 }
 0x215   : > { %v6688_v24 = vpop.f32.mrf.mxu1 }
 0x216   : > { %v6689_v34 = vadd.f32 %v6688_v24, %v6687_v45 }
 0x218   : > { %v2546_v56 = vadd.f32 %v6689_v34, %v2307_v16 }
 0x228   : > { %v6722_v22 = vpop.f32.mrf.mxu0 }
 0x22a   : > { %v6723_v20 = vpop.f32.mrf.mxu0 }
 0x22b   : > { %v6724_v0 = vadd.f32 %v6723_v20, %v6722_v22 }
 0x22d   : > { %v6725_v3 = vpop.f32.mrf.mxu0  ;;  %v2684_v4 = vadd.f32 %v6724_v0, %v2539_v57 }
 0x22f   : > { %v6726_v43 = vpop.f32.mrf.mxu0 }
 0x230   : > { %v6727_v19 = vadd.f32 %v6726_v43, %v6725_v3 }
 0x232   : > { %v6760_v15 = vpop.f32.mrf.mxu1  ;;  %v2693_v40 = vadd.f32 %v6727_v19, %v2546_v56 }
 0x234   : > { %v6761_v30 = vpop.f32.mrf.mxu1 }
 0x235   : > { %v6762_v10 = vadd.f32 %v6761_v30, %v6760_v15 }
 0x237   : > { %v6763_v36 = vpop.f32.mrf.mxu1  ;;  %v2801_v2 = vadd.f32 %v6762_v10, %v2684_v4 }
 0x239   : > { %v6764_v13 = vpop.f32.mrf.mxu1 }
 0x23a   : > { %v6765_v28 = vadd.f32 %v6764_v13, %v6763_v36 }
 0x23c   : > { %v2812_v44 = vadd.f32 %v6765_v28, %v2693_v40 }
 0x24c   : > { %v6798_v33 = vpop.f32.mrf.mxu0 }
 0x24e   : > { %v6799_v7 = vpop.f32.mrf.mxu0 }
 0x24f   : > { %v6800_v51 = vadd.f32 %v6799_v7, %v6798_v33 }
 0x250   : > { %v6801_v60 = vpop.f32.mrf.mxu0 }
 0x251   : > { %v2980_v42 = vadd.f32 %v6800_v51, %v2801_v2 }
 0x252   : > { %v6802_v35 = vpop.f32.mrf.mxu0 }
 0x253   : > { %v6803_v25 = vadd.f32 %v6802_v35, %v6801_v60 }
 0x254   : > { %v6836_v49 = vpop.f32.mrf.mxu1 }
 0x255   : > { %v2987_v9 = vadd.f32 %v6803_v25, %v2812_v44 }
 0x256   : > { %v6837_v46 = vpop.f32.mrf.mxu1 }
 0x257   : > { %v6838_v52 = vadd.f32 %v6837_v46, %v6836_v49 }
 0x258   : > { %v6839_v22 = vpop.f32.mrf.mxu1 }
 0x259   : > { %v3091_v45 = vadd.f32 %v6838_v52, %v2980_v42 }
 0x25a   : > { %v6840_v5 = vpop.f32.mrf.mxu1 }
 0x25b   : > { %v3103_v26 = vsel %vm3102_vm1, %v3091_v45, 0.0  ;;  %v6841_v53 = vadd.f32 %v6840_v5, %v6839_v22 }
 0x25c   : > { %v3104_v20 = vrot.slane %v3103_v26, 4 }
 0x25d   : > { %v3098_v23 = vadd.f32 %v6841_v53, %v2987_v9 }
 0x25e   : > { %v3105_v58 = vadd.f32 %v3104_v20, %v3103_v26 }
 0x25f   : > { %v3110_v54 = vsel %vm3102_vm1, %v3098_v23, 0.0 }
 0x260   : > { %v3106_v62 = vrot.slane %v3105_v58, 2  ;;  %v3111_v24 = vrot.slane %v3110_v54, 4 }
 0x262   : > { %v3107_v6 = vadd.f32 %v3106_v62, %v3105_v58  ;;  %v3112_v55 = vadd.f32 %v3111_v24, %v3110_v54 }
 0x264   : > { %v3113_v37 = vrot.slane %v3112_v55, 2  ;;  %v3108_v1 = vrot.slane %v3107_v6, 1 }
 0x266   : > { %v3114_v3 = vadd.f32 %v3113_v37, %v3112_v55  ;;  %v3109_v12 = vadd.f32 %v3108_v1, %v3107_v6 }
 0x268   : > { %v3115_v15 = vrot.slane %v3114_v3, 1 }
 0x26a   : > { %v3116_v32 = vadd.f32 %v3115_v15, %v3114_v3 }
 0x26c   : > { %v3120_v8 = vsel %vm3119_vm2, %v3116_v32, %v3109_v12 }
 0x26d   : > { %v3122_v14 = vadd.f32 %v3120_v8, %v3101_v38 }
 0x26f   : > { %3124 = vst.msk [vmem:[#allocation2] sm:$0x3] %vm3123_vm3, %v3122_v14 }
 0x270 PF: > { %p6151_p7 = scmp.ne.s32.totalorder %s7853_s8, 2 }
 0x272   : > { %3128 = sbr.rel (%p6151_p7) target bundleno = 1195 (0x4ab), region = 63 }
 0x277   : > { %v3190_v11 = vld [vmem:[%s12360_s1 + $0xf8] sm:$0xff]  ;;  %v3189_v50 = vld [vmem:[%s12360_s1 + $0xf0] sm:$0xff]  ;;  %s6152_s26 = sshll.u32 %s7853_s8, 3  ;;  %v3188_v41 = vld [vmem:[%s12360_s1 + $0xe8] sm:$0xff]  ;;  %vm6010_vm5 = vcmask 31744   ;;  %vm6027_vm6 = vcmask 1041409  }
 0x278   : > { %v3174_v17 = vld [vmem:[%s12360_s1 + $0x78] sm:$0xff]  ;;  %v10062_v43 = vand.u32 4294901760, %v3190_v11  ;;  %v10066_v18 = vand.u32 4294901760, %v3189_v50  ;;  %v3173_v39 = vld [vmem:[%s12360_s1 + $0x70] sm:$0xff]  ;;  %v3172_v21 = vld [vmem:[%s12360_s1 + $0x68] sm:$0xff]  ;;  %v10079_v48 = vand.u32 4294901760, %v3188_v41  ;;  %v10094_v59 = vstv %s6152_s26 }
 0x279   : > { %v10064_v30 = vand.u32 4294901760, %v3174_v17  ;;  %v10077_v47 = vand.u32 4294901760, %v3173_v39  ;;  %v10081_v31 = vand.u32 4294901760, %v3172_v21  ;;  %v3187_v29 = vld [vmem:[%s12360_s1 + $0xe0] sm:$0xff]  ;;  %v10092_v7 = vld [vmem:[%s12360_s1 + $0xd8] sm:$0xff]  ;;  %v10115_v57 = vld [vmem:[%s12360_s1 + $0xd0] sm:$0xff] }
 0x27a   : > { %v3171_v36 = vld [vmem:[%s12360_s1 + $0x60] sm:$0xff]  ;;  %6842 = vmatprep.subr.mxu0 %v10062_v43  ;;  %v10097_v27 = vand.u32 4294901760, %v3187_v29  ;;  %v10102_v0 = vand.u32 4294901760, %v10092_v7  ;;  %v10105_v60 = vsub.f32 %v3190_v11, %v10062_v43  ;;  %v10110_v61 = vld [vmem:[%s12360_s1 + $0x58] sm:$0xff]  ;;  %v10120_v34 = vld [vmem:[%s12360_s1 + $0x50] sm:$0xff]  ;;  %v10130_v16 = vand.u32 4294901760, %v10115_v57 }
 0x27b   : > { %v10099_v63 = vand.u32 4294901760, %v3171_v36  ;;  %6843 = vmatpush3.msra.mxu0 %v10064_v30  ;;  %v10124_v10 = vand.u32 4294901760, %v10110_v61  ;;  %v10127_v13 = vsub.f32 %v3174_v17, %v10064_v30  ;;  %v10133_v4 = vsub.f32 %v3189_v50, %v10066_v18  ;;  %v10138_v19 = vld [vmem:[%s12360_s1 + $0xc8] sm:$0xff]  ;;  %v10148_v35 = vld [vmem:[%s12360_s1 + $0xc0] sm:$0xff]  ;;  %v10200_v23 = vld [vmem:[%s12360_s1 + $0xb8] sm:$0xff] }
 0x27c   : > { %13242 = vst [vmem:[#allocation44_spill] sm:$0xff] %v10105_v60  ;;  %v10143_v51 = vld [vmem:[%s12360_s1 + $0x48] sm:$0xff]  ;;  %6844 = vmatprep.subr.mxu0 %v10066_v18  ;;  %v12613_v49 = vand.u32 4294901760, %v10105_v60  ;;  %v10153_v56 = vand.u32 4294901760, %v10120_v34  ;;  %v10156_v2 = vsub.f32 %v3173_v39, %v10077_v47  ;;  %v10159_v28 = vand.u32 4294901760, %v10138_v19  ;;  %v10173_v52 = vld [vmem:[%s12360_s1 + $0x40] sm:$0xff] }
 0x27d   : > { %6845 = vmatpush3.msra.mxu0 %v10077_v47  ;;  %v12612_v46 = vand.u32 4294901760, %v10127_v13  ;;  %v12610_v40 = vand.u32 4294901760, %v10133_v4  ;;  %v10165_v42 = vsub.f32 %v3188_v41, %v10079_v48  ;;  %v10168_v25 = vand.u32 4294901760, %v10143_v51  ;;  %v10213_v6 = vld [vmem:[%s12360_s1 + $0x38] sm:$0xff]  ;;  %v10223_v15 = vld [vmem:[%s12360_s1 + $0xb0] sm:$0xff]  ;;  %v10254_v41 = vld [vmem:[%s12360_s1 + $0xa8] sm:$0xff] }
 0x27e   : > { %6846 = vmatprep.subr.mxu0 %v10079_v48  ;;  %v3498_v22 = vsub.f32 %v10105_v60, %v12613_v49  ;;  %v12608_v44 = vand.u32 4294901760, %v10156_v2  ;;  %v10181_v45 = vsub.f32 %v3172_v21, %v10081_v31  ;;  %v10184_v5 = vand.u32 4294901760, %v10148_v35  ;;  %v10238_v14 = vld [vmem:[%s12360_s1 + $0x30] sm:$0xff]  ;;  %v10390_v33 = vld [vmem:[%s12360_s1 + $0x88] sm:$0xff] }
 0x27f   : > { %13243 = vst [vmem:[#allocation45_spill] sm:$0xff] %v10168_v25  ;;  %6847 = vmatpush3.msra.mxu0 %v10081_v31  ;;  %v3386_v9 = vsub.f32 %v10127_v13, %v12612_v46  ;;  %v3505_v26 = vsub.f32 %v10133_v4, %v12610_v40  ;;  %v12607_v53 = vand.u32 4294901760, %v10165_v42  ;;  %v10195_v20 = vsub.f32 %v3187_v29, %v10097_v27  ;;  %v10363_v40 = vld [vmem:[%s12360_s1 + $0x90] sm:$0xff] }
 0x280   : > { %13244 = vst [vmem:[#allocation46_spill] sm:$0xff] %v10184_v5  ;;  %6848 = vmatprep.subr.mxu0 %v10097_v27  ;;  %v3499_v58 = vand.u32 4294901760, %v3498_v22  ;;  %v3393_v54 = vsub.f32 %v10156_v2, %v12608_v44  ;;  %v12605_v62 = vand.u32 4294901760, %v10181_v45  ;;  %v10208_v24 = vand.u32 4294901760, %v10173_v52  ;;  %v10268_v22 = vld [vmem:[%s12360_s1 + $0x28] sm:$0xff]  ;;  %v10347_v44 = vld [vmem:[%s12360_s1 + $0x18] sm:$0xff] }
 0x281   : > { %6849 = vmatpush3.msra.mxu0 %v10099_v63  ;;  %v3387_v55 = vand.u32 4294901760, %v3386_v9  ;;  %v3506_v37 = vand.u32 4294901760, %v3505_v26  ;;  %v3512_v1 = vsub.f32 %v10165_v42, %v12607_v53  ;;  %v12603_v3 = vand.u32 4294901760, %v10195_v20 }
 0x282   : > { %13245 = vst [vmem:[#allocation47_spill] sm:$0xff] %v10208_v24  ;;  %6850 = vmatprep.subr.mxu0 %v10102_v0  ;;  %6880 = vmatprep.subr.mxu1 %v3499_v58  ;;  %v3394_v12 = vand.u32 4294901760, %v3393_v54  ;;  %v3400_v38 = vsub.f32 %v10181_v45, %v12605_v62  ;;  %v10230_v32 = vsub.f32 %v3171_v36, %v10099_v63  ;;  %v10233_v8 = vand.u32 4294901760, %v10200_v23 }
 0x283   : > { %6851 = vmatpush3.msra.mxu0 %v10124_v10  ;;  %6881 = vmatpush3.msra.mxu1 %v3387_v55  ;;  %v3513_v11 = vand.u32 4294901760, %v3512_v1  ;;  %v3519_v17 = vsub.f32 %v10195_v20, %v12603_v3  ;;  %v10246_v50 = vsub.f32 %v10092_v7, %v10102_v0  ;;  %v10249_v39 = vand.u32 4294901760, %v10213_v6 }
 0x284   : > { %13246 = vst [vmem:[#allocation48_spill] sm:$0xff] %v10233_v8  ;;  %6852 = vmatprep.subr.mxu0 %v10130_v16  ;;  %6882 = vmatprep.subr.mxu1 %v3506_v37  ;;  %v3401_v21 = vand.u32 4294901760, %v3400_v38  ;;  %v12601_v29 = vand.u32 4294901760, %v10230_v32  ;;  %v10260_v36 = vsub.f32 %v10110_v61, %v10124_v10  ;;  %v10263_v7 = vand.u32 4294901760, %v10223_v15 }
 0x285   : > { %13247 = vst [vmem:[#allocation49_spill] sm:$0xff] %v10249_v39  ;;  %6853 = vmatpush3.msra.mxu0 %v10153_v56  ;;  %6883 = vmatpush3.msra.mxu1 %v3394_v12  ;;  %v3520_v9 = vand.u32 4294901760, %v3519_v17  ;;  %v12602_v26 = vand.u32 4294901760, %v10246_v50  ;;  %v10274_v58 = vsub.f32 %v10115_v57, %v10130_v16  ;;  %v10277_v61 = vand.u32 4294901760, %v10238_v14  ;;  %v10294_v57 = vld [vmem:[%s12360_s1 + $0xa0] sm:$0xff] }
 0x286   : > { %13248 = vst [vmem:[#allocation50_spill] sm:$0xff] %v10263_v7  ;;  %6854 = vmatprep.subr.mxu0 %v10159_v28  ;;  %6884 = vmatprep.subr.mxu1 %v3513_v11  ;;  %v3407_v54 = vsub.f32 %v10230_v32, %v12601_v29  ;;  %v12604_v55 = vand.u32 4294901760, %v10260_v36  ;;  %v10286_v37 = vsub.f32 %v10120_v34, %v10153_v56  ;;  %v10289_v1 = vand.u32 4294901760, %v10254_v41 }
 0x287   : > { %13249 = vst [vmem:[#allocation51_spill] sm:$0xff] %v10277_v61  ;;  %6855 = vmatpush3.msra.mxu0 %v10168_v25  ;;  %6885 = vmatpush3.msra.mxu1 %v3401_v21  ;;  %v3526_v12 = vsub.f32 %v10246_v50, %v12602_v26  ;;  %v12606_v38 = vand.u32 4294901760, %v10274_v58  ;;  %v10303_v34 = vsub.f32 %v10138_v19, %v10159_v28  ;;  %v10306_v11 = vand.u32 4294901760, %v10268_v22  ;;  %v10320_v19 = vld [vmem:[%s12360_s1 + $0x20] sm:$0xff] }
 0x288   : > { %13250 = vst [vmem:[#allocation52_spill] sm:$0xff] %v10289_v1  ;;  %6856 = vmatprep.subr.mxu0 %v10184_v5  ;;  %6886 = vmatprep.subr.mxu1 %v3520_v9  ;;  %v3408_v17 = vand.u32 4294901760, %v3407_v54  ;;  %v3414_v21 = vsub.f32 %v10260_v36, %v12604_v55  ;;  %v12609_v29 = vand.u32 4294901760, %v10286_v37  ;;  %v10315_v26 = vsub.f32 %v10143_v51, %v10168_v25  ;;  %v10333_v51 = vld [vmem:[%s12360_s1 + $0x98] sm:$0xff] }
 0x289   : > { %13251 = vst [vmem:[#allocation53_spill] sm:$0xff] %v10306_v11  ;;  %6857 = vmatpush3.msra.mxu0 %v10208_v24  ;;  %v3527_v3 = vand.u32 4294901760, %v3526_v12  ;;  %v3533_v9 = vsub.f32 %v10274_v58, %v12606_v38  ;;  %v12611_v54 = vand.u32 4294901760, %v10303_v34  ;;  %v10328_v55 = vand.u32 4294901760, %v10294_v57 }
 0x28a   : > { %6887 = vmatpush3.msra.mxu1 %v3408_v17  ;;  %6858 = vmatprep.subr.mxu0 %v10233_v8  ;;  %v3415_v62 = vand.u32 4294901760, %v3414_v21  ;;  %v3421_v12 = vsub.f32 %v10286_v37, %v12609_v29  ;;  %v12614_v38 = vand.u32 4294901760, %v10315_v26  ;;  %v10342_v53 = vsub.f32 %v10148_v35, %v10184_v5 }
 0x28b   : > { %13252 = vst [vmem:[#allocation54_spill] sm:$0xff] %v10328_v55  ;;  %6888 = vmatprep.subr.mxu1 %v3527_v3  ;;  %6859 = vmatpush3.msra.mxu0 %v10249_v39  ;;  %v3534_v17 = vand.u32 4294901760, %v3533_v9  ;;  %v3540_v21 = vsub.f32 %v10303_v34, %v12611_v54  ;;  %v10354_v29 = vand.u32 4294901760, %v10320_v19  ;;  %v10358_v35 = vsub.f32 %v10173_v52, %v10208_v24  ;;  %v10376_v52 = vld [vmem:[%s12360_s1 + $0x10] sm:$0xff] }
 0x28c   : > { %6889 = vmatpush3.msra.mxu1 %v3415_v62  ;;  %6860 = vmatprep.subr.mxu0 %v10263_v7  ;;  %v3422_v3 = vand.u32 4294901760, %v3421_v12  ;;  %v3428_v9 = vsub.f32 %v10315_v26, %v12614_v38  ;;  %v12619_v54 = vand.u32 4294901760, %v10342_v53  ;;  %v10371_v46 = vand.u32 4294901760, %v10333_v51 }
 0x28d   : > { %13253 = vst [vmem:[#allocation55_spill] sm:$0xff] %v10354_v29  ;;  %6890 = vmatprep.subr.mxu1 %v3534_v17  ;;  %6861 = vmatpush3.msra.mxu0 %v10277_v61  ;;  %v3541_v62 = vand.u32 4294901760, %v3540_v21  ;;  %v10382_v49 = vsub.f32 %v10200_v23, %v10233_v8  ;;  %v10385_v38 = vand.u32 4294901760, %v10347_v44  ;;  %v10398_v23 = vsub.f32 %v10213_v6, %v10249_v39  ;;  %v10418_v6 = vld [vmem:[%s12360_s1 + $0x8] sm:$0xff] }
 0x28e   : > { %13254 = vst [vmem:[#allocation56_spill] sm:$0xff] %v10371_v46  ;;  %6891 = vmatpush3.msra.mxu1 %v3422_v3  ;;  %6862 = vmatprep.subr.mxu0 %v10289_v1  ;;  %v3429_v17 = vand.u32 4294901760, %v3428_v9  ;;  %v3547_v21 = vsub.f32 %v10342_v53, %v12619_v54  ;;  %v10401_v12 = vand.u32 4294901760, %v10363_v40  ;;  %v13258_v8 = vand.u32 4294901760, %v10358_v35 }
 0x28f   : > { %13255 = vst [vmem:[#allocation57_spill] sm:$0xff] %v10385_v38  ;;  %13256 = vst [vmem:[#allocation58_spill] sm:$0xff] %v10398_v23  ;;  %6892 = vmatprep.subr.mxu1 %v3541_v62  ;;  %6863 = vmatpush3.msra.mxu0 %v10306_v11  ;;  %v10410_v24 = vsub.f32 %v10223_v15, %v10263_v7  ;;  %v10413_v54 = vand.u32 4294901760, %v10376_v52  ;;  %v10424_v9 = vsub.f32 %v10238_v14, %v10277_v61  ;;  %v10432_v7 = vld [vmem:[%s12360_s1 + $0x80] sm:$0xff]  ;;  %vm6031_vm7 = vcmask 25600  }
 0x290   : > { %13257 = vst [vmem:[#allocation59_spill] sm:$0xff] %v10401_v12  ;;  %v3435_v3 = vsub.f32 %v10358_v35, %v13258_v8  ;;  %6893 = vmatpush3.msra.mxu1 %v3429_v17  ;;  %6864 = vmatprep.subr.mxu0 %v10328_v55  ;;  %v3548_v62 = vand.u32 4294901760, %v3547_v21  ;;  %v10427_v15 = vand.u32 4294901760, %v10390_v33  ;;  %v13262_v39 = vand.u32 4294901760, %v10382_v49 }
 0x291   : > { %13259 = vst [vmem:[#allocation60_spill] sm:$0xff] %v10410_v24  ;;  %13260 = vst [vmem:[#allocation61_spill] sm:$0xff] %v10413_v54  ;;  %6865 = vmatpush3.msra.mxu0 %v10354_v29  ;;  %v12636_v8 = vand.u32 4294901760, %v10410_v24  ;;  %v10441_v14 = vsub.f32 %v10254_v41, %v10289_v1  ;;  %v13264_v61 = vand.u32 4294901760, %v10398_v23  ;;  %v10458_v41 = vld [vmem:[%s12360_s1] sm:$0xff]  ;;  %v10466_v1 = vand.u32 4294901760, %v10432_v7 }
 0x292   : > { %13261 = vst [vmem:[#allocation62_spill] sm:$0xff] %v10427_v15  ;;  %v3436_v17 = vand.u32 4294901760, %v3435_v3  ;;  %v3554_v21 = vsub.f32 %v10382_v49, %v13262_v39  ;;  %6894 = vmatprep.subr.mxu1 %v3548_v62  ;;  %6866 = vmatprep.subr.mxu0 %v10371_v46  ;;  %v10449_v3 = vand.u32 4294901760, %v10418_v6  ;;  %v10453_v39 = vsub.f32 %v10268_v22, %v10306_v11 }
 0x293   : > { %13263 = vst [vmem:[#allocation63_spill] sm:$0xff] %v10441_v14  ;;  %v3442_v5 = vsub.f32 %v10398_v23, %v13264_v61  ;;  %6867 = vmatpush3.msra.mxu0 %v10385_v38  ;;  %v3561_v61 = vsub.f32 %v10410_v24, %v12636_v8  ;;  %v12639_v25 = vand.u32 4294901760, %v10441_v14  ;;  %13265 = vst [vmem:[#allocation64_spill] sm:$0xff] %v10466_v1  ;;  %v13266_v11 = vand.u32 4294901760, %v10424_v9 }
 0x294   : > { %6895 = vmatpush3.msra.mxu1 %v3436_v17  ;;  %v3555_v62 = vand.u32 4294901760, %v3554_v21  ;;  %6868 = vmatprep.subr.mxu0 %v10401_v12  ;;  %v10475_v21 = vsub.f32 %v10294_v57, %v10328_v55  ;;  %v10482_v24 = vand.u32 4294901760, %v10458_v41  ;;  %v13268_v57 = vand.u32 4294901760, %v10453_v39 }
 0x295   : > { %v3443_v22 = vand.u32 4294901760, %v3442_v5  ;;  %v3449_v23 = vsub.f32 %v10424_v9, %v13266_v11  ;;  %v3562_v8 = vand.u32 4294901760, %v3561_v61  ;;  %6869 = vmatpush3.msra.mxu0 %v10413_v54  ;;  %v3568_v5 = vsub.f32 %v10441_v14, %v12639_v25 }
 0x296   : > { %6896 = vmatprep.subr.mxu1 %v3555_v62  ;;  %13267 = vst [vmem:[#allocation65_spill] sm:$0xff] %v10482_v24  ;;  %v10486_v11 = vsub.f32 %v10320_v19, %v10354_v29  ;;  %6870 = vmatprep.subr.mxu0 %v10427_v15  ;;  %v3456_v62 = vsub.f32 %v10453_v39, %v13268_v57  ;;  %v12644_v61 = vand.u32 4294901760, %v10475_v21  ;;  %v13269_v25 = vlaneseq  ;;  %v3129_v19 = vld [vmem:[%s7855_s19] sm:$0xff] }
 0x297   : > { %6897 = vmatpush3.msra.mxu1 %v3443_v22  ;;  %v3450_v17 = vand.u32 4294901760, %v3449_v23  ;;  %v3569_v14 = vand.u32 4294901760, %v3568_v5  ;;  %6871 = vmatpush3.msra.mxu0 %v10449_v3  ;;  %v10498_v23 = vsub.f32 %v10333_v51, %v10371_v46  ;;  %v10502_v22 = vsub.f32 %v10347_v44, %v10385_v38 }
 0x298   : > { %v3143_v55 = vshrl.u32 %v13269_v25, 7  ;;  %6898 = vmatprep.subr.mxu1 %v3562_v8  ;;  %v3457_v57 = vand.u32 4294901760, %v3456_v62  ;;  %6872 = vmatprep.subr.mxu0 %v10466_v1  ;;  %v3575_v25 = vsub.f32 %v10475_v21, %v12644_v61  ;;  %v3130_v8 = vld [vmem:[%s7855_s19 + $0x8] sm:$0xff]  ;;  %v10515_v51 = vsub.f32 %v10363_v40, %v10401_v12 }
 0x299   : > { %6899 = vmatpush3.msra.mxu1 %v3450_v17  ;;  %6873 = vmatpush3.msra.mxu0 %v10482_v24  ;;  %v13271_v44 = vand.u32 4294901760, %v10486_v11  ;;  %v12649_v62 = vand.u32 4294901760, %v10498_v23  ;;  %v13274_v40 = vand.u32 4294901760, %v10502_v22 }
 0x29a   : > { %v10510_v5 = vadd.s32 %v10094_v59, %v3143_v55  ;;  %6900 = vmatprep.subr.mxu1 %v3569_v14  ;;  %v10525_v59 = vsub.f32 %v10376_v52, %v10413_v54  ;;  %v3576_v55 = vand.u32 4294901760, %v3575_v25  ;;  %6918 = vmatprep.subr.mxu0 %v10105_v60  ;;  %v10532_v14 = vsub.f32 %v10390_v33, %v10427_v15 }
 0x29b   : > { %v3463_v17 = vsub.f32 %v10486_v11, %v13271_v44  ;;  %6901 = vmatpush3.msra.mxu1 %v3457_v57  ;;  %v3582_v52 = vsub.f32 %v10498_v23, %v12649_v62  ;;  %v3470_v33 = vsub.f32 %v10502_v22, %v13274_v40 }
 0x29c   : > { %13270 = vst [vmem:[#allocation66_spill] sm:$0xff] %v10510_v5  ;;  %vm3146_vm4 = vcmp.lt.s32.totalorder %v10510_v5, 20  ;;  %6902 = vmatprep.subr.mxu1 %v3576_v55  ;;  %v12656_v62 = vand.u32 4294901760, %v10525_v59  ;;  %v12655_v12 = vand.u32 4294901760, %v10532_v14 }
 0x29d   : > { %v3464_v44 = vand.u32 4294901760, %v3463_v17  ;;  %v3148_v61 = vsel %vm3146_vm4, %v3130_v8, 0.0  ;;  %v3147_v57 = vsel %vm3146_vm4, %v3129_v19, 0.0  ;;  %v13275_v17 = vand.u32 4294901760, %v10515_v51 }
 0x29e   : > { %v10541_v25 = vand.u32 4294901760, %v3148_v61  ;;  %v10543_v54 = vand.u32 4294901760, %v3147_v57  ;;  %v3583_v15 = vand.u32 4294901760, %v3582_v52  ;;  %v10555_v19 = vsub.f32 %v10418_v6, %v10449_v3 }
 0x29f   : > { %v3589_v8 = vsub.f32 %v10515_v51, %v13275_v17  ;;  %6903 = vmatpush3.msra.mxu1 %v3464_v44  ;;  %v3471_v40 = vand.u32 4294901760, %v3470_v33  ;;  %v3477_v44 = vsub.f32 %v10525_v59, %v12656_v62  ;;  %v3596_v6 = vsub.f32 %v10532_v14, %v12655_v12 }
 0x2a0   : > { %13272 = vst [vmem:[#allocation67_spill] sm:$0xff] %v10541_v25  ;;  %13273 = vst [vmem:[#allocation68_spill] sm:$0xff] %v10543_v54  ;;  %v10558_v55 = vsub.f32 %v3148_v61, %v10541_v25  ;;  %v10561_v38 = vsub.f32 %v3147_v57, %v10543_v54  ;;  %3607 = vmatprep.mubr.f32.mxu1 %v10541_v25  ;;  %6904 = vmatprep.subr.mxu1 %v3583_v15  ;;  %v12657_v52 = vand.u32 4294901760, %v10555_v19 }
 0x2a1   : > { %v3590_v60 = vand.u32 4294901760, %v3589_v8  ;;  %v10573_v61 = vsub.f32 %v10432_v7, %v10466_v1  ;;  %6905 = vmatpush3.msra.mxu1 %v3471_v40  ;;  %v10579_v15 = vsub.f32 %v10458_v41, %v10482_v24  ;;  %v3478_v17 = vand.u32 4294901760, %v3477_v44  ;;  %v3135_v1 = vld [vmem:[%s7855_s19 + $0x30] sm:$0xff] }
 0x2a2   : > { %v12660_v57 = vand.u32 4294901760, %v10558_v55  ;;  %v12665_v33 = vand.u32 4294901760, %v10561_v38  ;;  %v3597_v8 = vand.u32 4294901760, %v3596_v6  ;;  %v3484_v12 = vsub.f32 %v10555_v19, %v12657_v52  ;;  %v3136_v6 = vld [vmem:[%s7855_s19 + $0x38] sm:$0xff] }
 0x2a3   : > { %13276 = vst [vmem:[#allocation69_spill] sm:$0xff] %v10579_v15  ;;  %6906 = vmatprep.subr.mxu1 %v3590_v60  ;;  %v12667_v7 = vand.u32 4294901760, %v10573_v61  ;;  %v12666_v41 = vand.u32 4294901760, %v10579_v15 }
 0x2a4   : > { %v3354_v62 = vsub.f32 %v10558_v55, %v12660_v57  ;;  %v3360_v40 = vsub.f32 %v10561_v38, %v12665_v33  ;;  %6907 = vmatpush3.msra.mxu1 %v3478_v17  ;;  %v3485_v60 = vand.u32 4294901760, %v3484_v12  ;;  %v3154_v12 = vsel %vm3146_vm4, %v3136_v6, 0.0  ;;  %v13281_v6 = vld [vmem:[#allocation60_spill] sm:$0xff] }
 0x2a5   : > { %v3603_v44 = vsub.f32 %v10573_v61, %v12667_v7  ;;  %6908 = vmatprep.subr.mxu1 %v3597_v8  ;;  %v3491_v57 = vsub.f32 %v10579_v15, %v12666_v41  ;;  %v10607_v17 = vand.u32 4294901760, %v3154_v12  ;;  %v13278_v8 = vld [vmem:[#allocation45_spill] sm:$0xff]  ;;  %v13283_v41 = vld [vmem:[#allocation48_spill] sm:$0xff]  ;;  %v13284_v7 = vld [vmem:[#allocation63_spill] sm:$0xff] }
 0x2a6   : > { %v3355_v52 = vand.u32 4294901760, %v3354_v62  ;;  %v3361_v25 = vand.u32 4294901760, %v3360_v40  ;;  %6909 = vmatpush3.msra.mxu1 %v3485_v60  ;;  %v3153_v62 = vsel %vm3146_vm4, %v3135_v1, 0.0  ;;  %v13279_v60 = vld [vmem:[#allocation58_spill] sm:$0xff] }
 0x2a7   : > { %v3604_v24 = vand.u32 4294901760, %v3603_v44  ;;  %v3492_v33 = vand.u32 4294901760, %v3491_v57  ;;  %13277 = vst [vmem:[#allocation70_spill] sm:$0xff] %v10607_v17  ;;  %v10620_v1 = vsub.f32 %v3154_v12, %v10607_v17  ;;  %v13280_v44 = vld [vmem:[#allocation46_spill] sm:$0xff]  ;;  %v13282_v12 = vld [vmem:[#allocation47_spill] sm:$0xff] }
 0x2a8   : > { %3356 = vmatprep.mubr.f32.mxu0 %v3355_v52 }
 0x2a9   : > { %3362 = vmatmul.mubr.f32.vlgmr.msra.gmra.mxu0 %v3361_v25  ;;  %6910 = vmatprep.subr.mxu1 %v3604_v24  ;;  %v10613_v24 = vand.u32 4294901760, %v3153_v62  ;;  %v12668_v52 = vand.u32 4294901760, %v10620_v1 }
 0x2aa   : > { %6919 = vmatpush3.msra.mxu0 %v10127_v13  ;;  %6911 = vmatpush3.msra.mxu1 %v3492_v33 }
 0x2ab   : > { %6920 = vmatprep.subr.mxu0 %v10133_v4  ;;  %3609 = vmatmul.mubr.f32.vlgmr.msra.gmra.mxu1 %v10543_v54  ;;  %v10627_v25 = vsub.f32 %v3153_v62, %v10613_v24  ;;  %v3369_v33 = vsub.f32 %v10620_v1, %v12668_v52  ;;  %v13285_v52 = vld [vmem:[#allocation49_spill] sm:$0xff]  ;;  %v13287_v54 = vld [vmem:[#allocation51_spill] sm:$0xff] }
 0x2ac   : > { %6921 = vmatpush3.msra.mxu0 %v10156_v2  ;;  %6956 = vmatprep.subr.mxu1 %v10062_v43 }
 0x2ad   : > { %6922 = vmatprep.subr.mxu0 %v10165_v42  ;;  %6957 = vmatpush3.msra.mxu1 %v10064_v30  ;;  %v12671_v57 = vand.u32 4294901760, %v10627_v25  ;;  %v3370_v62 = vand.u32 4294901760, %v3369_v33  ;;  %v13288_v33 = vld [vmem:[#allocation52_spill] sm:$0xff] }
 0x2ae   : > { %6923 = vmatpush3.msra.mxu0 %v10181_v45  ;;  %6958 = vmatprep.subr.mxu1 %v10066_v18 }
 0x2af   : > { %6924 = vmatprep.subr.mxu0 %v10195_v20  ;;  %6959 = vmatpush3.msra.mxu1 %v10077_v47  ;;  %v3375_v40 = vsub.f32 %v10627_v25, %v12671_v57  ;;  %v13286_v57 = vld [vmem:[#allocation50_spill] sm:$0xff] }
 0x2b0   : > { %6925 = vmatpush3.msra.mxu0 %v10230_v32  ;;  %6960 = vmatprep.subr.mxu1 %v10079_v48 }
 0x2b1   : > { %6926 = vmatprep.subr.mxu0 %v10246_v50  ;;  %6961 = vmatpush3.msra.mxu1 %v10081_v31  ;;  %v3376_v5 = vand.u32 4294901760, %v3375_v40  ;;  %v13289_v40 = vld [vmem:[#allocation53_spill] sm:$0xff] }
 0x2b2   : > { %6927 = vmatpush3.msra.mxu0 %v10260_v36  ;;  %6962 = vmatprep.subr.mxu1 %v10097_v27 }
 0x2b3   : > { %6928 = vmatprep.subr.mxu0 %v10274_v58  ;;  %6963 = vmatpush3.msra.mxu1 %v10099_v63 }
 0x2b4   : > { %6929 = vmatpush3.msra.mxu0 %v10286_v37  ;;  %6964 = vmatprep.subr.mxu1 %v10102_v0 }
 0x2b5   : > { %6930 = vmatprep.subr.mxu0 %v10303_v34  ;;  %6965 = vmatpush3.msra.mxu1 %v10124_v10 }
 0x2b6   : > { %6931 = vmatpush3.msra.mxu0 %v10315_v26  ;;  %6966 = vmatprep.subr.mxu1 %v10130_v16 }
 0x2b7   : > { %6932 = vmatprep.subr.mxu0 %v10342_v53  ;;  %6967 = vmatpush3.msra.mxu1 %v10153_v56 }
 0x2b8   : > { %6933 = vmatpush3.msra.mxu0 %v10358_v35  ;;  %6968 = vmatprep.subr.mxu1 %v10159_v28 }
 0x2b9   : > { %6934 = vmatprep.subr.mxu0 %v10382_v49  ;;  %6969 = vmatpush3.msra.mxu1 %v13278_v8 }
 0x2ba   : > { %6935 = vmatpush3.msra.mxu0 %v13279_v60  ;;  %6970 = vmatprep.subr.mxu1 %v13280_v44 }
 0x2bb   : > { %6936 = vmatprep.subr.mxu0 %v13281_v6  ;;  %6971 = vmatpush3.msra.mxu1 %v13282_v12 }
 0x2bc   : > { %6937 = vmatpush3.msra.mxu0 %v10424_v9  ;;  %6972 = vmatprep.subr.mxu1 %v13283_v41 }
 0x2bd   : > { %6938 = vmatprep.subr.mxu0 %v13284_v7  ;;  %6973 = vmatpush3.msra.mxu1 %v13285_v52 }
 0x2be   : > { %6939 = vmatpush3.msra.mxu0 %v10453_v39  ;;  %6974 = vmatprep.subr.mxu1 %v13286_v57  ;;  %v13290_v57 = vld [vmem:[#allocation54_spill] sm:$0xff] }
 0x2bf   : > { %6940 = vmatprep.subr.mxu0 %v10475_v21  ;;  %3371 = vmatprep.mubr.f32.mxu0 %v3370_v62 }
 0x2c0   : > { %6941 = vmatpush3.msra.mxu0 %v10486_v11  ;;  %6975 = vmatpush3.msra.mxu1 %v13287_v54 }
 0x2c1   : > { %6942 = vmatprep.subr.mxu0 %v10498_v23  ;;  %3377 = vmatmul.mubr.f32.gmra.mxu0 %v3376_v5  ;;  %v13291_v5 = vld [vmem:[#allocation44_spill] sm:$0xff] }
 0x2c2   : > { %6943 = vmatpush3.msra.mxu0 %v10502_v22  ;;  %6976 = vmatprep.subr.mxu1 %v13288_v33  ;;  %v13292_v62 = vand.u32 4294901760, %v13291_v5  ;;  %v13299_v5 = vld [vmem:[#allocation62_spill] sm:$0xff] }
 0x2c3   : > { %6944 = vmatprep.subr.mxu0 %v10515_v51  ;;  %6977 = vmatpush3.msra.mxu1 %v13289_v40  ;;  %v13294_v40 = vld [vmem:[#allocation57_spill] sm:$0xff] }
 0x2c4   : > { %6945 = vmatpush3.msra.mxu0 %v10525_v59  ;;  %6978 = vmatprep.subr.mxu1 %v13290_v57  ;;  %v13293_v57 = vand.u32 4294901760, %v10127_v13  ;;  %v13300_v13 = vand.u32 4294901760, %v10165_v42  ;;  %v13307_v42 = vand.u32 4294901760, %v10561_v38 }
 0x2c5   : > { %6946 = vmatprep.subr.mxu0 %v10532_v14  ;;  %3751 = vmatprep.mubr.f32.mxu0 %v10558_v55 }
 0x2c6   : > { %6947 = vmatpush3.msra.mxu0 %v10555_v19  ;;  %6979 = vmatpush3.msra.mxu1 %v10354_v29  ;;  %v13295_v29 = vand.u32 4294901760, %v10133_v4  ;;  %v13301_v4 = vand.u32 4294901760, %v10181_v45  ;;  %v13309_v45 = vand.u32 4294901760, %v10260_v36  ;;  %v3222_v36 = vld [vmem:[%s12360_s1 + $0x1f8] sm:$0xff] }
 0x2c7   : > { %6948 = vmatprep.subr.mxu0 %v10573_v61  ;;  %3614 = vmatprep.mubr.f32.mxu1 %v10607_v17  ;;  %v13296_v17 = vld [vmem:[#allocation59_spill] sm:$0xff] }
 0x2c8   : > { %6949 = vmatpush3.msra.mxu0 %v10579_v15  ;;  %6980 = vmatprep.subr.mxu1 %v10371_v46  ;;  %v13297_v46 = vld [vmem:[#allocation61_spill] sm:$0xff]  ;;  %v13298_v15 = vand.u32 4294901760, %v10156_v2  ;;  %v13305_v2 = vand.u32 4294901760, %v10558_v55 }
 0x2c9   : > { %3754 = vmatmul.mubr.f32.vlgmr.msra.gmra.mxu0 %v10561_v38  ;;  %6994 = vmatprep.subr.mxu0 %v13292_v62  ;;  %v13304_v62 = vld [vmem:[#allocation65_spill] sm:$0xff]  ;;  %v13312_v38 = vand.u32 4294901760, %v10286_v37  ;;  %v13318_v37 = vand.u32 4294901760, %v10382_v49 }
 0x2ca   : > { %3616 = vmatmul.mubr.f32.gmra.mxu1 %v10613_v24  ;;  %6995 = vmatpush3.msra.mxu0 %v13293_v57  ;;  %v13303_v57 = vand.u32 4294901760, %v10195_v20  ;;  %v13310_v20 = vand.u32 4294901760, %v10274_v58  ;;  %v3205_v58 = vld [vmem:[%s12360_s1 + $0x170] sm:$0xff]  ;;  %v3220_v49 = vld [vmem:[%s12360_s1 + $0x1e8] sm:$0xff] }
 0x2cb   : > { %6981 = vmatpush3.msra.mxu1 %v13294_v40  ;;  %6996 = vmatprep.subr.mxu0 %v13295_v29  ;;  %v13302_v29 = vld [vmem:[#allocation64_spill] sm:$0xff] }
 0x2cc   : > { %6982 = vmatprep.subr.mxu1 %v13296_v17  ;;  %3760 = vmatprep.mubr.f32.mxu0 %v10620_v1 }
 0x2cd   : > { %6983 = vmatpush3.msra.mxu1 %v13297_v46  ;;  %6997 = vmatpush3.msra.mxu0 %v13298_v15  ;;  %v13306_v15 = vand.u32 4294901760, %v10230_v32  ;;  %v13311_v32 = vand.u32 4294901760, %v10620_v1  ;;  %v13324_v1 = vand.u32 4294901760, %v13284_v7  ;;  %v13327_v7 = vand.u32 4294901760, %v10475_v21  ;;  %v3202_v21 = vld [vmem:[%s12360_s1 + $0x158] sm:$0xff] }
 0x2ce   : > { %3763 = vmatmul.mubr.f32.gmra.mxu0 %v10627_v25  ;;  %6984 = vmatprep.subr.mxu1 %v13299_v5 }
 0x2cf   : > { %6998 = vmatprep.subr.mxu0 %v13300_v13  ;;  %6985 = vmatpush3.msra.mxu1 %v10449_v3  ;;  %v13308_v13 = vand.u32 4294901760, %v10246_v50  ;;  %v13314_v50 = vand.u32 4294901760, %v10303_v34  ;;  %v10761_v34 = vand.u32 4294901760, %v3205_v58 }
 0x2d0   : > { %6999 = vmatpush3.msra.mxu0 %v13301_v4  ;;  %6986 = vmatprep.subr.mxu1 %v13302_v29  ;;  %v3218_v4 = vld [vmem:[%s12360_s1 + $0x1d8] sm:$0xff] }
 0x2d1   : > { %7000 = vmatprep.subr.mxu0 %v13303_v57  ;;  %6987 = vmatpush3.msra.mxu1 %v13304_v62  ;;  %13320 = vst [vmem:[#allocation45_spill] sm:$0xff] %v10761_v34 }
 0x2d2   : > { %3867 = vmatprep.mubr.f32.mxu1 %v13305_v2  ;;  %7001 = vmatpush3.msra.mxu0 %v13306_v15  ;;  %v13332_v15 = vand.u32 4294901760, %v10502_v22  ;;  %v13334_v22 = vand.u32 4294901760, %v10515_v51 }
 0x2d3   : > { %3871 = vmatmul.mubr.f32.vlgmr.msra.gmra.mxu1 %v13307_v42  ;;  %7002 = vmatprep.subr.mxu0 %v13308_v13  ;;  %v3217_v13 = vld [vmem:[%s12360_s1 + $0x1d0] sm:$0xff] }
 0x2d4   : > { %7032 = vmatprep.subr.mxu1 %v10062_v43  ;;  %7003 = vmatpush3.msra.mxu0 %v13309_v45  ;;  %v13313_v43 = vand.u32 4294901760, %v10627_v25 }
 0x2d5   : > { %7033 = vmatpush3.msra.mxu1 %v10064_v30  ;;  %7004 = vmatprep.subr.mxu0 %v13310_v20  ;;  %v3206_v30 = vld [vmem:[%s12360_s1 + $0x178] sm:$0xff]  ;;  %v10845_v20 = vand.u32 4294901760, %v3218_v4 }
 0x2d6   : > { %7034 = vmatprep.subr.mxu1 %v10066_v18  ;;  %3878 = vmatprep.mubr.f32.mxu1 %v13311_v32  ;;  %v13315_v18 = vand.u32 4294901760, %v10315_v26  ;;  %v10748_v26 = vand.u32 4294901760, %v3206_v30  ;;  %v10847_v32 = vand.u32 4294901760, %v3202_v21 }
 0x2d7   : > { %7005 = vmatpush3.msra.mxu0 %v13312_v38  ;;  %7035 = vmatpush3.msra.mxu1 %v10077_v47  ;;  %v13316_v47 = vand.u32 4294901760, %v10342_v53  ;;  %v3221_v53 = vld [vmem:[%s12360_s1 + $0x1f0] sm:$0xff]  ;;  %13335 = vst [vmem:[#allocation63_spill] sm:$0xff] %v10845_v20 }
 0x2d8   : > { %3882 = vmatmul.mubr.f32.gmra.mxu1 %v13313_v43  ;;  %7006 = vmatprep.subr.mxu0 %v13314_v50  ;;  %v10775_v55 = vand.u32 4294901760, %v3221_v53  ;;  %13336 = vst [vmem:[#allocation49_spill] sm:$0xff] %v10847_v32  ;;  %v13337_v38 = vld [vmem:[#allocation50_spill] sm:$0xff]  ;;  %v13338_v43 = vand.u32 4294901760, %v10525_v59 }
 0x2d9   : > { %7036 = vmatprep.subr.mxu1 %v10079_v48  ;;  %7007 = vmatpush3.msra.mxu0 %v13315_v18  ;;  %v13317_v48 = vand.u32 4294901760, %v10358_v35  ;;  %v13322_v35 = vand.u32 4294901760, %v10424_v9  ;;  %v10790_v9 = vsub.f32 %v3205_v58, %v10761_v34  ;;  %v10866_v18 = vand.u32 4294901760, %v3217_v13 }
 0x2da   : > { %7037 = vmatpush3.msra.mxu1 %v10081_v31  ;;  %7008 = vmatprep.subr.mxu0 %v13316_v47  ;;  %v10753_v31 = vand.u32 4294901760, %v3222_v36  ;;  %13323 = vst [vmem:[#allocation58_spill] sm:$0xff] %v10775_v55  ;;  %v10816_v57 = vsub.f32 %v3221_v53, %v10775_v55  ;;  %v13342_v47 = vand.u32 4294901760, %v10555_v19  ;;  %v13343_v53 = vld [vmem:[#allocation53_spill] sm:$0xff] }
 0x2db   : > { %7038 = vmatprep.subr.mxu1 %v10097_v27  ;;  %7009 = vmatpush3.msra.mxu0 %v13317_v48  ;;  %v13319_v27 = vand.u32 4294901760, %v13279_v60  ;;  %v10792_v60 = vand.u32 4294901760, %v3220_v49  ;;  %13340 = vst [vmem:[#allocation51_spill] sm:$0xff] %v10866_v18 }
 0x2dc   : > { %7039 = vmatpush3.msra.mxu1 %v10099_v63  ;;  %7010 = vmatprep.subr.mxu0 %v13318_v37  ;;  %v13321_v63 = vand.u32 4294901760, %v13281_v6  ;;  %v10784_v25 = vsub.f32 %v3222_v36, %v10753_v31  ;;  %v12682_v51 = vand.u32 4294901760, %v10816_v57  ;;  %v3216_v36 = vld [vmem:[%s12360_s1 + $0x1c8] sm:$0xff] }
 0x2dd   : > { %7040 = vmatprep.subr.mxu1 %v10102_v0  ;;  %7011 = vmatpush3.msra.mxu0 %v13319_v27  ;;  %v10773_v0 = vsub.f32 %v3206_v30, %v10748_v26  ;;  %13326 = vst [vmem:[#allocation46_spill] sm:$0xff] %v10792_v60  ;;  %v10837_v45 = vsub.f32 %v3220_v49, %v10792_v60  ;;  %v13344_v27 = vand.u32 4294901760, %v10573_v61 }
 0x2de   : > { %7041 = vmatpush3.msra.mxu1 %v10124_v10  ;;  %7012 = vmatprep.subr.mxu0 %v13321_v63  ;;  %v3204_v10 = vld [vmem:[%s12360_s1 + $0x168] sm:$0xff]  ;;  %v12684_v2 = vand.u32 4294901760, %v10784_v25  ;;  %v3199_v63 = vld [vmem:[%s12360_s1 + $0x140] sm:$0xff]  ;;  %v10902_v49 = vsub.f32 %v3218_v4, %v10845_v20 }
 0x2df   : > { %7042 = vmatprep.subr.mxu1 %v10130_v16  ;;  %7013 = vmatpush3.msra.mxu0 %v13322_v35  ;;  %v13325_v16 = vand.u32 4294901760, %v10453_v39  ;;  %v10800_v6 = vand.u32 4294901760, %v3204_v10  ;;  %v13329_v39 = vand.u32 4294901760, %v10486_v11  ;;  %v12679_v37 = vand.u32 4294901760, %v10837_v45  ;;  %v13345_v35 = vld [vmem:[#allocation54_spill] sm:$0xff]  ;;  %v13350_v4 = vld [vmem:[#allocation67_spill] sm:$0xff] }
 0x2e0   : > { %7043 = vmatpush3.msra.mxu1 %v10153_v56  ;;  %7014 = vmatprep.subr.mxu0 %v13324_v1  ;;  %v3219_v56 = vld [vmem:[%s12360_s1 + $0x1e0] sm:$0xff]  ;;  %v10864_v30 = vsub.f32 %v10784_v25, %v12684_v2 }
 0x2e1   : > { %7044 = vmatprep.subr.mxu1 %v10159_v28  ;;  %7015 = vmatpush3.msra.mxu0 %v13325_v16  ;;  %13328 = vst [vmem:[#allocation60_spill] sm:$0xff] %v10800_v6  ;;  %v3203_v28 = vld [vmem:[%s12360_s1 + $0x160] sm:$0xff]  ;;  %v10821_v11 = vand.u32 4294901760, %v3219_v56  ;;  %v10911_v16 = vsub.f32 %v10816_v57, %v12682_v51  ;;  %v13360_v51 = vld [vmem:[#allocation70_spill] sm:$0xff] }
 0x2e2   : > { %7045 = vmatpush3.msra.mxu1 %v13278_v8  ;;  %7016 = vmatprep.subr.mxu0 %v13327_v7  ;;  %v12683_v8 = vand.u32 4294901760, %v10773_v0  ;;  %v10827_v42 = vand.u32 4294901760, %v3203_v28 }
 0x2e3   : > { %7046 = vmatprep.subr.mxu1 %v13280_v44  ;;  %7017 = vmatpush3.msra.mxu0 %v13329_v39  ;;  %v13330_v44 = vand.u32 4294901760, %v10498_v23  ;;  %13331 = vst [vmem:[#allocation47_spill] sm:$0xff] %v10821_v11  ;;  %v3201_v23 = vld [vmem:[%s12360_s1 + $0x150] sm:$0xff]  ;;  %v3198_v39 = vld [vmem:[%s12360_s1 + $0x138] sm:$0xff] }
 0x2e4   : > { %7047 = vmatpush3.msra.mxu1 %v13282_v12  ;;  %13333 = vst [vmem:[#allocation48_spill] sm:$0xff] %v10827_v42  ;;  %v12681_v12 = vand.u32 4294901760, %v10790_v9  ;;  %v10855_v50 = vsub.f32 %v10773_v0, %v12683_v8  ;;  %v10868_v59 = vand.u32 4294901760, %v3201_v23  ;;  %v10883_v58 = vsub.f32 %v3203_v28, %v10827_v42  ;;  %v3215_v28 = vld [vmem:[%s12360_s1 + $0x1c0] sm:$0xff]  ;;  %4048 = vmatprep.mubr.f32.mxu0 %v13350_v4 }
 0x2e5   : > { %7018 = vmatprep.subr.mxu0 %v13330_v44  ;;  %7048 = vmatprep.subr.mxu1 %v13283_v41  ;;  %v10843_v41 = vsub.f32 %v3204_v10, %v10800_v6  ;;  %v13346_v10 = vld [vmem:[#allocation69_spill] sm:$0xff] }
 0x2e6   : > { %7019 = vmatpush3.msra.mxu0 %v13332_v15  ;;  %7049 = vmatpush3.msra.mxu1 %v13285_v52  ;;  %v13339_v52 = vand.u32 4294901760, %v10532_v14  ;;  %13341 = vst [vmem:[#allocation52_spill] sm:$0xff] %v10868_v59  ;;  %v10877_v14 = vsub.f32 %v3219_v56, %v10821_v11  ;;  %v10888_v48 = vsub.f32 %v10790_v9, %v12681_v12  ;;  %v13347_v1 = vand.u32 4294901760, %v13346_v10 }
 0x2e7   : > { %7020 = vmatprep.subr.mxu0 %v13334_v22  ;;  %7050 = vmatprep.subr.mxu1 %v13337_v38  ;;  %v12680_v19 = vand.u32 4294901760, %v10843_v41  ;;  %v10913_v56 = vand.u32 4294901760, %v3216_v36  ;;  %v10927_v15 = vsub.f32 %v3201_v23, %v10868_v59  ;;  %v10933_v38 = vld [vmem:[%s12360_s1 + $0x1b8] sm:$0xff]  ;;  %v10944_v23 = vsub.f32 %v10837_v45, %v12679_v37 }
 0x2e8   : > { %7021 = vmatpush3.msra.mxu0 %v13338_v43  ;;  %7051 = vmatpush3.msra.mxu1 %v13287_v54  ;;  %v3200_v54 = vld [vmem:[%s12360_s1 + $0x148] sm:$0xff]  ;;  %v12685_v22 = vand.u32 4294901760, %v10877_v14  ;;  %v10936_v43 = vsub.f32 %v3217_v13, %v10866_v18  ;;  %v10956_v10 = vand.u32 4294901760, %v3215_v28 }
 0x2e9   : > { %7022 = vmatprep.subr.mxu0 %v13339_v52  ;;  %7052 = vmatprep.subr.mxu1 %v13288_v33  ;;  %v10895_v33 = vsub.f32 %v3202_v21, %v10847_v32  ;;  %13348 = vst [vmem:[#allocation44_spill] sm:$0xff] %v10913_v56  ;;  %v10915_v7 = vand.u32 4294901760, %v3200_v54  ;;  %v13351_v21 = vld [vmem:[#allocation55_spill] sm:$0xff]  ;;  %13352 = vst [vmem:[#allocation59_spill] sm:$0xff] %v10927_v15  ;;  %v13354_v52 = vld [vmem:[#allocation68_spill] sm:$0xff]  ;;  %v10954_v13 = vsub.f32 %v10843_v41, %v12680_v19 }
 0x2ea   : > { %7023 = vmatpush3.msra.mxu0 %v13342_v47  ;;  %7053 = vmatpush3.msra.mxu1 %v13343_v53  ;;  %13353 = vst [vmem:[#allocation61_spill] sm:$0xff] %v10936_v43  ;;  %v13355_v47 = vld [vmem:[#allocation56_spill] sm:$0xff]  ;;  %13356 = vst [vmem:[#allocation62_spill] sm:$0xff] %v10956_v10  ;;  %v10971_v19 = vand.u32 4294901760, %v10933_v38  ;;  %v10979_v8 = vsub.f32 %v10877_v14, %v12685_v22  ;;  %v10989_v53 = vsub.f32 %v3216_v36, %v10913_v56 }
 0x2eb   : > { %7024 = vmatprep.subr.mxu0 %v13344_v27  ;;  %7054 = vmatprep.subr.mxu1 %v13345_v35  ;;  %13349 = vst [vmem:[#allocation57_spill] sm:$0xff] %v10915_v7  ;;  %v10946_v27 = vand.u32 4294901760, %v3199_v63  ;;  %v12686_v35 = vand.u32 4294901760, %v10883_v58  ;;  %v10968_v37 = vsub.f32 %v3200_v54, %v10915_v7  ;;  %v12688_v12 = vand.u32 4294901760, %v10895_v33 }
 0x2ec   : > { %7025 = vmatpush3.msra.mxu0 %v13347_v1  ;;  %7055 = vmatpush3.msra.mxu1 %v13351_v21  ;;  %v12687_v1 = vand.u32 4294901760, %v10902_v49  ;;  %v10959_v21 = vand.u32 4294901760, %v3198_v39  ;;  %13359 = vst [vmem:[#allocation50_spill] sm:$0xff] %v10971_v19  ;;  %v12695_v54 = vand.u32 4294901760, %v10936_v43  ;;  %13361 = vst [vmem:[#allocation53_spill] sm:$0xff] %v10989_v53  ;;  %v11019_v2 = vsub.f32 %v3215_v28, %v10956_v10  ;;  %v3212_v28 = vld [vmem:[%s12360_s1 + $0x1a8] sm:$0xff] }
 0x2ed   : > { %4050 = vmatmul.mubr.f32.vlgmr.msra.gmra.mxu0 %v13354_v52  ;;  %7056 = vmatprep.subr.mxu1 %v13355_v47  ;;  %v3197_v47 = vld [vmem:[%s12360_s1 + $0x130] sm:$0xff]  ;;  %13358 = vst [vmem:[#allocation65_spill] sm:$0xff] %v10968_v37  ;;  %v10998_v61 = vsub.f32 %v3199_v63, %v10946_v27  ;;  %v11003_v44 = vsub.f32 %v10883_v58, %v12686_v35  ;;  %v3195_v35 = vld [vmem:[%s12360_s1 + $0x120] sm:$0xff] }
 0x2ee   : > { %7070 = vmatprep.subr.mxu0 %v10753_v31  ;;  %7057 = vmatpush3.msra.mxu1 %v13294_v40  ;;  %13357 = vst [vmem:[#allocation64_spill] sm:$0xff] %v10959_v21  ;;  %v3196_v40 = vld [vmem:[%s12360_s1 + $0x128] sm:$0xff]  ;;  %v11005_v36 = vand.u32 4294901760, %v3197_v47  ;;  %v11013_v22 = vsub.f32 %v10902_v49, %v12687_v1  ;;  %v11016_v63 = vsub.f32 %v3198_v39, %v10959_v21  ;;  %13365 = vst [vmem:[#allocation55_spill] sm:$0xff] %v11019_v2 }
 0x2ef   : > { %7071 = vmatpush3.msra.mxu0 %v10748_v26  ;;  %7058 = vmatprep.subr.mxu1 %v13296_v17  ;;  %v10984_v17 = vld [vmem:[%s12360_s1 + $0x1b0] sm:$0xff]  ;;  %13362 = vst [vmem:[#allocation54_spill] sm:$0xff] %v10998_v61  ;;  %v11037_v39 = vand.u32 4294901760, %v3196_v40 }
 0x2f0   : > { %7072 = vmatprep.subr.mxu0 %v10775_v55  ;;  %4055 = vmatprep.mubr.f32.mxu0 %v13360_v51  ;;  %13363 = vst [vmem:[#allocation69_spill] sm:$0xff] %v11005_v36  ;;  %13364 = vst [vmem:[#allocation67_spill] sm:$0xff] %v11016_v63  ;;  %v11032_v1 = vand.u32 4294901760, %v10984_v17 }
 0x2f1   : > { %7059 = vmatpush3.msra.mxu1 %v13297_v46  ;;  %7073 = vmatpush3.msra.mxu0 %v10761_v34  ;;  %13367 = vst [vmem:[#allocation56_spill] sm:$0xff] %v11037_v39  ;;  %v11057_v46 = vld [vmem:[%s12360_s1 + $0x1a0] sm:$0xff]  ;;  %v11086_v55 = vsub.f32 %v3196_v40, %v11037_v39  ;;  %v13374_v40 = vand.u32 4294901760, %v10989_v53 }
 0x2f2   : > { %4057 = vmatmul.mubr.f32.gmra.mxu0 %v10613_v24  ;;  %7060 = vmatprep.subr.mxu1 %v13299_v5  ;;  %v11029_v5 = vsub.f32 %v10895_v33, %v12688_v12  ;;  %13366 = vst [vmem:[#allocation68_spill] sm:$0xff] %v11032_v1  ;;  %v11046_v12 = vsub.f32 %v10936_v43, %v12695_v54 }
 0x2f3   : > { %7074 = vmatprep.subr.mxu0 %v10792_v60  ;;  %7061 = vmatpush3.msra.mxu1 %v10449_v3  ;;  %v13368_v60 = vand.u32 4294901760, %v10927_v15  ;;  %v11063_v54 = vsub.f32 %v3197_v47, %v11005_v36  ;;  %v11065_v3 = vand.u32 4294901760, %v3195_v35  ;;  %v3194_v47 = vld [vmem:[%s12360_s1 + $0x118] sm:$0xff] }
 0x2f4   : > { %7075 = vmatpush3.msra.mxu0 %v10800_v6  ;;  %7062 = vmatprep.subr.mxu1 %v13302_v29  ;;  %v11071_v6 = vand.u32 4294901760, %v3212_v28  ;;  %v11076_v29 = vsub.f32 %v10933_v38, %v10971_v19  ;;  %v11094_v38 = vand.u32 4294901760, %v11057_v46 }
 0x2f5   : > { %v11051_v34 = vsub.f32 %v10927_v15, %v13368_v60  ;;  %7076 = vmatprep.subr.mxu0 %v10821_v11  ;;  %7063 = vmatpush3.msra.mxu1 %v13304_v62  ;;  %13369 = vst [vmem:[#allocation70_spill] sm:$0xff] %v11065_v3  ;;  %v3132_v11 = vld [vmem:[%s7855_s19 + $0x18] sm:$0xff]  ;;  %v13371_v62 = vand.u32 4294901760, %v10968_v37  ;;  %v13373_v15 = vand.u32 4294901760, %v10864_v30  ;;  %v13375_v30 = vand.u32 4294901760, %v10855_v50 }
 0x2f6   : > { %4159 = vmatprep.mubr.f32.mxu1 %v13350_v4  ;;  %7077 = vmatpush3.msra.mxu0 %v10827_v42  ;;  %13370 = vst [vmem:[#allocation71_spill] sm:$0xff] %v11071_v6  ;;  %13372 = vst [vmem:[#allocation72_spill] sm:$0xff] %v11094_v38  ;;  %v3131_v42 = vld [vmem:[%s7855_s19 + $0x10] sm:$0xff]  ;;  %v13376_v4 = vand.u32 4294901760, %v10998_v61  ;;  %v3150_v50 = vsel %vm3146_vm4, %v3132_v11, 0.0 }
 0x2f7   : > { %4161 = vmatmul.mubr.f32.vlgmr.msra.gmra.mxu1 %v13354_v52  ;;  %7078 = vmatprep.subr.mxu0 %v10845_v20  ;;  %v11091_v60 = vsub.f32 %v10968_v37, %v13371_v62  ;;  %v11105_v20 = vsub.f32 %v10989_v53, %v13374_v40  ;;  %v3210_v62 = vld [vmem:[%s12360_s1 + $0x198] sm:$0xff]  ;;  %v11122_v52 = vand.u32 4294901760, %v3194_v47  ;;  %v3193_v11 = vld [vmem:[%s12360_s1 + $0x110] sm:$0xff]  ;;  %v13387_v53 = vand.u32 4294901760, %v10954_v13 }
 0x2f8   : > { %7108 = vmatprep.subr.mxu1 %v13373_v15  ;;  %7079 = vmatpush3.msra.mxu0 %v10847_v32  ;;  %v11115_v15 = vsub.f32 %v3195_v35, %v11065_v3  ;;  %v11120_v40 = vsub.f32 %v10998_v61, %v13376_v4  ;;  %v11127_v32 = vld [vmem:[%s12360_s1 + $0x190] sm:$0xff]  ;;  %v13380_v35 = vand.u32 4294901760, %v11019_v2  ;;  %v11142_v61 = vsub.f32 %v10984_v17, %v11032_v1  ;;  %v3137_v17 = vld [vmem:[%s7855_s19 + $0x40] sm:$0xff] }
 0x2f9   : > { %7109 = vmatpush3.msra.mxu1 %v13375_v30  ;;  %7080 = vmatprep.subr.mxu0 %v10866_v18  ;;  %13377 = vst [vmem:[#allocation73_spill] sm:$0xff] %v11122_v52  ;;  %v13379_v30 = vand.u32 4294901760, %v10911_v16  ;;  %v3149_v16 = vsel %vm3146_vm4, %v3131_v42, 0.0  ;;  %v11154_v18 = vand.u32 4294901760, %v3210_v62  ;;  %v4459_v42 = vand.u32 4294901760, %v11105_v20  ;;  %v3208_v20 = vld [vmem:[%s12360_s1 + $0x188] sm:$0xff] }
 0x2fa   : > { %4166 = vmatprep.mubr.f32.mxu1 %v13360_v51  ;;  %v11137_v4 = vsub.f32 %v11019_v2, %v13380_v35  ;;  %v3138_v51 = vld [vmem:[%s7855_s19 + $0x48] sm:$0xff]  ;;  %7081 = vmatpush3.msra.mxu0 %v10868_v59  ;;  %v11158_v2 = vsub.f32 %v3212_v28, %v11071_v6  ;;  %v13382_v59 = vand.u32 4294901760, %v11016_v63  ;;  %v11171_v35 = vand.u32 4294901760, %v3150_v50 }
 0x2fb   : > { %7110 = vmatprep.subr.mxu1 %v13379_v30  ;;  %v13381_v30 = vand.u32 4294901760, %v10888_v48  ;;  %4168 = vmatmul.mubr.f32.gmra.mxu1 %v10613_v24  ;;  %v13385_v28 = vand.u32 4294901760, %v10944_v23  ;;  %v13391_v13 = vand.u32 4294901760, %v11063_v54  ;;  %v3155_v43 = vsel %vm3146_vm4, %v3137_v17, 0.0 }
 0x2fc   : > { %7082 = vmatprep.subr.mxu0 %v10913_v56  ;;  %v11166_v48 = vsub.f32 %v11016_v63, %v13382_v59  ;;  %13384 = vst [vmem:[#allocation75_spill] sm:$0xff] %v11171_v35  ;;  %v11178_v56 = vand.u32 4294901760, %v3193_v11  ;;  %v11183_v59 = vand.u32 4294901760, %v3149_v16  ;;  %v3156_v63 = vsel %vm3146_vm4, %v3138_v51, 0.0  ;;  %v3192_v51 = vld [vmem:[%s12360_s1 + $0x108] sm:$0xff]  ;;  %4525 = vmatprep.mubr.f32.mxu1 %v11171_v35 }
 0x2fd   : > { %7111 = vmatpush3.msra.mxu1 %v13381_v30  ;;  %v11169_v30 = vand.u32 4294901760, %v11127_v32  ;;  %7083 = vmatpush3.msra.mxu0 %v10915_v7  ;;  %v4466_v23 = vand.u32 4294901760, %v11137_v4  ;;  %v11197_v7 = vsub.f32 %v3194_v47, %v11122_v52  ;;  %v11209_v4 = vsub.f32 %v11063_v54, %v13391_v13 }
 0x2fe   : > { %7112 = vmatprep.subr.mxu1 %v13385_v28  ;;  %13386 = vst [vmem:[#allocation76_spill] sm:$0xff] %v11183_v59  ;;  %7084 = vmatprep.subr.mxu0 %v10956_v10  ;;  %v13388_v28 = vand.u32 4294901760, %v11076_v29  ;;  %v11214_v47 = vsub.f32 %v11057_v46, %v11094_v38  ;;  %v13392_v10 = vand.u32 4294901760, %v11003_v44  ;;  %v11225_v13 = vsub.f32 %v3150_v50, %v11171_v35  ;;  %v13445_v35 = vld [vmem:[#allocation69_spill] sm:$0xff] }
 0x2ff   : > { %13383 = vst [vmem:[#allocation74_spill] sm:$0xff] %v11169_v30  ;;  %7113 = vmatpush3.msra.mxu1 %v13387_v53  ;;  %13389 = vst [vmem:[#allocation77_spill] sm:$0xff] %v11197_v7  ;;  %v13390_v53 = vand.u32 4294901760, %v10979_v8  ;;  %7085 = vmatpush3.msra.mxu0 %v10946_v27  ;;  %v4361_v8 = vand.u32 4294901760, %v11166_v48  ;;  %v13394_v46 = vand.u32 4294901760, %v11013_v22  ;;  %v11233_v17 = vsub.f32 %v3193_v11, %v11178_v56 }
 0x300   : > { %v11194_v24 = vsub.f32 %v11076_v29, %v13388_v28  ;;  %7086 = vmatprep.subr.mxu0 %v10971_v19  ;;  %v11227_v28 = vand.u32 4294901760, %v3156_v63  ;;  %v11235_v44 = vand.u32 4294901760, %v3192_v51  ;;  %v11241_v48 = vsub.f32 %v3149_v16, %v11183_v59  ;;  %v3191_v16 = vld [vmem:[%s12360_s1 + $0x100] sm:$0xff] }
 0x301   : > { %7114 = vmatprep.subr.mxu1 %v13390_v53  ;;  %v11222_v53 = vand.u32 4294901760, %v3208_v20  ;;  %7087 = vmatpush3.msra.mxu0 %v10959_v21  ;;  %v11244_v50 = vsub.f32 %v3210_v62, %v11154_v18  ;;  %v13395_v22 = vand.u32 4294901760, %v11029_v5  ;;  %v11257_v19 = vand.u32 4294901760, %v3155_v43 }
 0x302   : > { %7115 = vmatpush3.msra.mxu1 %v13392_v10  ;;  %13393 = vst [vmem:[#allocation78_spill] sm:$0xff] %v11227_v28  ;;  %v3207_v10 = vld [vmem:[%s12360_s1 + $0x180] sm:$0xff]  ;;  %7088 = vmatprep.subr.mxu0 %v11032_v1  ;;  %v4473_v11 = vand.u32 4294901760, %v11194_v24  ;;  %v13398_v62 = vand.u32 4294901760, %v11046_v12  ;;  %v4368_v5 = vand.u32 4294901760, %v11209_v4  ;;  %v13399_v24 = vand.u32 4294901760, %v11158_v2 }
 0x303   : > { %7116 = vmatprep.subr.mxu1 %v13394_v46  ;;  %v13396_v46 = vand.u32 4294901760, %v11142_v61  ;;  %13397 = vst [vmem:[#allocation79_spill] sm:$0xff] %v11257_v19  ;;  %7089 = vmatpush3.msra.mxu0 %v11005_v36  ;;  %v11269_v21 = vsub.f32 %v11127_v32, %v11169_v30  ;;  %v13400_v1 = vand.u32 4294901760, %v11051_v34  ;;  %v11274_v12 = vand.u32 4294901760, %v3207_v10 }
 0x304   : > { %7117 = vmatpush3.msra.mxu1 %v13395_v22  ;;  %v4486_v22 = vsub.f32 %v11158_v2, %v13399_v24  ;;  %7090 = vmatprep.subr.mxu0 %v11071_v6  ;;  %v11279_v36 = vsub.f32 %v3156_v63, %v11227_v28  ;;  %v11283_v32 = vsub.f32 %v3192_v51, %v11235_v44  ;;  %v11285_v24 = vand.u32 4294901760, %v3191_v16 }
 0x305   : > { %v4479_v37 = vsub.f32 %v11142_v61, %v13396_v46  ;;  %7118 = vmatprep.subr.mxu1 %v13398_v62  ;;  %7091 = vmatpush3.msra.mxu0 %v11037_v39  ;;  %v13403_v46 = vand.u32 4294901760, %v11091_v60  ;;  %v13404_v63 = vand.u32 4294901760, %v11086_v55  ;;  %v11297_v51 = vsub.f32 %v3155_v43, %v11257_v19 }
 0x306   : > { %7119 = vmatpush3.msra.mxu1 %v13400_v1  ;;  %13401 = vst [vmem:[#allocation80_spill] sm:$0xff] %v11283_v32  ;;  %13402 = vst [vmem:[#allocation81_spill] sm:$0xff] %v11285_v24  ;;  %7092 = vmatprep.subr.mxu0 %v11094_v38  ;;  %v11300_v62 = vsub.f32 %v3208_v20, %v11222_v53  ;;  %v4487_v60 = vand.u32 4294901760, %v4486_v22  ;;  %v13407_v43 = vand.u32 4294901760, %v11225_v13 }
 0x307   : > { %7120 = vmatprep.subr.mxu1 %v4459_v42  ;;  %v4374_v42 = vsub.f32 %v11086_v55, %v13404_v63  ;;  %7093 = vmatpush3.msra.mxu0 %v11065_v3  ;;  %v4480_v1 = vand.u32 4294901760, %v4479_v37  ;;  %v13406_v63 = vand.u32 4294901760, %v11120_v40  ;;  %v11318_v4 = vsub.f32 %v3207_v10, %v11274_v12 }
 0x308   : > { %7121 = vmatpush3.msra.mxu1 %v13403_v46  ;;  %v13405_v46 = vand.u32 4294901760, %v11214_v47  ;;  %7094 = vmatprep.subr.mxu0 %v11154_v18  ;;  %v4272_v20 = vsub.f32 %v11225_v13, %v13407_v43  ;;  %v11322_v40 = vsub.f32 %v3191_v16, %v11285_v24  ;;  %v13412_v43 = vand.u32 4294901760, %v11244_v50 }
 0x309   : > { %7122 = vmatprep.subr.mxu1 %v4466_v23  ;;  %v13408_v23 = vand.u32 4294901760, %v11115_v15  ;;  %13409 = vst [vmem:[#allocation82_spill] sm:$0xff] %v11318_v4  ;;  %7095 = vmatpush3.msra.mxu0 %v11122_v52  ;;  %v4375_v10 = vand.u32 4294901760, %v4374_v42 }
 0x30a   : > { %v4493_v34 = vsub.f32 %v11214_v47, %v13405_v46  ;;  %7123 = vmatpush3.msra.mxu1 %v13406_v63  ;;  %13410 = vst [vmem:[#allocation83_spill] sm:$0xff] %v11322_v40  ;;  %v13411_v46 = vand.u32 4294901760, %v11241_v48  ;;  %v4500_v38 = vsub.f32 %v11244_v50, %v13412_v43  ;;  %7096 = vmatprep.subr.mxu0 %v11169_v30  ;;  %v13414_v43 = vand.u32 4294901760, %v11269_v21 }
 0x30b   : > { %v4381_v37 = vsub.f32 %v11115_v15, %v13408_v23  ;;  %7124 = vmatprep.subr.mxu1 %v4473_v11  ;;  %v13413_v11 = vand.u32 4294901760, %v11197_v7  ;;  %7097 = vmatpush3.msra.mxu0 %v11178_v56  ;;  %v4273_v42 = vand.u32 4294901760, %v4272_v20 }
 0x30c   : > { %v4278_v63 = vsub.f32 %v11241_v48, %v13411_v46  ;;  %7125 = vmatpush3.msra.mxu1 %v4361_v8  ;;  %v4494_v46 = vand.u32 4294901760, %v4493_v34  ;;  %v4507_v23 = vsub.f32 %v11269_v21, %v13414_v43  ;;  %7098 = vmatprep.subr.mxu0 %v11222_v53  ;;  %v4501_v52 = vand.u32 4294901760, %v4500_v38 }
 0x30d   : > { %v4388_v22 = vsub.f32 %v11197_v7, %v13413_v11  ;;  %7126 = vmatprep.subr.mxu1 %v4480_v1  ;;  %v4382_v30 = vand.u32 4294901760, %v4381_v37  ;;  %v13415_v11 = vand.u32 4294901760, %v11279_v36  ;;  %7099 = vmatpush3.msra.mxu0 %v11235_v44  ;;  %v13416_v43 = vand.u32 4294901760, %v11233_v17 }
 0x30e   : > { %7127 = vmatpush3.msra.mxu1 %v4368_v5  ;;  %v4279_v34 = vand.u32 4294901760, %v4278_v63  ;;  %7100 = vmatprep.subr.mxu0 %v11274_v12  ;;  %v13417_v37 = vand.u32 4294901760, %v11297_v51  ;;  %v4508_v38 = vand.u32 4294901760, %v4507_v23  ;;  %v13419_v63 = vand.u32 4294901760, %v11283_v32 }
 0x30f   : > { %v4287_v16 = vsub.f32 %v11279_v36, %v13415_v11  ;;  %7128 = vmatprep.subr.mxu1 %v4487_v60  ;;  %v4395_v8 = vsub.f32 %v11233_v17, %v13416_v43  ;;  %v4389_v20 = vand.u32 4294901760, %v4388_v22  ;;  %v13418_v60 = vand.u32 4294901760, %v11300_v62  ;;  %7101 = vmatpush3.msra.mxu0 %v11285_v24 }
 0x310   : > { %7129 = vmatpush3.msra.mxu1 %v4375_v10  ;;  %v4293_v11 = vsub.f32 %v11297_v51, %v13417_v37  ;;  %v4402_v43 = vsub.f32 %v11283_v32, %v13419_v63  ;;  %4274 = vmatprep.mubr.f32.mxu0 %v4273_v42  ;;  %v13420_v22 = vand.u32 4294901760, %v11318_v4  ;;  %v13424_v42 = vld [vmem:[#allocation59_spill] sm:$0xff] }
 0x311   : > { %v4514_v1 = vsub.f32 %v11300_v62, %v13418_v60  ;;  %7130 = vmatprep.subr.mxu1 %v4494_v46  ;;  %v4288_v10 = vand.u32 4294901760, %v4287_v16  ;;  %4280 = vmatmul.mubr.f32.vlgmr.msra.gmra.mxu0 %v4279_v34  ;;  %v4396_v37 = vand.u32 4294901760, %v4395_v8  ;;  %v13421_v60 = vand.u32 4294901760, %v11322_v40  ;;  %v13423_v8 = vld [vmem:[#allocation58_spill] sm:$0xff]  ;;  %v13426_v34 = vld [vmem:[#allocation53_spill] sm:$0xff]  ;;  %v13431_v63 = vld [vmem:[#allocation47_spill] sm:$0xff] }
 0x312   : > { %7131 = vmatpush3.msra.mxu1 %v4382_v30  ;;  %v4521_v5 = vsub.f32 %v11318_v4, %v13420_v22  ;;  %7146 = vmatprep.subr.mxu0 %v10784_v25  ;;  %v4294_v23 = vand.u32 4294901760, %v4293_v11  ;;  %v4403_v30 = vand.u32 4294901760, %v4402_v43  ;;  %v13429_v11 = vld [vmem:[#allocation60_spill] sm:$0xff]  ;;  %v13432_v43 = vld [vmem:[#allocation54_spill] sm:$0xff]  ;;  %v13434_v22 = vld [vmem:[#allocation63_spill] sm:$0xff] }
 0x313   : > { %7132 = vmatprep.subr.mxu1 %v4501_v52  ;;  %v4409_v46 = vsub.f32 %v11322_v40, %v13421_v60  ;;  %v4515_v24 = vand.u32 4294901760, %v4514_v1  ;;  %7147 = vmatpush3.msra.mxu0 %v10773_v0  ;;  %v13425_v1 = vld [vmem:[#allocation45_spill] sm:$0xff] }
 0x314   : > { %7133 = vmatpush3.msra.mxu1 %v4389_v20  ;;  %7148 = vmatprep.subr.mxu0 %v10816_v57  ;;  %v4522_v16 = vand.u32 4294901760, %v4521_v5  ;;  %v13427_v5 = vld [vmem:[#allocation46_spill] sm:$0xff]  ;;  %v13428_v20 = vld [vmem:[#allocation65_spill] sm:$0xff] }
 0x315   : > { %7134 = vmatprep.subr.mxu1 %v4508_v38  ;;  %4289 = vmatprep.mubr.f32.mxu0 %v4288_v10  ;;  %v4410_v52 = vand.u32 4294901760, %v4409_v46  ;;  %v13430_v38 = vld [vmem:[#allocation55_spill] sm:$0xff]  ;;  %v13433_v10 = vld [vmem:[#allocation48_spill] sm:$0xff]  ;;  %v13436_v60 = vld [vmem:[#allocation49_spill] sm:$0xff] }
 0x316   : > { %7135 = vmatpush3.msra.mxu1 %v4396_v37  ;;  %7149 = vmatpush3.msra.mxu0 %v10790_v9  ;;  %v13435_v37 = vld [vmem:[#allocation67_spill] sm:$0xff] }
 0x317   : > { %4295 = vmatmul.mubr.f32.gmra.mxu0 %v4294_v23  ;;  %7136 = vmatprep.subr.mxu1 %v4515_v24  ;;  %v13422_v24 = vld [vmem:[#allocation61_spill] sm:$0xff]  ;;  %v13437_v46 = vld [vmem:[#allocation51_spill] sm:$0xff]  ;;  %v13438_v23 = vld [vmem:[#allocation52_spill] sm:$0xff] }
 0x318   : > { %7150 = vmatprep.subr.mxu0 %v10837_v45  ;;  %7137 = vmatpush3.msra.mxu1 %v4403_v30  ;;  %v13439_v30 = vld [vmem:[#allocation44_spill] sm:$0xff] }
 0x319   : > { %7151 = vmatpush3.msra.mxu0 %v10843_v41  ;;  %7138 = vmatprep.subr.mxu1 %v4522_v16  ;;  %v13440_v16 = vld [vmem:[#allocation57_spill] sm:$0xff] }
 0x31a   : > { %7152 = vmatprep.subr.mxu0 %v10877_v14  ;;  %7139 = vmatpush3.msra.mxu1 %v4410_v52  ;;  %v13441_v52 = vld [vmem:[#allocation62_spill] sm:$0xff] }
 0x31b   : > { %7153 = vmatpush3.msra.mxu0 %v10883_v58  ;;  %4527 = vmatmul.mubr.f32.vlgmr.msra.gmra.mxu1 %v11183_v59  ;;  %v13444_v59 = vld [vmem:[#allocation68_spill] sm:$0xff] }
 0x31c   : > { %7154 = vmatprep.subr.mxu0 %v10902_v49  ;;  %7184 = vmatprep.subr.mxu1 %v10753_v31 }
 0x31d   : > { %7155 = vmatpush3.msra.mxu0 %v10895_v33  ;;  %7185 = vmatpush3.msra.mxu1 %v10748_v26 }
 0x31e   : > { %7156 = vmatprep.subr.mxu0 %v13422_v24  ;;  %7186 = vmatprep.subr.mxu1 %v13423_v8 }
 0x31f   : > { %4532 = vmatprep.mubr.f32.mxu1 %v11227_v28  ;;  %7157 = vmatpush3.msra.mxu0 %v13424_v42  ;;  %v13443_v28 = vld [vmem:[#allocation64_spill] sm:$0xff] }
 0x320   : > { %7187 = vmatpush3.msra.mxu1 %v13425_v1  ;;  %7158 = vmatprep.subr.mxu0 %v13426_v34 }
 0x321   : > { %4534 = vmatmul.mubr.f32.gmra.mxu1 %v11257_v19  ;;  %7188 = vmatprep.subr.mxu1 %v13427_v5  ;;  %v13442_v19 = vld [vmem:[#allocation50_spill] sm:$0xff] }
 0x322   : > { %7159 = vmatpush3.msra.mxu0 %v13428_v20  ;;  %7189 = vmatpush3.msra.mxu1 %v13429_v11 }
 0x323   : > { %7160 = vmatprep.subr.mxu0 %v13430_v38  ;;  %7190 = vmatprep.subr.mxu1 %v13431_v63 }
 0x324   : > { %7161 = vmatpush3.msra.mxu0 %v13432_v43  ;;  %7191 = vmatpush3.msra.mxu1 %v13433_v10 }
 0x325   : > { %7162 = vmatprep.subr.mxu0 %v11076_v29  ;;  %7192 = vmatprep.subr.mxu1 %v13434_v22 }
 0x326   : > { %7163 = vmatpush3.msra.mxu0 %v13435_v37  ;;  %7193 = vmatpush3.msra.mxu1 %v13436_v60 }
 0x327   : > { %7164 = vmatprep.subr.mxu0 %v11142_v61  ;;  %7194 = vmatprep.subr.mxu1 %v13437_v46 }
 0x328   : > { %7165 = vmatpush3.msra.mxu0 %v11063_v54  ;;  %7195 = vmatpush3.msra.mxu1 %v13438_v23 }
 0x329   : > { %7166 = vmatprep.subr.mxu0 %v11158_v2  ;;  %7196 = vmatprep.subr.mxu1 %v13439_v30 }
 0x32a   : > { %7167 = vmatpush3.msra.mxu0 %v11086_v55  ;;  %7197 = vmatpush3.msra.mxu1 %v13440_v16 }
 0x32b   : > { %7168 = vmatprep.subr.mxu0 %v11214_v47  ;;  %7198 = vmatprep.subr.mxu1 %v13441_v52 }
 0x32c   : > { %7169 = vmatpush3.msra.mxu0 %v11115_v15  ;;  %7199 = vmatpush3.msra.mxu1 %v10946_v27 }
 0x32d   : > { %7170 = vmatprep.subr.mxu0 %v11244_v50  ;;  %7200 = vmatprep.subr.mxu1 %v13442_v19 }
 0x32e   : > { %7171 = vmatpush3.msra.mxu0 %v11197_v7  ;;  %7201 = vmatpush3.msra.mxu1 %v13443_v28  ;;  %v13446_v7 = vld [vmem:[#allocation72_spill] sm:$0xff] }
 0x32f   : > { %7172 = vmatprep.subr.mxu0 %v11269_v21  ;;  %7202 = vmatprep.subr.mxu1 %v13444_v59 }
 0x330   : > { %7173 = vmatpush3.msra.mxu0 %v11233_v17  ;;  %7203 = vmatpush3.msra.mxu1 %v13445_v35 }
 0x331   : > { %7174 = vmatprep.subr.mxu0 %v11300_v62  ;;  %7204 = vmatprep.subr.mxu1 %v11071_v6  ;;  %v13447_v6 = vand.u32 4294901760, %v10784_v25  ;;  %v13453_v25 = vand.u32 4294901760, %v10837_v45  ;;  %v13459_v45 = vand.u32 4294901760, %v11241_v48 }
 0x332   : > { %7175 = vmatpush3.msra.mxu0 %v11283_v32  ;;  %7205 = vmatpush3.msra.mxu1 %v11037_v39  ;;  %v13448_v32 = vld [vmem:[#allocation73_spill] sm:$0xff]  ;;  %v13449_v39 = vand.u32 4294901760, %v10773_v0  ;;  %v13454_v0 = vand.u32 4294901760, %v10843_v41  ;;  %v13461_v41 = vand.u32 4294901760, %v10895_v33  ;;  %v13466_v33 = vand.u32 4294901760, %v13426_v34 }
 0x333   : > { %7176 = vmatprep.subr.mxu0 %v11318_v4  ;;  %7206 = vmatprep.subr.mxu1 %v13446_v7  ;;  %v13450_v4 = vld [vmem:[#allocation74_spill] sm:$0xff]  ;;  %v13472_v34 = vand.u32 4294901760, %v11142_v61  ;;  %v13474_v61 = vand.u32 4294901760, %v11158_v2  ;;  %v3251_v2 = vld [vmem:[%s12360_s1 + $0x2e0] sm:$0xff] }
 0x334   : > { %7177 = vmatpush3.msra.mxu0 %v11322_v40  ;;  %4669 = vmatprep.mubr.f32.mxu0 %v11225_v13  ;;  %v13451_v40 = vand.u32 4294901760, %v10816_v57  ;;  %v13456_v57 = vld [vmem:[#allocation81_spill] sm:$0xff] }
 0x335   : > { %7207 = vmatpush3.msra.mxu1 %v11065_v3  ;;  %4672 = vmatmul.mubr.f32.vlgmr.msra.gmra.mxu0 %v11241_v48  ;;  %v13452_v3 = vand.u32 4294901760, %v10790_v9  ;;  %v13457_v9 = vand.u32 4294901760, %v11225_v13  ;;  %v13464_v13 = vand.u32 4294901760, %v13424_v42  ;;  %v13468_v48 = vand.u32 4294901760, %v13430_v38 }
 0x336   : > { %7208 = vmatprep.subr.mxu1 %v11154_v18  ;;  %7222 = vmatprep.subr.mxu0 %v13447_v6  ;;  %v13455_v6 = vand.u32 4294901760, %v10877_v14  ;;  %v13462_v14 = vand.u32 4294901760, %v13422_v24  ;;  %v13470_v24 = vand.u32 4294901760, %v11076_v29  ;;  %v13471_v42 = vand.u32 4294901760, %v13435_v37  ;;  %v3237_v29 = vld [vmem:[%s12360_s1 + $0x270] sm:$0xff] }
 0x337   : > { %7209 = vmatpush3.msra.mxu1 %v13448_v32  ;;  %7223 = vmatpush3.msra.mxu0 %v13449_v39  ;;  %v13458_v39 = vand.u32 4294901760, %v10883_v58  ;;  %v13463_v58 = vand.u32 4294901760, %v11279_v36 }
 0x338   : > { %7210 = vmatprep.subr.mxu1 %v13450_v4  ;;  %7224 = vmatprep.subr.mxu0 %v13451_v40 }
 0x339   : > { %4678 = vmatprep.mubr.f32.mxu0 %v11279_v36  ;;  %7211 = vmatpush3.msra.mxu1 %v11178_v56  ;;  %v3238_v36 = vld [vmem:[%s12360_s1 + $0x278] sm:$0xff] }
 0x33a   : > { %7225 = vmatpush3.msra.mxu0 %v13452_v3  ;;  %7212 = vmatprep.subr.mxu1 %v11222_v53  ;;  %v13460_v3 = vand.u32 4294901760, %v10902_v49  ;;  %v13467_v49 = vand.u32 4294901760, %v13428_v20  ;;  %v3252_v20 = vld [vmem:[%s12360_s1 + $0x2e8] sm:$0xff] }
 0x33b   : > { %4681 = vmatmul.mubr.f32.gmra.mxu0 %v11297_v51  ;;  %7226 = vmatprep.subr.mxu0 %v13453_v25  ;;  %v11544_v37 = vand.u32 4294901760, %v3252_v20  ;;  %v13481_v25 = vand.u32 4294901760, %v11244_v50 }
 0x33c   : > { %7213 = vmatpush3.msra.mxu1 %v11235_v44  ;;  %7227 = vmatpush3.msra.mxu0 %v13454_v0 }
 0x33d   : > { %7214 = vmatprep.subr.mxu1 %v11274_v12  ;;  %7228 = vmatprep.subr.mxu0 %v13455_v6  ;;  %13478 = vst [vmem:[#allocation58_spill] sm:$0xff] %v11544_v37  ;;  %v3233_v6 = vld [vmem:[%s12360_s1 + $0x250] sm:$0xff] }
 0x33e   : > { %7215 = vmatpush3.msra.mxu1 %v13456_v57  ;;  %4785 = vmatprep.mubr.f32.mxu1 %v13457_v9  ;;  %v13483_v9 = vld [vmem:[#allocation77_spill] sm:$0xff] }
 0x33f   : > { %7229 = vmatpush3.msra.mxu0 %v13458_v39  ;;  %4789 = vmatmul.mubr.f32.vlgmr.msra.gmra.mxu1 %v13459_v45  ;;  %v13484_v39 = vand.u32 4294901760, %v13483_v9  ;;  %v13504_v9 = vld [vmem:[#allocation75_spill] sm:$0xff] }
 0x340   : > { %7230 = vmatprep.subr.mxu0 %v13460_v3  ;;  %7260 = vmatprep.subr.mxu1 %v10753_v31  ;;  %v13465_v31 = vand.u32 4294901760, %v11297_v51  ;;  %v13469_v51 = vand.u32 4294901760, %v13432_v43  ;;  %v13475_v43 = vand.u32 4294901760, %v11086_v55  ;;  %v3234_v55 = vld [vmem:[%s12360_s1 + $0x258] sm:$0xff]  ;;  %v13487_v3 = vand.u32 4294901760, %v11269_v21 }
 0x341   : > { %7231 = vmatpush3.msra.mxu0 %v13461_v41  ;;  %7261 = vmatpush3.msra.mxu1 %v10748_v26  ;;  %v3254_v26 = vld [vmem:[%s12360_s1 + $0x2f8] sm:$0xff]  ;;  %v11584_v45 = vand.u32 4294901760, %v3234_v55 }
 0x342   : > { %7232 = vmatprep.subr.mxu0 %v13462_v14  ;;  %7262 = vmatprep.subr.mxu1 %v13423_v8  ;;  %v11494_v40 = vand.u32 4294901760, %v3254_v26  ;;  %v11499_v8 = vand.u32 4294901760, %v3238_v36 }
 0x343   : > { %4796 = vmatprep.mubr.f32.mxu1 %v13463_v58  ;;  %7233 = vmatpush3.msra.mxu0 %v13464_v13  ;;  %13486 = vst [vmem:[#allocation46_spill] sm:$0xff] %v11584_v45  ;;  %v13490_v58 = vand.u32 4294901760, %v11233_v17 }
 0x344   : > { %7263 = vmatpush3.msra.mxu1 %v13425_v1  ;;  %7234 = vmatprep.subr.mxu0 %v13466_v33  ;;  %v3253_v1 = vld [vmem:[%s12360_s1 + $0x2f0] sm:$0xff]  ;;  %v11526_v38 = vsub.f32 %v3238_v36, %v11499_v8  ;;  %v13493_v36 = vld [vmem:[#allocation71_spill] sm:$0xff] }
 0x345   : > { %4800 = vmatmul.mubr.f32.gmra.mxu1 %v13465_v31  ;;  %7264 = vmatprep.subr.mxu1 %v13427_v5  ;;  %v13473_v5 = vand.u32 4294901760, %v11063_v54  ;;  %v3236_v54 = vld [vmem:[%s12360_s1 + $0x268] sm:$0xff] }
 0x346   : > { %7235 = vmatpush3.msra.mxu0 %v13467_v49  ;;  %7265 = vmatpush3.msra.mxu1 %v13429_v11  ;;  %v11520_v11 = vsub.f32 %v3254_v26, %v11494_v40  ;;  %v3248_v31 = vld [vmem:[%s12360_s1 + $0x2c8] sm:$0xff] }
 0x347   : > { %7236 = vmatprep.subr.mxu0 %v13468_v48  ;;  %7266 = vmatprep.subr.mxu1 %v13431_v63  ;;  %v11528_v63 = vand.u32 4294901760, %v3253_v1  ;;  %v3232_v26 = vld [vmem:[%s12360_s1 + $0x248] sm:$0xff] }
 0x348   : > { %7237 = vmatpush3.msra.mxu0 %v13469_v51  ;;  %7267 = vmatpush3.msra.mxu1 %v13433_v10  ;;  %v11536_v10 = vand.u32 4294901760, %v3237_v29  ;;  %v11634_v51 = vsub.f32 %v3234_v55, %v11584_v45 }
 0x349   : > { %7238 = vmatprep.subr.mxu0 %v13470_v24  ;;  %7268 = vmatprep.subr.mxu1 %v13434_v22  ;;  %v13477_v22 = vand.u32 4294901760, %v11214_v47  ;;  %v3250_v47 = vld [vmem:[%s12360_s1 + $0x2d8] sm:$0xff]  ;;  %v11571_v0 = vsub.f32 %v3253_v1, %v11528_v63  ;;  %v13496_v1 = vld [vmem:[#allocation56_spill] sm:$0xff] }
 0x34a   : > { %7239 = vmatpush3.msra.mxu0 %v13471_v42  ;;  %7269 = vmatpush3.msra.mxu1 %v13436_v60  ;;  %13476 = vst [vmem:[#allocation61_spill] sm:$0xff] %v11536_v10  ;;  %v3235_v60 = vld [vmem:[%s12360_s1 + $0x260] sm:$0xff]  ;;  %v11589_v41 = vand.u32 4294901760, %v3250_v47 }
 0x34b   : > { %7240 = vmatprep.subr.mxu0 %v13472_v34  ;;  %7270 = vmatprep.subr.mxu1 %v13437_v46  ;;  %v13479_v46 = vand.u32 4294901760, %v11115_v15  ;;  %v12766_v15 = vand.u32 4294901760, %v11526_v38  ;;  %v11582_v50 = vand.u32 4294901760, %v3235_v60  ;;  %v12765_v33 = vand.u32 4294901760, %v11571_v0  ;;  %v3247_v42 = vld [vmem:[%s12360_s1 + $0x2c0] sm:$0xff]  ;;  %v13497_v34 = vld [vmem:[#allocation82_spill] sm:$0xff] }
 0x34c   : > { %7241 = vmatpush3.msra.mxu0 %v13473_v5  ;;  %7271 = vmatpush3.msra.mxu1 %v13438_v23  ;;  %v11555_v23 = vand.u32 4294901760, %v3236_v54  ;;  %13488 = vst [vmem:[#allocation65_spill] sm:$0xff] %v11589_v41  ;;  %v11643_v5 = vand.u32 4294901760, %v3248_v31 }
 0x34d   : > { %7242 = vmatprep.subr.mxu0 %v13474_v61  ;;  %7272 = vmatprep.subr.mxu1 %v13439_v30  ;;  %v12767_v30 = vand.u32 4294901760, %v11520_v11  ;;  %13485 = vst [vmem:[#allocation53_spill] sm:$0xff] %v11582_v50  ;;  %v11618_v17 = vsub.f32 %v11526_v38, %v12766_v15  ;;  %v3231_v61 = vld [vmem:[%s12360_s1 + $0x240] sm:$0xff] }
 0x34e   : > { %7243 = vmatpush3.msra.mxu0 %v13475_v43  ;;  %7273 = vmatpush3.msra.mxu1 %v13440_v16  ;;  %13480 = vst [vmem:[#allocation59_spill] sm:$0xff] %v11555_v23  ;;  %v3249_v16 = vld [vmem:[%s12360_s1 + $0x2d0] sm:$0xff]  ;;  %v11600_v13 = vsub.f32 %v3236_v54, %v11555_v23  ;;  %13499 = vst [vmem:[#allocation47_spill] sm:$0xff] %v11643_v5  ;;  %v11650_v54 = vsub.f32 %v3250_v47, %v11589_v41 }
 0x34f   : > { %7244 = vmatprep.subr.mxu0 %v13477_v22  ;;  %7274 = vmatprep.subr.mxu1 %v13441_v52  ;;  %v11567_v52 = vand.u32 4294901760, %v3251_v2  ;;  %v11591_v14 = vand.u32 4294901760, %v3249_v16  ;;  %v11605_v21 = vsub.f32 %v11520_v11, %v12767_v30  ;;  %v13505_v47 = vld [vmem:[#allocation70_spill] sm:$0xff] }
 0x350   : > { %7245 = vmatpush3.msra.mxu0 %v13479_v46  ;;  %7275 = vmatpush3.msra.mxu1 %v10946_v27  ;;  %v11580_v27 = vsub.f32 %v3237_v29, %v11536_v10  ;;  %v13498_v29 = vand.u32 4294901760, %v13497_v34  ;;  %v11662_v46 = vand.u32 4294901760, %v3232_v26  ;;  %v12771_v34 = vand.u32 4294901760, %v11650_v54 }
 0x351   : > { %7246 = vmatprep.subr.mxu0 %v13481_v25  ;;  %13482 = vst [vmem:[#allocation45_spill] sm:$0xff] %v11567_v52  ;;  %7276 = vmatprep.subr.mxu1 %v13442_v19  ;;  %13489 = vst [vmem:[#allocation60_spill] sm:$0xff] %v11591_v14  ;;  %v11594_v19 = vsub.f32 %v3252_v20, %v11544_v37  ;;  %v11625_v49 = vsub.f32 %v3251_v2, %v11567_v52  ;;  %v13500_v2 = vld [vmem:[#allocation83_spill] sm:$0xff]  ;;  %v12764_v25 = vand.u32 4294901760, %v11600_v13 }
 0x352   : > { %7247 = vmatpush3.msra.mxu0 %v13484_v39  ;;  %7277 = vmatpush3.msra.mxu1 %v13443_v28  ;;  %v11607_v28 = vand.u32 4294901760, %v3233_v6  ;;  %v12763_v24 = vand.u32 4294901760, %v11580_v27  ;;  %v11653_v43 = vsub.f32 %v3249_v16, %v11591_v14  ;;  %v13501_v22 = vand.u32 4294901760, %v13500_v2  ;;  %13503 = vst [vmem:[#allocation48_spill] sm:$0xff] %v11662_v46 }
 0x353   : > { %7248 = vmatprep.subr.mxu0 %v13487_v3  ;;  %7278 = vmatprep.subr.mxu1 %v13444_v59  ;;  %v13492_v59 = vand.u32 4294901760, %v11300_v62  ;;  %v11631_v62 = vsub.f32 %v3235_v60, %v11582_v50  ;;  %v12762_v20 = vand.u32 4294901760, %v11594_v19  ;;  %v11673_v39 = vand.u32 4294901760, %v3247_v42  ;;  %v3246_v3 = vld [vmem:[%s12360_s1 + $0x2b8] sm:$0xff]  ;;  %v11818_v60 = vld [vmem:[%s12360_s1 + $0x2a0] sm:$0xff] }
 0x354   : > { %7249 = vmatpush3.msra.mxu0 %v13490_v58  ;;  %13491 = vst [vmem:[#allocation55_spill] sm:$0xff] %v11607_v28  ;;  %7279 = vmatpush3.msra.mxu1 %v13445_v35  ;;  %v13494_v35 = vld [vmem:[#allocation80_spill] sm:$0xff]  ;;  %v11660_v55 = vsub.f32 %v3233_v6, %v11607_v28  ;;  %v12768_v6 = vand.u32 4294901760, %v11625_v49  ;;  %v11703_v2 = vsub.f32 %v3248_v31, %v11643_v5  ;;  %v13512_v31 = vld [vmem:[#allocation78_spill] sm:$0xff] }
 0x355   : > { %7250 = vmatprep.subr.mxu0 %v13492_v59  ;;  %7280 = vmatprep.subr.mxu1 %v13493_v36  ;;  %v13495_v48 = vand.u32 4294901760, %v13494_v35  ;;  %13506 = vst [vmem:[#allocation63_spill] sm:$0xff] %v11673_v39  ;;  %v13507_v58 = vld [vmem:[#allocation76_spill] sm:$0xff]  ;;  %v11684_v59 = vsub.f32 %v11580_v27, %v12763_v24  ;;  %v11686_v36 = vand.u32 4294901760, %v3231_v61  ;;  %v12769_v35 = vand.u32 4294901760, %v11631_v62 }
 0x356   : > { %7281 = vmatpush3.msra.mxu1 %v13496_v1  ;;  %13502 = vst [vmem:[#allocation54_spill] sm:$0xff] %v11660_v55  ;;  %4966 = vmatprep.mubr.f32.mxu0 %v13504_v9  ;;  %v12770_v1 = vand.u32 4294901760, %v11634_v51  ;;  %13509 = vst [vmem:[#allocation49_spill] sm:$0xff] %v11703_v2 }
 0x357   : > { %7251 = vmatpush3.msra.mxu0 %v13495_v48  ;;  %7282 = vmatprep.subr.mxu1 %v13446_v7  ;;  %v11671_v7 = vsub.f32 %v11571_v0, %v12765_v33  ;;  %13508 = vst [vmem:[#allocation67_spill] sm:$0xff] %v11686_v36  ;;  %v3230_v48 = vld [vmem:[%s12360_s1 + $0x238] sm:$0xff]  ;;  %v11735_v15 = vsub.f32 %v3231_v61, %v11686_v36  ;;  %v3229_v33 = vld [vmem:[%s12360_s1 + $0x230] sm:$0xff]  ;;  %v3227_v61 = vld [vmem:[%s12360_s1 + $0x220] sm:$0xff] }
 0x358   : > { %7252 = vmatprep.subr.mxu0 %v13498_v29  ;;  %7283 = vmatpush3.msra.mxu1 %v13505_v47  ;;  %v12772_v29 = vand.u32 4294901760, %v11653_v43  ;;  %v11715_v47 = vand.u32 4294901760, %v3246_v3  ;;  %v11740_v30 = vsub.f32 %v11631_v62, %v12769_v35  ;;  %v11756_v35 = vsub.f32 %v11650_v54, %v12771_v34 }
 0x359   : > { %7253 = vmatpush3.msra.mxu0 %v13501_v22  ;;  %7284 = vmatprep.subr.mxu1 %v11154_v18  ;;  %v11698_v18 = vsub.f32 %v11594_v19, %v12762_v20  ;;  %v11708_v22 = vsub.f32 %v3232_v26, %v11662_v46  ;;  %v12773_v20 = vand.u32 4294901760, %v11660_v55  ;;  %v11726_v26 = vand.u32 4294901760, %v3230_v48  ;;  %13515 = vst [vmem:[#allocation62_spill] sm:$0xff] %v11735_v15 }
 0x35a   : > { %4968 = vmatmul.mubr.f32.vlgmr.msra.gmra.mxu0 %v13507_v58  ;;  %7298 = vmatprep.subr.mxu0 %v11494_v40  ;;  %13511 = vst [vmem:[#allocation52_spill] sm:$0xff] %v11715_v47  ;;  %v11780_v16 = vsub.f32 %v3246_v3, %v11715_v47 }
 0x35b   : > { %7285 = vmatpush3.msra.mxu1 %v13448_v32  ;;  %7299 = vmatpush3.msra.mxu0 %v11499_v8  ;;  %13510 = vst [vmem:[#allocation51_spill] sm:$0xff] %v11708_v22  ;;  %v11713_v32 = vsub.f32 %v11600_v13, %v12764_v25  ;;  %13513 = vst [vmem:[#allocation44_spill] sm:$0xff] %v11726_v26  ;;  %v11729_v25 = vsub.f32 %v3247_v42, %v11673_v39  ;;  %v13516_v42 = vld [vmem:[#allocation79_spill] sm:$0xff] }
 0x35c   : > { %7286 = vmatprep.subr.mxu1 %v13450_v4  ;;  %7300 = vmatprep.subr.mxu0 %v11528_v63  ;;  %v11724_v4 = vsub.f32 %v11625_v49, %v12768_v6  ;;  %v11745_v6 = vsub.f32 %v11634_v51, %v12770_v1  ;;  %v11761_v1 = vsub.f32 %v11653_v43, %v12772_v29  ;;  %v3228_v29 = vld [vmem:[%s12360_s1 + $0x228] sm:$0xff] }
 0x35d   : > { %4973 = vmatprep.mubr.f32.mxu0 %v13512_v31  ;;  %13514 = vst [vmem:[#allocation57_spill] sm:$0xff] %v11729_v25  ;;  %7287 = vmatpush3.msra.mxu1 %v11178_v56  ;;  %v3245_v56 = vld [vmem:[%s12360_s1 + $0x2b0] sm:$0xff]  ;;  %v11773_v34 = vsub.f32 %v11660_v55, %v12773_v20  ;;  %13517 = vst [vmem:[#allocation50_spill] sm:$0xff] %v11780_v16  ;;  %v13532_v55 = vand.u32 4294901760, %v11671_v7 }
 0x35e   : > { %7301 = vmatpush3.msra.mxu0 %v11536_v10  ;;  %7288 = vmatprep.subr.mxu1 %v11222_v53  ;;  %v11786_v53 = vsub.f32 %v3230_v48, %v11726_v26  ;;  %v11788_v20 = vand.u32 4294901760, %v3245_v56  ;;  %v3244_v48 = vld [vmem:[%s12360_s1 + $0x2a8] sm:$0xff] }
 0x35f   : > { %4975 = vmatmul.mubr.f32.gmra.mxu0 %v13516_v42  ;;  %7302 = vmatprep.subr.mxu0 %v11544_v37  ;;  %v3226_v37 = vld [vmem:[%s12360_s1 + $0x218] sm:$0xff] }
 0x360   : > { %7289 = vmatpush3.msra.mxu1 %v11235_v44  ;;  %7303 = vmatpush3.msra.mxu0 %v11555_v23  ;;  %13518 = vst [vmem:[#allocation64_spill] sm:$0xff] %v11786_v53  ;;  %13519 = vst [vmem:[#allocation68_spill] sm:$0xff] %v11788_v20  ;;  %v11798_v44 = vand.u32 4294901760, %v3229_v33  ;;  %v3134_v23 = vld [vmem:[%s7855_s19 + $0x28] sm:$0xff] }
 0x361   : > { %7290 = vmatprep.subr.mxu1 %v11274_v12  ;;  %7304 = vmatprep.subr.mxu0 %v11567_v52  ;;  %v13521_v12 = vand.u32 4294901760, %v11703_v2  ;;  %v11813_v52 = vand.u32 4294901760, %v3228_v29 }
 0x362   : > { %7291 = vmatpush3.msra.mxu1 %v13456_v57  ;;  %13520 = vst [vmem:[#allocation69_spill] sm:$0xff] %v11798_v44  ;;  %5077 = vmatprep.mubr.f32.mxu1 %v13504_v9  ;;  %v13523_v57 = vand.u32 4294901760, %v11708_v22  ;;  %v11839_v9 = vand.u32 4294901760, %v3244_v48 }
 0x363   : > { %7305 = vmatpush3.msra.mxu0 %v11582_v50  ;;  %v11811_v3 = vsub.f32 %v11703_v2, %v13521_v12  ;;  %13522 = vst [vmem:[#allocation72_spill] sm:$0xff] %v11813_v52  ;;  %5079 = vmatmul.mubr.f32.vlgmr.msra.gmra.mxu1 %v13507_v58  ;;  %v11829_v12 = vand.u32 4294901760, %v3227_v61  ;;  %v3133_v2 = vld [vmem:[%s7855_s19 + $0x20] sm:$0xff]  ;;  %v13525_v58 = vand.u32 4294901760, %v11605_v21  ;;  %v11849_v50 = vld [vmem:[%s12360_s1 + $0x298] sm:$0xff]  ;;  %v11853_v21 = vsub.f32 %v3245_v56, %v11788_v20 }
 0x364   : > { %7306 = vmatprep.subr.mxu0 %v11589_v41  ;;  %v11827_v24 = vsub.f32 %v11708_v22, %v13523_v57  ;;  %13526 = vst [vmem:[#allocation74_spill] sm:$0xff] %v11839_v9  ;;  %v13527_v41 = vand.u32 4294901760, %v11729_v25  ;;  %v3152_v56 = vsel %vm3146_vm4, %v3134_v23, 0.0  ;;  %5084 = vmatprep.mubr.f32.mxu1 %v13512_v31  ;;  %v13533_v23 = vand.u32 4294901760, %v11684_v59  ;;  %v3225_v59 = vld [vmem:[%s12360_s1 + $0x210] sm:$0xff] }
 0x365   : > { %13524 = vst [vmem:[#allocation73_spill] sm:$0xff] %v11829_v12  ;;  %7336 = vmatprep.subr.mxu1 %v13525_v58  ;;  %7307 = vmatpush3.msra.mxu0 %v11584_v45  ;;  %13528 = vst [vmem:[#allocation81_spill] sm:$0xff] %v11853_v21  ;;  %v13529_v58 = vand.u32 4294901760, %v11618_v17  ;;  %v11859_v45 = vsub.f32 %v3229_v33, %v11798_v44  ;;  %v11876_v33 = vsub.f32 %v3228_v29, %v11813_v52 }
 0x366   : > { %v11844_v57 = vsub.f32 %v11729_v25, %v13527_v41  ;;  %7308 = vmatprep.subr.mxu0 %v11591_v14  ;;  %v11862_v41 = vand.u32 4294901760, %v11818_v60  ;;  %v13530_v25 = vand.u32 4294901760, %v11735_v15  ;;  %v3151_v14 = vsel %vm3146_vm4, %v3133_v2, 0.0  ;;  %v3241_v2 = vld [vmem:[%s12360_s1 + $0x290] sm:$0xff] }
 0x367   : > { %7337 = vmatpush3.msra.mxu1 %v13529_v58  ;;  %v11878_v58 = vand.u32 4294901760, %v3226_v37  ;;  %7309 = vmatpush3.msra.mxu0 %v11607_v28  ;;  %v11888_v7 = vsub.f32 %v3227_v61, %v11829_v12  ;;  %v11891_v29 = vand.u32 4294901760, %v11849_v50  ;;  %v13535_v31 = vand.u32 4294901760, %v11780_v16  ;;  %v11916_v28 = vld [vmem:[%s12360_s1 + $0x288] sm:$0xff] }
 0x368   : > { %v11867_v10 = vsub.f32 %v11735_v15, %v13530_v25  ;;  %7338 = vmatprep.subr.mxu1 %v13532_v55  ;;  %v3140_v25 = vld [vmem:[%s7855_s19 + $0x58] sm:$0xff]  ;;  %5086 = vmatmul.mubr.f32.gmra.mxu1 %v13516_v42  ;;  %v3139_v15 = vld [vmem:[%s7855_s19 + $0x50] sm:$0xff]  ;;  %v13538_v42 = vand.u32 4294901760, %v11698_v18  ;;  %v3224_v61 = vld [vmem:[%s12360_s1 + $0x208] sm:$0xff]  ;;  %v13546_v22 = vand.u32 4294901760, %v11756_v35 }
 0x369   : > { %7339 = vmatpush3.msra.mxu1 %v13533_v23  ;;  %13534 = vst [vmem:[#allocation77_spill] sm:$0xff] %v11891_v29  ;;  %v11896_v17 = vsub.f32 %v11780_v16, %v13535_v31  ;;  %7310 = vmatprep.subr.mxu0 %v11643_v5  ;;  %v13536_v23 = vand.u32 4294901760, %v11786_v53  ;;  %v11918_v16 = vand.u32 4294901760, %v3152_v56  ;;  %v11928_v5 = vand.u32 4294901760, %v3151_v14 }
 0x36a   : > { %7340 = vmatprep.subr.mxu1 %v13538_v42  ;;  %7311 = vmatpush3.msra.mxu0 %v11662_v46  ;;  %v3158_v31 = vsel %vm3146_vm4, %v3140_v25, 0.0  ;;  %v11936_v18 = vsub.f32 %v3226_v37, %v11878_v58  ;;  %v11938_v42 = vand.u32 4294901760, %v3241_v2  ;;  %v11940_v46 = vand.u32 4294901760, %v3225_v59 }
 0x36b   : > { %v11910_v55 = vsub.f32 %v11786_v53, %v13536_v23  ;;  %13537 = vst [vmem:[#allocation71_spill] sm:$0xff] %v11918_v16  ;;  %v11926_v23 = vsub.f32 %v3244_v48, %v11839_v9  ;;  %13539 = vst [vmem:[#allocation80_spill] sm:$0xff] %v11928_v5  ;;  %v13540_v53 = vand.u32 4294901760, %v11713_v32  ;;  %7312 = vmatprep.subr.mxu0 %v11673_v39  ;;  %v13542_v25 = vand.u32 4294901760, %v11724_v4 }
 0x36c   : > { %13541 = vst [vmem:[#allocation56_spill] sm:$0xff] %v11938_v42  ;;  %7313 = vmatpush3.msra.mxu0 %v11686_v36  ;;  %v5391_v32 = vand.u32 4294901760, %v11896_v17  ;;  %v11951_v37 = vand.u32 4294901760, %v11916_v28  ;;  %v3157_v48 = vsel %vm3146_vm4, %v3139_v15, 0.0  ;;  %v13543_v39 = vand.u32 4294901760, %v11740_v30  ;;  %v3223_v15 = vld [vmem:[%s12360_s1 + $0x200] sm:$0xff]  ;;  %5443 = vmatprep.mubr.f32.mxu1 %v11918_v16 }
 0x36d   : > { %7341 = vmatpush3.msra.mxu1 %v13540_v53  ;;  %v11955_v53 = vsub.f32 %v11818_v60, %v11862_v41  ;;  %7314 = vmatprep.subr.mxu0 %v11715_v47  ;;  %v5279_v4 = vand.u32 4294901760, %v11910_v55  ;;  %v3239_v60 = vld [vmem:[%s12360_s1 + $0x280] sm:$0xff]  ;;  %v11975_v30 = vsub.f32 %v3152_v56, %v11918_v16  ;;  %v11986_v47 = vsub.f32 %v3151_v14, %v11928_v5  ;;  %v13598_v16 = vld [vmem:[#allocation69_spill] sm:$0xff] }
 0x36e   : > { %7342 = vmatprep.subr.mxu1 %v13542_v25  ;;  %v13544_v25 = vand.u32 4294901760, %v11853_v21  ;;  %7315 = vmatpush3.msra.mxu0 %v11726_v26  ;;  %v11990_v36 = vsub.f32 %v11849_v50, %v11891_v29  ;;  %v13547_v56 = vand.u32 4294901760, %v11745_v6  ;;  %v11996_v35 = vsub.f32 %v3225_v59, %v11940_v46 }
 0x36f   : > { %7343 = vmatpush3.msra.mxu1 %v13543_v39  ;;  %v11977_v39 = vand.u32 4294901760, %v3158_v31  ;;  %7316 = vmatprep.subr.mxu0 %v11788_v20  ;;  %v12002_v14 = vand.u32 4294901760, %v3157_v48  ;;  %v12007_v50 = vand.u32 4294901760, %v3239_v60  ;;  %v12013_v59 = vsub.f32 %v3241_v2, %v11938_v42 }
 0x370   : > { %v11966_v17 = vsub.f32 %v11853_v21, %v13544_v25  ;;  %7344 = vmatprep.subr.mxu1 %v13546_v22  ;;  %v11983_v25 = vand.u32 4294901760, %v3224_v61  ;;  %v13548_v22 = vand.u32 4294901760, %v11859_v45  ;;  %v13550_v21 = vand.u32 4294901760, %v11761_v1  ;;  %7317 = vmatpush3.msra.mxu0 %v11798_v44 }
 0x371   : > { %13545 = vst [vmem:[#allocation82_spill] sm:$0xff] %v11977_v39  ;;  %7345 = vmatpush3.msra.mxu1 %v13547_v56  ;;  %13549 = vst [vmem:[#allocation83_spill] sm:$0xff] %v12002_v14  ;;  %v12010_v56 = vand.u32 4294901760, %v3223_v15  ;;  %7318 = vmatprep.subr.mxu0 %v11839_v9  ;;  %v12022_v44 = vsub.f32 %v3158_v31, %v11977_v39  ;;  %v13553_v6 = vand.u32 4294901760, %v11811_v3  ;;  %v13554_v2 = vand.u32 4294901760, %v11926_v23 }
 0x372   : > { %v5285_v55 = vsub.f32 %v11859_v45, %v13548_v22  ;;  %7346 = vmatprep.subr.mxu1 %v13550_v21  ;;  %v13552_v22 = vand.u32 4294901760, %v11773_v34  ;;  %v5398_v26 = vand.u32 4294901760, %v11966_v17  ;;  %7319 = vmatpush3.msra.mxu0 %v11813_v52  ;;  %v13555_v21 = vand.u32 4294901760, %v11827_v24 }
 0x373   : > { %13551 = vst [vmem:[#allocation75_spill] sm:$0xff] %v12010_v56  ;;  %v5404_v34 = vsub.f32 %v11926_v23, %v13554_v2  ;;  %7320 = vmatprep.subr.mxu0 %v11862_v41  ;;  %v13556_v3 = vand.u32 4294901760, %v11876_v33  ;;  %v12043_v2 = vsub.f32 %v3157_v48, %v12002_v14  ;;  %v13557_v1 = vand.u32 4294901760, %v11844_v57 }
 0x374   : > { %7347 = vmatpush3.msra.mxu1 %v13552_v22  ;;  %v12031_v22 = vsub.f32 %v3224_v61, %v11983_v25  ;;  %v12047_v61 = vsub.f32 %v11916_v28, %v11951_v37  ;;  %7321 = vmatpush3.msra.mxu0 %v11829_v12  ;;  %v5286_v24 = vand.u32 4294901760, %v5285_v55  ;;  %v13561_v28 = vand.u32 4294901760, %v11975_v30 }
 0x375   : > { %7348 = vmatprep.subr.mxu1 %v13553_v6  ;;  %v5292_v31 = vsub.f32 %v11876_v33, %v13556_v3  ;;  %v12056_v3 = vsub.f32 %v3223_v15, %v12010_v56  ;;  %v13560_v6 = vand.u32 4294901760, %v11867_v10  ;;  %7322 = vmatprep.subr.mxu0 %v11891_v29  ;;  %v13562_v55 = vand.u32 4294901760, %v11888_v7 }
 0x376   : > { %7349 = vmatpush3.msra.mxu1 %v13555_v21  ;;  %v13558_v21 = vand.u32 4294901760, %v11955_v53  ;;  %v5190_v57 = vsub.f32 %v11975_v30, %v13561_v28  ;;  %v12070_v15 = vsub.f32 %v3239_v60, %v12007_v50  ;;  %7323 = vmatpush3.msra.mxu0 %v11878_v58  ;;  %v5405_v10 = vand.u32 4294901760, %v5404_v34 }
 0x377   : > { %7350 = vmatprep.subr.mxu1 %v13557_v1  ;;  %13559 = vst [vmem:[#allocation70_spill] sm:$0xff] %v12056_v3  ;;  %v5299_v1 = vsub.f32 %v11888_v7, %v13562_v55  ;;  %v13565_v29 = vand.u32 4294901760, %v11990_v36  ;;  %7324 = vmatprep.subr.mxu0 %v11938_v42  ;;  %v5293_v55 = vand.u32 4294901760, %v5292_v31  ;;  %v13566_v60 = vand.u32 4294901760, %v11936_v18 }
 0x378   : > { %v5411_v17 = vsub.f32 %v11955_v53, %v13558_v21  ;;  %7351 = vmatpush3.msra.mxu1 %v13560_v6  ;;  %13563 = vst [vmem:[#allocation76_spill] sm:$0xff] %v12070_v15  ;;  %v13564_v6 = vand.u32 4294901760, %v11986_v47  ;;  %7325 = vmatpush3.msra.mxu0 %v11940_v46  ;;  %v5191_v31 = vand.u32 4294901760, %v5190_v57 }
 0x379   : > { %7352 = vmatprep.subr.mxu1 %v5391_v32  ;;  %v5418_v28 = vsub.f32 %v11990_v36, %v13565_v29  ;;  %v5306_v32 = vsub.f32 %v11936_v18, %v13566_v60  ;;  %v13567_v29 = vand.u32 4294901760, %v12013_v59  ;;  %7326 = vmatprep.subr.mxu0 %v11951_v37  ;;  %v5300_v42 = vand.u32 4294901760, %v5299_v1 }
 0x37a   : > { %v5196_v48 = vsub.f32 %v11986_v47, %v13564_v6  ;;  %7353 = vmatpush3.msra.mxu1 %v5279_v4  ;;  %v5412_v6 = vand.u32 4294901760, %v5411_v17  ;;  %v13568_v60 = vand.u32 4294901760, %v12022_v44  ;;  %7327 = vmatpush3.msra.mxu0 %v11983_v25  ;;  %v13570_v1 = vand.u32 4294901760, %v12043_v2 }
 0x37b   : > { %7354 = vmatprep.subr.mxu1 %v5398_v26  ;;  %v5425_v12 = vsub.f32 %v12013_v59, %v13567_v29  ;;  %v5419_v21 = vand.u32 4294901760, %v5418_v28  ;;  %v13569_v29 = vand.u32 4294901760, %v11996_v35  ;;  %7328 = vmatprep.subr.mxu0 %v12007_v50  ;;  %v5307_v57 = vand.u32 4294901760, %v5306_v32 }
 0x37c   : > { %7355 = vmatpush3.msra.mxu1 %v5286_v24  ;;  %v5205_v34 = vsub.f32 %v12022_v44, %v13568_v60  ;;  %v5197_v17 = vand.u32 4294901760, %v5196_v48  ;;  %v5211_v60 = vsub.f32 %v12043_v2, %v13570_v1  ;;  %7329 = vmatpush3.msra.mxu0 %v12010_v56  ;;  %v13572_v28 = vand.u32 4294901760, %v12031_v22 }
 0x37d   : > { %7356 = vmatprep.subr.mxu1 %v5405_v10  ;;  %v5313_v4 = vsub.f32 %v11996_v35, %v13569_v29  ;;  %v13571_v10 = vand.u32 4294901760, %v12047_v61  ;;  %v5426_v48 = vand.u32 4294901760, %v5425_v12  ;;  %5192 = vmatprep.mubr.f32.mxu0 %v5191_v31  ;;  %v13573_v32 = vand.u32 4294901760, %v12070_v15  ;;  %v13577_v31 = vld [vmem:[#allocation49_spill] sm:$0xff] }
 0x37e   : > { %7357 = vmatpush3.msra.mxu1 %v5293_v55  ;;  %v5320_v29 = vsub.f32 %v12031_v22, %v13572_v28  ;;  %v5206_v55 = vand.u32 4294901760, %v5205_v34  ;;  %5198 = vmatmul.mubr.f32.vlgmr.msra.gmra.mxu0 %v5197_v17  ;;  %v5212_v12 = vand.u32 4294901760, %v5211_v60  ;;  %v13579_v17 = vld [vmem:[#allocation51_spill] sm:$0xff]  ;;  %v13582_v60 = vld [vmem:[#allocation45_spill] sm:$0xff] }
 0x37f   : > { %v5432_v26 = vsub.f32 %v12047_v61, %v13571_v10  ;;  %7358 = vmatprep.subr.mxu1 %v5412_v6  ;;  %v5439_v24 = vsub.f32 %v12070_v15, %v13573_v32  ;;  %v5314_v1 = vand.u32 4294901760, %v5313_v4  ;;  %v13574_v10 = vand.u32 4294901760, %v12056_v3  ;;  %7374 = vmatprep.subr.mxu0 %v11520_v11  ;;  %v13576_v4 = vld [vmem:[#allocation61_spill] sm:$0xff]  ;;  %v13587_v32 = vld [vmem:[#allocation64_spill] sm:$0xff] }
 0x380   : > { %7359 = vmatpush3.msra.mxu1 %v5300_v42  ;;  %7375 = vmatpush3.msra.mxu0 %v11526_v38  ;;  %v5321_v42 = vand.u32 4294901760, %v5320_v29  ;;  %v13584_v28 = vld [vmem:[#allocation53_spill] sm:$0xff]  ;;  %v13585_v29 = vld [vmem:[#allocation50_spill] sm:$0xff] }
 0x381   : > { %7360 = vmatprep.subr.mxu1 %v5419_v21  ;;  %v5327_v6 = vsub.f32 %v12056_v3, %v13574_v10  ;;  %v5433_v56 = vand.u32 4294901760, %v5432_v26  ;;  %7376 = vmatprep.subr.mxu0 %v11571_v0  ;;  %v5440_v34 = vand.u32 4294901760, %v5439_v24  ;;  %v13578_v26 = vld [vmem:[#allocation58_spill] sm:$0xff]  ;;  %v13580_v24 = vld [vmem:[#allocation59_spill] sm:$0xff]  ;;  %v13589_v10 = vld [vmem:[#allocation81_spill] sm:$0xff] }
 0x382   : > { %7361 = vmatpush3.msra.mxu1 %v5307_v57  ;;  %5207 = vmatprep.mubr.f32.mxu0 %v5206_v55  ;;  %v13581_v57 = vld [vmem:[#allocation57_spill] sm:$0xff] }
 0x383   : > { %7362 = vmatprep.subr.mxu1 %v5426_v48  ;;  %7377 = vmatpush3.msra.mxu0 %v11580_v27  ;;  %v5328_v21 = vand.u32 4294901760, %v5327_v6  ;;  %v13583_v48 = vld [vmem:[#allocation62_spill] sm:$0xff]  ;;  %v13586_v55 = vld [vmem:[#allocation65_spill] sm:$0xff]  ;;  %v13590_v6 = vld [vmem:[#allocation60_spill] sm:$0xff] }
 0x384   : > { %7363 = vmatpush3.msra.mxu1 %v5314_v1  ;;  %5213 = vmatmul.mubr.f32.gmra.mxu0 %v5212_v12  ;;  %v13588_v1 = vld [vmem:[#allocation46_spill] sm:$0xff]  ;;  %v13591_v12 = vld [vmem:[#allocation55_spill] sm:$0xff] }
 0x385   : > { %7364 = vmatprep.subr.mxu1 %v5433_v56  ;;  %7378 = vmatprep.subr.mxu0 %v11594_v19  ;;  %v13575_v56 = vld [vmem:[#allocation54_spill] sm:$0xff] }
 0x386   : > { %7365 = vmatpush3.msra.mxu1 %v5321_v42  ;;  %7379 = vmatpush3.msra.mxu0 %v11600_v13  ;;  %v13592_v42 = vld [vmem:[#allocation47_spill] sm:$0xff] }
 0x387   : > { %7366 = vmatprep.subr.mxu1 %v5440_v34  ;;  %7380 = vmatprep.subr.mxu0 %v11625_v49  ;;  %v13593_v34 = vld [vmem:[#allocation48_spill] sm:$0xff] }
 0x388   : > { %7367 = vmatpush3.msra.mxu1 %v5328_v21  ;;  %7381 = vmatpush3.msra.mxu0 %v11631_v62  ;;  %v13594_v21 = vld [vmem:[#allocation63_spill] sm:$0xff] }
 0x389   : > { %5445 = vmatmul.mubr.f32.vlgmr.msra.gmra.mxu1 %v11928_v5  ;;  %7382 = vmatprep.subr.mxu0 %v11650_v54  ;;  %v13597_v5 = vld [vmem:[#allocation44_spill] sm:$0xff] }
 0x38a   : > { %7412 = vmatprep.subr.mxu1 %v11494_v40  ;;  %7383 = vmatpush3.msra.mxu0 %v11634_v51 }
 0x38b   : > { %7413 = vmatpush3.msra.mxu1 %v11499_v8  ;;  %7384 = vmatprep.subr.mxu0 %v11653_v43 }
 0x38c   : > { %7414 = vmatprep.subr.mxu1 %v11528_v63  ;;  %5450 = vmatprep.mubr.f32.mxu1 %v11977_v39  ;;  %v13596_v39 = vld [vmem:[#allocation52_spill] sm:$0xff] }
 0x38d   : > { %7385 = vmatpush3.msra.mxu0 %v13575_v56  ;;  %7415 = vmatpush3.msra.mxu1 %v13576_v4 }
 0x38e   : > { %5452 = vmatmul.mubr.f32.gmra.mxu1 %v12002_v14  ;;  %7386 = vmatprep.subr.mxu0 %v13577_v31  ;;  %v13595_v14 = vld [vmem:[#allocation67_spill] sm:$0xff] }
 0x38f   : > { %7416 = vmatprep.subr.mxu1 %v13578_v26  ;;  %7387 = vmatpush3.msra.mxu0 %v13579_v17 }
 0x390   : > { %7417 = vmatpush3.msra.mxu1 %v13580_v24  ;;  %7388 = vmatprep.subr.mxu0 %v13581_v57 }
 0x391   : > { %7418 = vmatprep.subr.mxu1 %v13582_v60  ;;  %7389 = vmatpush3.msra.mxu0 %v13583_v48 }
 0x392   : > { %7419 = vmatpush3.msra.mxu1 %v13584_v28  ;;  %7390 = vmatprep.subr.mxu0 %v13585_v29 }
 0x393   : > { %7420 = vmatprep.subr.mxu1 %v13586_v55  ;;  %7391 = vmatpush3.msra.mxu0 %v13587_v32 }
 0x394   : > { %7421 = vmatpush3.msra.mxu1 %v13588_v1  ;;  %7392 = vmatprep.subr.mxu0 %v13589_v10 }
 0x395   : > { %7422 = vmatprep.subr.mxu1 %v13590_v6  ;;  %7393 = vmatpush3.msra.mxu0 %v11859_v45 }
 0x396   : > { %7423 = vmatpush3.msra.mxu1 %v13591_v12  ;;  %7394 = vmatprep.subr.mxu0 %v11926_v23 }
 0x397   : > { %7424 = vmatprep.subr.mxu1 %v13592_v42  ;;  %7395 = vmatpush3.msra.mxu0 %v11876_v33 }
 0x398   : > { %7425 = vmatpush3.msra.mxu1 %v13593_v34  ;;  %7396 = vmatprep.subr.mxu0 %v11955_v53 }
 0x399   : > { %7426 = vmatprep.subr.mxu1 %v13594_v21  ;;  %7397 = vmatpush3.msra.mxu0 %v11888_v7 }
 0x39a   : > { %7427 = vmatpush3.msra.mxu1 %v13595_v14  ;;  %7398 = vmatprep.subr.mxu0 %v11990_v36 }
 0x39b   : > { %7428 = vmatprep.subr.mxu1 %v13596_v39  ;;  %7399 = vmatpush3.msra.mxu0 %v11936_v18 }
 0x39c   : > { %7429 = vmatpush3.msra.mxu1 %v13597_v5  ;;  %7400 = vmatprep.subr.mxu0 %v12013_v59 }
 0x39d   : > { %7430 = vmatprep.subr.mxu1 %v11788_v20  ;;  %7401 = vmatpush3.msra.mxu0 %v11996_v35  ;;  %v13599_v20 = vld [vmem:[#allocation73_spill] sm:$0xff] }
 0x39e   : > { %7431 = vmatpush3.msra.mxu1 %v13598_v16  ;;  %7402 = vmatprep.subr.mxu0 %v12047_v61  ;;  %v13600_v16 = vld [vmem:[#allocation77_spill] sm:$0xff] }
 0x39f   : > { %7432 = vmatprep.subr.mxu1 %v11839_v9  ;;  %7403 = vmatpush3.msra.mxu0 %v12031_v22  ;;  %v13601_v9 = vand.u32 4294901760, %v11520_v11  ;;  %v13606_v11 = vand.u32 4294901760, %v11594_v19  ;;  %v13612_v19 = vand.u32 4294901760, %v11986_v47 }
 0x3a0   : > { %7433 = vmatpush3.msra.mxu1 %v11813_v52  ;;  %7404 = vmatprep.subr.mxu0 %v12070_v15  ;;  %v13602_v52 = vand.u32 4294901760, %v11526_v38  ;;  %v13603_v15 = vld [vmem:[#allocation56_spill] sm:$0xff]  ;;  %v13607_v38 = vand.u32 4294901760, %v11600_v13  ;;  %v13614_v13 = vand.u32 4294901760, %v11634_v51  ;;  %v13619_v51 = vand.u32 4294901760, %v13577_v31 }
 0x3a1   : > { %7434 = vmatprep.subr.mxu1 %v11862_v41  ;;  %7405 = vmatpush3.msra.mxu0 %v12056_v3  ;;  %v13604_v3 = vand.u32 4294901760, %v11571_v0  ;;  %v13609_v0 = vld [vmem:[#allocation75_spill] sm:$0xff]  ;;  %v13634_v31 = vld [vmem:[#allocation68_spill] sm:$0xff] }
 0x3a2   : > { %5587 = vmatprep.mubr.f32.mxu0 %v11975_v30  ;;  %7435 = vmatpush3.msra.mxu1 %v13599_v20  ;;  %v13605_v20 = vand.u32 4294901760, %v11580_v27  ;;  %v13610_v27 = vand.u32 4294901760, %v11975_v30  ;;  %v13625_v30 = vand.u32 4294901760, %v13589_v10 }
 0x3a3   : > { %5590 = vmatmul.mubr.f32.vlgmr.msra.gmra.mxu0 %v11986_v47  ;;  %7436 = vmatprep.subr.mxu1 %v13600_v16  ;;  %v13617_v47 = vand.u32 4294901760, %v13575_v56  ;;  %v13628_v56 = vand.u32 4294901760, %v11876_v33  ;;  %v13632_v33 = vand.u32 4294901760, %v11936_v18  ;;  %v13639_v18 = vand.u32 4294901760, %v12031_v22  ;;  %v13648_v22 = vld [vmem:[#allocation82_spill] sm:$0xff] }
 0x3a4   : > { %7450 = vmatprep.subr.mxu0 %v13601_v9  ;;  %7437 = vmatpush3.msra.mxu1 %v11878_v58  ;;  %v13613_v9 = vand.u32 4294901760, %v11650_v54  ;;  %v13622_v54 = vand.u32 4294901760, %v13583_v48 }
 0x3a5   : > { %7451 = vmatpush3.msra.mxu0 %v13602_v52  ;;  %7438 = vmatprep.subr.mxu1 %v13603_v15  ;;  %v13608_v52 = vand.u32 4294901760, %v11625_v49  ;;  %v13615_v49 = vand.u32 4294901760, %v11653_v43  ;;  %v13623_v43 = vand.u32 4294901760, %v13585_v29 }
 0x3a6   : > { %7452 = vmatprep.subr.mxu0 %v13604_v3  ;;  %5596 = vmatprep.mubr.f32.mxu0 %v12022_v44  ;;  %v13627_v3 = vand.u32 4294901760, %v11926_v23  ;;  %v13631_v23 = vand.u32 4294901760, %v11990_v36  ;;  %v13637_v36 = vand.u32 4294901760, %v12047_v61  ;;  %v13647_v61 = vld [vmem:[#allocation80_spill] sm:$0xff] }
 0x3a7   : > { %7439 = vmatpush3.msra.mxu1 %v11940_v46  ;;  %7453 = vmatpush3.msra.mxu0 %v13605_v20  ;;  %v13611_v20 = vand.u32 4294901760, %v11631_v62  ;;  %v13616_v62 = vand.u32 4294901760, %v12022_v44  ;;  %v13624_v44 = vand.u32 4294901760, %v13587_v32 }
 0x3a8   : > { %5599 = vmatmul.mubr.f32.gmra.mxu0 %v12043_v2  ;;  %7440 = vmatprep.subr.mxu1 %v11951_v37 }
 0x3a9   : > { %7454 = vmatprep.subr.mxu0 %v13606_v11  ;;  %7441 = vmatpush3.msra.mxu1 %v11983_v25 }
 0x3aa   : > { %7455 = vmatpush3.msra.mxu0 %v13607_v38  ;;  %7442 = vmatprep.subr.mxu1 %v12007_v50 }
 0x3ab   : > { %7456 = vmatprep.subr.mxu0 %v13608_v52  ;;  %7443 = vmatpush3.msra.mxu1 %v13609_v0 }
 0x3ac   : > { %5703 = vmatprep.mubr.f32.mxu1 %v13610_v27  ;;  %7457 = vmatpush3.msra.mxu0 %v13611_v20 }
 0x3ad   : > { %5707 = vmatmul.mubr.f32.vlgmr.msra.gmra.mxu1 %v13612_v19  ;;  %7458 = vmatprep.subr.mxu0 %v13613_v9 }
 0x3ae   : > { %7488 = vmatprep.subr.mxu1 %v11494_v40  ;;  %7459 = vmatpush3.msra.mxu0 %v13614_v13  ;;  %v13618_v40 = vand.u32 4294901760, %v12043_v2  ;;  %v13626_v2 = vand.u32 4294901760, %v11859_v45  ;;  %v13630_v45 = vand.u32 4294901760, %v11888_v7  ;;  %v13635_v7 = vand.u32 4294901760, %v11996_v35 }
 0x3af   : > { %7489 = vmatpush3.msra.mxu1 %v11499_v8  ;;  %7460 = vmatprep.subr.mxu0 %v13615_v49  ;;  %v13620_v8 = vand.u32 4294901760, %v13579_v17  ;;  %v13643_v17 = vld [vmem:[#allocation70_spill] sm:$0xff] }
 0x3b0   : > { %7490 = vmatprep.subr.mxu1 %v11528_v63  ;;  %5714 = vmatprep.mubr.f32.mxu1 %v13616_v62  ;;  %v13621_v63 = vand.u32 4294901760, %v13581_v57  ;;  %v13644_v35 = vand.u32 4294901760, %v13643_v17  ;;  %v13646_v57 = vld [vmem:[#allocation73_spill] sm:$0xff] }
 0x3b1   : > { %7461 = vmatpush3.msra.mxu0 %v13617_v47  ;;  %7491 = vmatpush3.msra.mxu1 %v13576_v4  ;;  %v13629_v4 = vand.u32 4294901760, %v11955_v53  ;;  %v13633_v53 = vand.u32 4294901760, %v12013_v59 }
 0x3b2   : > { %5718 = vmatmul.mubr.f32.gmra.mxu1 %v13618_v40  ;;  %7462 = vmatprep.subr.mxu0 %v13619_v51 }
 0x3b3   : > { %7492 = vmatprep.subr.mxu1 %v13578_v26  ;;  %7463 = vmatpush3.msra.mxu0 %v13620_v8  ;;  %v13636_v26 = vld [vmem:[#allocation69_spill] sm:$0xff] }
 0x3b4   : > { %7493 = vmatpush3.msra.mxu1 %v13580_v24  ;;  %7464 = vmatprep.subr.mxu0 %v13621_v63  ;;  %v13645_v24 = vld [vmem:[#allocation71_spill] sm:$0xff] }
 0x3b5   : > { %7494 = vmatprep.subr.mxu1 %v13582_v60  ;;  %7465 = vmatpush3.msra.mxu0 %v13622_v54 }
 0x3b6   : > { %7495 = vmatpush3.msra.mxu1 %v13584_v28  ;;  %7466 = vmatprep.subr.mxu0 %v13623_v43 }
 0x3b7   : > { %7496 = vmatprep.subr.mxu1 %v13586_v55  ;;  %7467 = vmatpush3.msra.mxu0 %v13624_v44 }
 0x3b8   : > { %7497 = vmatpush3.msra.mxu1 %v13588_v1  ;;  %7468 = vmatprep.subr.mxu0 %v13625_v30 }
 0x3b9   : > { %7498 = vmatprep.subr.mxu1 %v13590_v6  ;;  %7469 = vmatpush3.msra.mxu0 %v13626_v2 }
 0x3ba   : > { %7499 = vmatpush3.msra.mxu1 %v13591_v12  ;;  %7470 = vmatprep.subr.mxu0 %v13627_v3 }
 0x3bb   : > { %7500 = vmatprep.subr.mxu1 %v13592_v42  ;;  %7471 = vmatpush3.msra.mxu0 %v13628_v56 }
 0x3bc   : > { %7501 = vmatpush3.msra.mxu1 %v13593_v34  ;;  %7472 = vmatprep.subr.mxu0 %v13629_v4 }
 0x3bd   : > { %7502 = vmatprep.subr.mxu1 %v13594_v21  ;;  %7473 = vmatpush3.msra.mxu0 %v13630_v45 }
 0x3be   : > { %7503 = vmatpush3.msra.mxu1 %v13595_v14  ;;  %7474 = vmatprep.subr.mxu0 %v13631_v23  ;;  %v13638_v14 = vld [vmem:[#allocation74_spill] sm:$0xff] }
 0x3bf   : > { %7504 = vmatprep.subr.mxu1 %v13596_v39  ;;  %7475 = vmatpush3.msra.mxu0 %v13632_v33  ;;  %v13640_v39 = vld [vmem:[#allocation72_spill] sm:$0xff] }
 0x3c0   : > { %7505 = vmatpush3.msra.mxu1 %v13597_v5  ;;  %7476 = vmatprep.subr.mxu0 %v13633_v53  ;;  %v13641_v5 = vld [vmem:[#allocation76_spill] sm:$0xff] }
 0x3c1   : > { %7506 = vmatprep.subr.mxu1 %v13634_v31  ;;  %7477 = vmatpush3.msra.mxu0 %v13635_v7  ;;  %v13642_v59 = vand.u32 4294901760, %v13641_v5 }
 0x3c2   : > { %7507 = vmatpush3.msra.mxu1 %v13636_v26  ;;  %7478 = vmatprep.subr.mxu0 %v13637_v36 }
 0x3c3   : > { %7508 = vmatprep.subr.mxu1 %v13638_v14  ;;  %7479 = vmatpush3.msra.mxu0 %v13639_v18 }
 0x3c4   : > { %7509 = vmatpush3.msra.mxu1 %v13640_v39  ;;  %7480 = vmatprep.subr.mxu0 %v13642_v59 }
 0x3c5   : > { %7510 = vmatprep.subr.mxu1 %v11862_v41  ;;  %7481 = vmatpush3.msra.mxu0 %v13644_v35  ;;  %v13649_v41 = vld [vmem:[#allocation83_spill] sm:$0xff] }
 0x3c6   : > { %5884 = vmatprep.mubr.f32.mxu0 %v13645_v24  ;;  %7511 = vmatpush3.msra.mxu1 %v13646_v57 }
 0x3c7   : > { %5886 = vmatmul.mubr.f32.vlgmr.msra.gmra.mxu0 %v13647_v61  ;;  %7512 = vmatprep.subr.mxu1 %v13600_v16  ;;  %v6874_v16 = vpop.f32.mrf.mxu0 }
 0x3c8   : > { %7513 = vmatpush3.msra.mxu1 %v11878_v58  ;;  %5891 = vmatprep.mubr.f32.mxu0 %v13648_v22 }
 0x3c9   : > { %7514 = vmatprep.subr.mxu1 %v13603_v15  ;;  %5995 = vmatprep.mubr.f32.mxu1 %v13645_v24  ;;  %v6875_v58 = vpop.f32.mrf.mxu0 }
 0x3ca   : > { %7515 = vmatpush3.msra.mxu1 %v11940_v46  ;;  %v6912_v46 = vpop.f32.mrf.mxu1  ;;  %v6876_v36 = vadd.f32 %v6875_v58, %v6874_v16 }
 0x3cb   : > { %5893 = vmatmul.mubr.f32.gmra.mxu0 %v13649_v41  ;;  %7516 = vmatprep.subr.mxu1 %v11951_v37  ;;  %v6877_v15 = vpop.f32.mrf.mxu0 }
 0x3cc   : > { %7517 = vmatpush3.msra.mxu1 %v11983_v25  ;;  %v6913_v48 = vpop.f32.mrf.mxu1 }
 0x3cd   : > { %7518 = vmatprep.subr.mxu1 %v12007_v50  ;;  %v6878_v60 = vpop.f32.mrf.mxu0  ;;  %v6914_v7 = vadd.f32 %v6913_v48, %v6912_v46 }
 0x3ce   : > { %7519 = vmatpush3.msra.mxu1 %v13609_v0  ;;  %v6915_v37 = vpop.f32.mrf.mxu1  ;;  %v6879_v14 = vadd.f32 %v6878_v60, %v6877_v15 }
 0x3cf   : > { %5997 = vmatmul.mubr.f32.vlgmr.msra.gmra.mxu1 %v13647_v61  ;;  %v6950_v28 = vpop.f32.mrf.mxu0  ;;  %v3611_v17 = vadd.f32 %v6914_v7, %v6876_v36 }
 0x3d0   : > { %6002 = vmatprep.mubr.f32.mxu1 %v13648_v22  ;;  %v6916_v25 = vpop.f32.mrf.mxu1 }
 0x3d1   : > { %v6951_v29 = vpop.f32.mrf.mxu0  ;;  %v6917_v39 = vadd.f32 %v6916_v25, %v6915_v37 }
 0x3d2   : > { %v6988_v50 = vpop.f32.mrf.mxu1  ;;  %v6952_v18 = vadd.f32 %v6951_v29, %v6950_v28 }
 0x3d3   : > { %6004 = vmatmul.mubr.f32.gmra.mxu1 %v13649_v41  ;;  %v6953_v55 = vpop.f32.mrf.mxu0  ;;  %v3618_v57 = vadd.f32 %v6917_v39, %v6879_v14 }
 0x3d4   : > { %v6989_v1 = vpop.f32.mrf.mxu1  ;;  %v3756_v24 = vadd.f32 %v6952_v18, %v3611_v17 }
 0x3d5   : > { %v6954_v32 = vpop.f32.mrf.mxu0  ;;  %v6990_v35 = vadd.f32 %v6989_v1, %v6988_v50 }
 0x3d6   : > { %v6991_v6 = vpop.f32.mrf.mxu1  ;;  %v6955_v61 = vadd.f32 %v6954_v32, %v6953_v55 }
 0x3d7   : > { %v7026_v10 = vpop.f32.mrf.mxu0  ;;  %v3873_v48 = vadd.f32 %v6990_v35, %v3756_v24 }
 0x3d8   : > { %v6992_v42 = vpop.f32.mrf.mxu1  ;;  %v3765_v60 = vadd.f32 %v6955_v61, %v3618_v57 }
 0x3d9   : > { %v7027_v12 = vpop.f32.mrf.mxu0  ;;  %v6993_v16 = vadd.f32 %v6992_v42, %v6991_v6 }
 0x3da   : > { %v7064_v21 = vpop.f32.mrf.mxu1  ;;  %v7028_v22 = vadd.f32 %v7027_v12, %v7026_v10 }
 0x3db   : > { %v7029_v34 = vpop.f32.mrf.mxu0  ;;  %v3884_v7 = vadd.f32 %v6993_v16, %v3765_v60 }
 0x3dc   : > { %v7065_v38 = vpop.f32.mrf.mxu1  ;;  %v4052_v28 = vadd.f32 %v7028_v22, %v3873_v48 }
 0x3dd   : > { %v7030_v11 = vpop.f32.mrf.mxu0  ;;  %v7066_v58 = vadd.f32 %v7065_v38, %v7064_v21 }
 0x3de   : > { %v7067_v0 = vpop.f32.mrf.mxu1  ;;  %v7031_v29 = vadd.f32 %v7030_v11, %v7029_v34 }
 0x3df   : > { %v7102_v52 = vpop.f32.mrf.mxu0  ;;  %v4163_v36 = vadd.f32 %v7066_v58, %v4052_v28 }
 0x3e0   : > { %v7068_v20 = vpop.f32.mrf.mxu1  ;;  %v4059_v18 = vadd.f32 %v7031_v29, %v3884_v7 }
 0x3e1   : > { %v7103_v27 = vpop.f32.mrf.mxu0  ;;  %v7069_v1 = vadd.f32 %v7068_v20, %v7067_v0 }
 0x3e2   : > { %v7140_v9 = vpop.f32.mrf.mxu1  ;;  %v7104_v25 = vadd.f32 %v7103_v27, %v7102_v52 }
 0x3e3   : > { %v7105_v19 = vpop.f32.mrf.mxu0  ;;  %v4170_v12 = vadd.f32 %v7069_v1, %v4059_v18 }
 0x3e4   : > { %v7141_v49 = vpop.f32.mrf.mxu1  ;;  %v4282_v14 = vadd.f32 %v7104_v25, %v4163_v36 }
 0x3e5   : > { %v7106_v13 = vpop.f32.mrf.mxu0  ;;  %v7142_v50 = vadd.f32 %v7141_v49, %v7140_v9 }
 0x3e6   : > { %v7143_v47 = vpop.f32.mrf.mxu1  ;;  %v7107_v55 = vadd.f32 %v7106_v13, %v7105_v19 }
 0x3e7   : > { %v4529_v39 = vadd.f32 %v7142_v50, %v4282_v14 }
 0x3e8   : > { %v7144_v51 = vpop.f32.mrf.mxu1  ;;  %v4297_v35 = vadd.f32 %v7107_v55, %v4170_v12 }
 0x3e9   : > { %v7145_v6 = vadd.f32 %v7144_v51, %v7143_v47 }
 0x3eb   : > { %v4536_v27 = vadd.f32 %v7145_v6, %v4297_v35 }
 0x3f5   : > { %v7178_v62 = vpop.f32.mrf.mxu0 }
 0x3f7   : > { %v7179_v40 = vpop.f32.mrf.mxu0 }
 0x3f8   : > { %v7180_v32 = vadd.f32 %v7179_v40, %v7178_v62 }
 0x3fa   : > { %v4674_v34 = vadd.f32 %v7180_v32, %v4529_v39 }
 0x3fb   : > { %v7181_v8 = vpop.f32.mrf.mxu0 }
 0x3fd   : > { %v7182_v54 = vpop.f32.mrf.mxu0 }
 0x3fe   : > { %v7183_v11 = vadd.f32 %v7182_v54, %v7181_v8 }
 0x3ff   : > { %v7216_v63 = vpop.f32.mrf.mxu1 }
 0x400   : > { %v4683_v57 = vadd.f32 %v7183_v11, %v4536_v27 }
 0x401   : > { %v7217_v43 = vpop.f32.mrf.mxu1 }
 0x402   : > { %v7218_v42 = vadd.f32 %v7217_v43, %v7216_v63 }
 0x404   : > { %v4791_v24 = vadd.f32 %v7218_v42, %v4674_v34  ;;  %v6009_v34 = vld [vmem:[#allocation2] sm:$0x3] }
 0x405   : > { %v7219_v30 = vpop.f32.mrf.mxu1 }
 0x407   : > { %v7220_v3 = vpop.f32.mrf.mxu1 }
 0x408   : > { %v7221_v0 = vadd.f32 %v7220_v3, %v7219_v30 }
 0x40a   : > { %v4802_v61 = vadd.f32 %v7221_v0, %v4683_v57 }
 0x41a   : > { %v7254_v44 = vpop.f32.mrf.mxu0 }
 0x41c   : > { %v7255_v2 = vpop.f32.mrf.mxu0 }
 0x41d   : > { %v7256_v52 = vadd.f32 %v7255_v2, %v7254_v44 }
 0x41f   : > { %v7257_v56 = vpop.f32.mrf.mxu0  ;;  %v4970_v19 = vadd.f32 %v7256_v52, %v4791_v24 }
 0x421   : > { %v7258_v45 = vpop.f32.mrf.mxu0 }
 0x422   : > { %v7259_v13 = vadd.f32 %v7258_v45, %v7257_v56 }
 0x423   : > { %v7292_v4 = vpop.f32.mrf.mxu1 }
 0x424   : > { %v4977_v48 = vadd.f32 %v7259_v13, %v4802_v61 }
 0x425   : > { %v7293_v23 = vpop.f32.mrf.mxu1 }
 0x426   : > { %v7294_v20 = vadd.f32 %v7293_v23, %v7292_v4 }
 0x428   : > { %v7295_v53 = vpop.f32.mrf.mxu1  ;;  %v5081_v47 = vadd.f32 %v7294_v20, %v4970_v19 }
 0x42a   : > { %v7296_v26 = vpop.f32.mrf.mxu1 }
 0x42b   : > { %v7297_v51 = vadd.f32 %v7296_v26, %v7295_v53 }
 0x42d   : > { %v5088_v30 = vadd.f32 %v7297_v51, %v4977_v48 }
 0x43e   : > { %v7330_v33 = vpop.f32.mrf.mxu0 }
 0x440   : > { %v7331_v31 = vpop.f32.mrf.mxu0 }
 0x441   : > { %v7332_v62 = vadd.f32 %v7331_v31, %v7330_v33 }
 0x443   : > { %v5200_v8 = vadd.f32 %v7332_v62, %v5081_v47 }
 0x444   : > { %v7333_v5 = vpop.f32.mrf.mxu0 }
 0x446   : > { %v7334_v41 = vpop.f32.mrf.mxu0 }
 0x447   : > { %v7335_v54 = vadd.f32 %v7334_v41, %v7333_v5 }
 0x449   : > { %v7368_v59 = vpop.f32.mrf.mxu1  ;;  %v5215_v58 = vadd.f32 %v7335_v54, %v5088_v30 }
 0x44b   : > { %v7369_v46 = vpop.f32.mrf.mxu1 }
 0x44c   : > { %v7370_v63 = vadd.f32 %v7369_v46, %v7368_v59 }
 0x44e   : > { %v7371_v37 = vpop.f32.mrf.mxu1  ;;  %v5447_v3 = vadd.f32 %v7370_v63, %v5200_v8 }
 0x450   : > { %v7372_v10 = vpop.f32.mrf.mxu1 }
 0x451   : > { %v7373_v4 = vadd.f32 %v7372_v10, %v7371_v37 }
 0x453   : > { %v5454_v53 = vadd.f32 %v7373_v4, %v5215_v58 }
 0x463   : > { %v7406_v15 = vpop.f32.mrf.mxu0 }
 0x465   : > { %v7407_v17 = vpop.f32.mrf.mxu0 }
 0x466   : > { %v7408_v44 = vadd.f32 %v7407_v17, %v7406_v15 }
 0x468   : > { %v7409_v21 = vpop.f32.mrf.mxu0  ;;  %v5592_v56 = vadd.f32 %v7408_v44, %v5447_v3 }
 0x46a   : > { %v7410_v9 = vpop.f32.mrf.mxu0 }
 0x46b   : > { %v7411_v45 = vadd.f32 %v7410_v9, %v7409_v21 }
 0x46d   : > { %v7444_v38 = vpop.f32.mrf.mxu1  ;;  %v5601_v28 = vadd.f32 %v7411_v45, %v5454_v53 }
 0x46f   : > { %v7445_v49 = vpop.f32.mrf.mxu1 }
 0x470   : > { %v7446_v23 = vadd.f32 %v7445_v49, %v7444_v38 }
 0x472   : > { %v7447_v43 = vpop.f32.mrf.mxu1  ;;  %v5709_v26 = vadd.f32 %v7446_v23, %v5592_v56 }
 0x474   : > { %v7448_v16 = vpop.f32.mrf.mxu1 }
 0x475   : > { %v7449_v59 = vadd.f32 %v7448_v16, %v7447_v43 }
 0x477   : > { %v5720_v25 = vadd.f32 %v7449_v59, %v5601_v28 }
 0x487   : > { %v7482_v40 = vpop.f32.mrf.mxu0 }
 0x489   : > { %v7483_v22 = vpop.f32.mrf.mxu0 }
 0x48a   : > { %v7484_v33 = vadd.f32 %v7483_v22, %v7482_v40 }
 0x48b   : > { %v7485_v2 = vpop.f32.mrf.mxu0 }
 0x48c   : > { %v5888_v29 = vadd.f32 %v7484_v33, %v5709_v26 }
 0x48d   : > { %v7486_v31 = vpop.f32.mrf.mxu0 }
 0x48e   : > { %v7487_v5 = vadd.f32 %v7486_v31, %v7485_v2 }
 0x48f   : > { %v7520_v60 = vpop.f32.mrf.mxu1 }
 0x490   : > { %v5895_v36 = vadd.f32 %v7487_v5, %v5720_v25 }
 0x491   : > { %v7521_v46 = vpop.f32.mrf.mxu1 }
 0x492   : > { %v7522_v41 = vadd.f32 %v7521_v46, %v7520_v60 }
 0x493   : > { %v7523_v15 = vpop.f32.mrf.mxu1 }
 0x494   : > { %v5999_v37 = vadd.f32 %v7522_v41, %v5888_v29 }
 0x495   : > { %v7524_v7 = vpop.f32.mrf.mxu1 }
 0x496   : > { %v6011_v1 = vsel %vm6010_vm5, %v5999_v37, 0.0  ;;  %v7525_v50 = vadd.f32 %v7524_v7, %v7523_v15 }
 0x497   : > { %v6012_v17 = vrot.slane %v6011_v1, 4 }
 0x498   : > { %v6006_v18 = vadd.f32 %v7525_v50, %v5895_v36 }
 0x499   : > { %v6013_v14 = vadd.f32 %v6012_v17, %v6011_v1 }
 0x49a   : > { %v6018_v55 = vsel %vm6010_vm5, %v6006_v18, 0.0 }
 0x49b   : > { %v6014_v32 = vrot.slane %v6013_v14, 2  ;;  %v6019_v10 = vrot.slane %v6018_v55, 4 }
 0x49d   : > { %v6015_v12 = vadd.f32 %v6014_v32, %v6013_v14  ;;  %v6020_v39 = vadd.f32 %v6019_v10, %v6018_v55 }
 0x49f   : > { %v6021_v6 = vrot.slane %v6020_v39, 2  ;;  %v6016_v42 = vrot.slane %v6015_v12, 1 }
 0x4a1   : > { %v6022_v21 = vadd.f32 %v6021_v6, %v6020_v39  ;;  %v6017_v35 = vadd.f32 %v6016_v42, %v6015_v12 }
 0x4a3   : > { %v6023_v38 = vrot.slane %v6022_v21, 1 }
 0x4a5   : > { %v6024_v11 = vadd.f32 %v6023_v38, %v6022_v21 }
 0x4a7   : > { %v6028_v52 = vsel %vm6027_vm6, %v6024_v11, %v6017_v35 }
 0x4a8   : > { %v6030_v27 = vadd.f32 %v6028_v52, %v6009_v34 }
 0x4aa   : > { %6032 = vst.msk [vmem:[#allocation2] sm:$0x3] %vm6031_vm7, %v6030_v27 }
 0x4ab PF: > { %p6153_p8 = scmp.ne.s32.totalorder %s7709_s14, 1 }
 0x4ad   : > { %6036 = sbr.rel (%p6153_p8) target bundleno = 1204 (0x4b4), region = 67 }
 0x4b2   : > { %v6037_v24 = vld [vmem:[#allocation2] sm:$0x3]  ;;  %vm6038_vm8 = vcmask 25600  }
 0x4b3   : > { %6039 = vst.msk [vmem:[%s221_s20] sm:$0x3] %vm6038_vm8, %v6037_v24 }
 0x4b4 PF: > { %s6155_s26 = sshll.u32 %s7713_s15, 5  ;;  %s6055_s24 = sshll.u32 %s221_s20, 4  ;;  %s6056_s24 = int_to_ptr.vmem [resolvable:$true] %s6055_s24 }
 0x4b5   : > { %s6053_s25 = scalar_lea.hbm %s12361_s2, %s6155_s26  ;;  %s13650_s14 = sand.u32 1, %s7693_s10  }
 0x4b6   : > { %s6041_s19 = scalar_lea.sflag [#allocation5], %s13650_s14  ;;  %s7617_s4 = scalar_lea.vmem %s6056_s24, 32 }
 0x4b7   : > { %p7618_p9 = scmp.ne.s32.totalorder %s6056_s24, %s7617_s4  ;;  %s7728_s12 = smov [#allocation4]  }
 0x4b8   : > { %s7621_s23 = sshll.u32 %s7728_s12, 4  ;;  %s7622_s23 = int_to_ptr.vmem [resolvable:$false] %s7621_s23 }
 0x4b9   : > { %p7619_p10 = pnand %p7618_p9, %p7825_p13  ;;  %s7623_s27 = scalar_lea.vmem %s7622_s23, 64 }
 0x4ba   : > { %p7624_p12 = scmp.lt.s32.totalorder %s6056_s24, %s7622_s23  ;;  %p7625_p1 = scmp.lt.s32.totalorder %s7623_s27, %s7617_s4 }
 0x4bb   : > { %p7620_p11 = pneg %p7619_p10 }
 0x4bc   : > { %p7626_p2 = por %p7625_p1, %p7624_p12 }
 0x4be   : > { %p7627_p3 = pnand %p7626_p2, %p7620_p11 }
 0x4c0   : > { %7630 = shalt.err (!%p7627_p3)
}
 0x4c1   : > { %s7631_s15 = scalar_lea.hbm %s6053_s25, 32  ;;  %s7635_s28 = scalar_lea.hbm %s12361_s2, 64 }
 0x4c2   : > { %p7632_p4 = scmp.ne.s32.totalorder %s6053_s25, %s7631_s15  ;;  %p7636_p7 = scmp.lt.s32.totalorder %s6053_s25, %s12361_s2 }
 0x4c3   : > { %p7637_p8 = scmp.lt.s32.totalorder %s7635_s28, %s7631_s15 }
 0x4c4   : > { %p7633_p5 = pnand %p7632_p4, %p7825_p13 }
 0x4c5   : > { %p7638_p9 = por %p7637_p8, %p7636_p7 }
 0x4c6   : > { %p7634_p6 = pneg %p7633_p5 }
 0x4c8   : > { %p7639_p10 = pnand %p7638_p9, %p7634_p6 }
 0x4ca   : > { %7642 = shalt.err (!%p7639_p10)
}
 0x4cb   : > { %7529 = dma.vmem_to_hbm [thread:$0]  (%p7825_p13), %s6056_s24, 32, %s6053_s25, %s6041_s19  }
 0x4cc PF: > { %p7535_p11 = scmp.ge.s32.totalorder %s7725_s18, 2  ;;  %s6067_s29 = sand.u32 1, %s7689_s9  }
 0x4cd   : > { %s6068_s14 = scalar_lea.sflag [#allocation5], %s6067_s29 }
 0x4ce   : > { %p7532_p12 = pnand %p7535_p11, %p7829_p0 }
 0x4d0   : > { %p7533_p1 = pneg %p7532_p12 }
 0x4d2   : > { %7684 = dma.done.wait (%p7533_p1), %s6068_s14, 32  }
 0x4d3   : > { %7686 = vsyncadd (%p7533_p1), %s6068_s14, 4294967264  ;;  %s15_s18 = sadd.s32 1, %s7725_s18   ;;  %s13651_s9 = smov %s7693_s10 }
 0x4d4   : > { %p12_p2 = scmp.ge.s32.totalorder %s15_s18, 6   ;;  %s13652_s10 = smov %s7697_s11 }
 0x4d5   : > { %s13653_s11 = smov %s7821_s3  ;;  %s13654_s12 = smov %s7705_s13 }
 0x4d6   : > { %s13655_s13 = smov %s7834_s7  ;;  %s13656_s14 = smov %s7717_s16 }
 0x4d7   : > { %s13657_s15 = smov %s7721_s17  ;;  %s13658_s16 = smov %s13661_s21 }
 0x4d8   : > { %s13659_s17 = smov %s13667_s22  ;;  %14 = sbr.rel (!%p12_p2) target bundleno = 6 (0x6), region = 107 }
 0x4dd   :  { %6073 = vsyncpa [#allocation5], 1 }
 0x4de   :  { %6075 = vsyncpa [#allocation5 + $0x1], 1 }

</bundles_post_ra>
